<compile_context>
chip_gen: v6e
topology: v6e:2x2x1
jax: 0.10.0
libtpu: 0.0.40
codegen_flags: <defaults>
</compile_context>

<pallas_src>
import numpy as np
import jax
import jax.numpy as jnp
from jax.experimental import pallas as pl
from jax.experimental.pallas import tpu as pltpu

# ----- MelEncoder.__init__ defaults -----
SAMPLE_RATE = 22050
N_FFT = 1024
HOP_LENGTH = int(22050 * 0.01)     # 220
N_MELS = 128
N_FREQ = N_FFT // 2 + 1            # 513 (one-sided)
N_FREQ_KEEP = N_FFT // 2           # 512 = 4*128 : Nyquist bin dropped (zero mel weight)
TILE_R_DEFAULT = 512               # frames (rows) per grid step


# ----------------- deterministic parameter construction -----------------
def _hann_window(n_fft):
    # torch.hann_window default (periodic=True)
    n = np.arange(n_fft)
    return (0.5 - 0.5 * np.cos(2.0 * np.pi * n / n_fft)).astype(np.float32)


def _dft_matrices(n_fft):
    # real/imag one-sided DFT basis, shape (n_fft, n_fft//2 + 1)
    n = np.arange(n_fft)[:, None].astype(np.float64)
    k = np.arange(n_fft // 2 + 1)[None, :].astype(np.float64)
    ang = 2.0 * np.pi * n * k / n_fft
    return np.cos(ang).astype(np.float32), np.sin(ang).astype(np.float32)


def _mel_filterbank(sr, n_fft, n_mels):
    # deterministic in-script replacement for the mel_filters.npz checkpoint
    # (HTK mel scale, Slaney-style area normalization); shape (n_mels, n_fft//2+1)
    n_freq = n_fft // 2 + 1
    hz_to_mel = lambda f: 2595.0 * np.log10(1.0 + f / 700.0)
    mel_to_hz = lambda m: 700.0 * (10.0 ** (m / 2595.0) - 1.0)
    fftfreqs = np.linspace(0.0, sr / 2.0, n_freq)
    mel_pts = mel_to_hz(np.linspace(hz_to_mel(0.0), hz_to_mel(sr / 2.0), n_mels + 2))
    fdiff = np.diff(mel_pts)
    ramps = mel_pts[:, None] - fftfreqs[None, :]
    lower = -ramps[:-2] / fdiff[:-1, None]
    upper = ramps[2:] / fdiff[1:, None]
    w = np.maximum(0.0, np.minimum(lower, upper))
    enorm = 2.0 / (mel_pts[2:n_mels + 2] - mel_pts[:n_mels])
    return (w * enorm[:, None]).astype(np.float32)


def prepare_mel_params(window, cos_m, sin_m, mel_fb):
    """Host-side fusion of the constant operands (all numpy, done once).

    Returns:
      dft_bf16 : (n_fft, 2*N_FREQ_KEEP) = [window*cos | window*sin], Nyquist bin
                 dropped (exact: the mel filterbank has zero weight at k=n_fft//2).
      mel2_bf16: (2*N_FREQ_KEEP, n_mels) = [melT ; melT] so that
                 (Re^2|Im^2) @ mel2 == (Re^2 + Im^2) @ melT  (power-spectrum mel).
    """
    w = np.asarray(window, np.float32)[:, None]
    mel_fb = np.asarray(mel_fb, np.float32)

    # Nyquist-drop safety check: the column being removed must carry (numerically)
    # zero mel weight, otherwise the drop would not be exact.
    nyq = float(np.max(np.abs(mel_fb[:, N_FREQ - 1])))
    peak = float(np.max(np.abs(mel_fb)))
    assert nyq <= 1e-6 * max(peak, 1.0), f"Nyquist mel weight not ~0: {nyq}"

    cos_w = (w * np.asarray(cos_m, np.float32))[:, :N_FREQ_KEEP]
    sin_w = (w * np.asarray(sin_m, np.float32))[:, :N_FREQ_KEEP]
    dft = np.concatenate([cos_w, sin_w], axis=1)                 # (1024, 1024)

    melT = mel_fb[:, :N_FREQ_KEEP].T                             # (512, 128)
    mel2 = np.concatenate([melT, melT], axis=0)                  # (1024, 128)

    return jnp.asarray(dft, jnp.bfloat16), jnp.asarray(mel2, jnp.bfloat16)


# ----------------- JAX glue: torch.stft framing -----------------
def _frame_audio(audio, n_fft, hop):
    # audio: (B, T); matches torch.stft(center=True, pad_mode='reflect')
    pad = n_fft // 2
    padded = jnp.pad(audio, ((0, 0), (pad, pad)), mode="reflect")
    n_frames = 1 + audio.shape[1] // hop
    idx = jnp.arange(n_frames)[:, None] * hop + jnp.arange(n_fft)[None, :]
    return padded[:, idx]                                   # (B, n_frames, n_fft)


# ----------------- Pallas kernel -----------------
def _logmel_kernel(frames_ref, dft_ref, mel2_ref, logspec_ref, blockmax_ref):
    # One wide MXU matmul gives [Re | Im] of the one-sided, windowed DFT
    # (bf16 operands, f32 accumulation).
    y = jnp.dot(frames_ref[...], dft_ref[...],
                preferred_element_type=jnp.float32)          # (tile_r, 2*512) f32
    sq = (y * y).astype(jnp.bfloat16)                        # Re^2 | Im^2, lane dense
    # Stacked mel basis sums the Re^2 and Im^2 halves -> mel(power spectrum).
    # (N=128 only half-fills a 256-wide MXU, but this matmul is ~10% of FLOPs.)
    mel = jnp.dot(sq, mel2_ref[...],
                  preferred_element_type=jnp.float32)        # (tile_r, n_mels) f32
    log_spec = jnp.log10(jnp.maximum(mel, 1e-10))
    logspec_ref[...] = log_spec
    # Per-block max, broadcast across an 8-row block so the store is (8,128)-tiled
    # (no masked 1-row stores, grid axis stays "parallel").
    blk_max = jnp.max(log_spec, axis=0, keepdims=True)
    blockmax_ref[...] = jnp.broadcast_to(blk_max, blockmax_ref.shape)


def _pick_tile_r(rows):
    for t in (TILE_R_DEFAULT, 256, 128, 64, 32, 16, 8):
        if rows >= t:
            return t
    return 8


# ----------------- wrapper -----------------
def mel_encoder_forward(audio, dft_bf16, mel2_bf16,
                        n_fft=N_FFT, hop=HOP_LENGTH, n_mels=N_MELS, padding=0,
                        tile_r=None):
    if padding > 0:
        audio = jnp.pad(audio, ((0, 0), (0, padding)))
    B = audio.shape[0]

    # bf16 before the framing gather halves the materialized frame buffer; values
    # are identical to casting after framing (pad/gather only move samples).
    audio_bf16 = audio.astype(jnp.bfloat16)

    # framing + drop last frame (stft[..., :-1])
    frames = _frame_audio(audio_bf16, n_fft, hop)[:, :-1, :]
    F = frames.shape[1]
    R = B * F
    if tile_r is None:
        # 512 fits v5e's 16 MiB default scoped VMEM (~8 MiB total here).
        # On v6e/v7x, tile_r=1024 (~14 MiB) can be passed for lower step overhead;
        # keep n_tiles >= 2 so the parallel grid axis shards across v7x cores.
        tile_r = _pick_tile_r(R)
    n_tiles = pl.cdiv(R, tile_r)
    R_pad = n_tiles * tile_r
    # zero-padded rows produce log10(1e-10) = -10, the global minimum under the
    # clamp, so they cannot perturb the global maximum; they are trimmed after
    # the kernel.
    frames2d = jnp.pad(frames.reshape(R, n_fft), ((0, R_pad - R), (0, 0)))

    grid = (n_tiles,)
    logspec, blockmax = pl.pallas_call(
        _logmel_kernel,
        out_shape=(jax.ShapeDtypeStruct((R_pad, n_mels), jnp.float32),
                   jax.ShapeDtypeStruct((n_tiles * 8, n_mels), jnp.float32)),
        grid_spec=pltpu.PrefetchScalarGridSpec(
            num_scalar_prefetch=0,
            grid=grid,
            in_specs=[
                pl.BlockSpec((tile_r, n_fft), lambda i: (i, 0)),
                # Constant weight blocks: single-buffer them (they never change
                # across the grid), reclaiming ~2.3 MiB of VMEM.
                pl.BlockSpec((n_fft, 2 * N_FREQ_KEEP), lambda i: (0, 0),
                             pipeline_mode=pl.Buffered(1)),
                pl.BlockSpec((2 * N_FREQ_KEEP, n_mels), lambda i: (0, 0),
                             pipeline_mode=pl.Buffered(1)),
            ],
            out_specs=[
                pl.BlockSpec((tile_r, n_mels), lambda i: (i, 0)),
                pl.BlockSpec((8, n_mels), lambda i: (i, 0)),
            ],
        ),
        compiler_params=pltpu.CompilerParams(dimension_semantics=("parallel",)),
    )(frames2d, dft_bf16, mel2_bf16)

    # Tiny global-max reduce + clamp/shift/scale in plain XLA: it fuses into the
    # transpose that is needed anyway (no extra Pallas pass / HBM round trip).
    gmax = jnp.max(blockmax)
    out = (jnp.maximum(logspec[:R], gmax - 8.0) + 4.0) * 0.25
    # (R, n_mels) -> (B, n_mels, F) to match the PyTorch output convention
    return out.reshape(B, F, n_mels).transpose(0, 2, 1)


# ----------------- pure-JAX references -----------------
def mel_encoder_reference_quant(audio, dft_bf16, mel2_bf16,
                                n_fft=N_FFT, hop=HOP_LENGTH):
    # Same math / same bf16 operands as the kernel, computed with plain XLA ops.
    frames = _frame_audio(audio.astype(jnp.float32), n_fft, hop)[:, :-1, :]
    x = frames.astype(jnp.bfloat16)
    y = jnp.einsum("bfn,nk->bfk", x, dft_bf16,
                   preferred_element_type=jnp.float32)
    sq = (y * y).astype(jnp.bfloat16)
    mel = jnp.einsum("bfk,km->bfm", sq, mel2_bf16,
                     preferred_element_type=jnp.float32)
    log_spec = jnp.log10(jnp.maximum(mel, 1e-10))
    log_spec = jnp.maximum(log_spec, jnp.max(log_spec) - 8.0)
    return ((log_spec + 4.0) / 4.0).transpose(0, 2, 1)       # (B, n_mels, F)


def mel_encoder_reference_f32(audio, window, cos_m, sin_m, mel_fb,
                              n_fft=N_FFT, hop=HOP_LENGTH):
    # Faithful full-precision transcription of the PyTorch module.
    frames = _frame_audio(audio.astype(jnp.float32), n_fft, hop)[:, :-1, :]
    x = frames * window[None, None, :]
    xr = jnp.einsum("bfn,nk->bfk", x, cos_m)
    xi = jnp.einsum("bfn,nk->bfk", x, sin_m)
    power = xr * xr + xi * xi                              # (B, F, n_freq)
    mel = jnp.einsum("mk,bfk->bmf", mel_fb, power)         # (B, n_mels, F)
    log_spec = jnp.log10(jnp.maximum(mel, 1e-10))
    log_spec = jnp.maximum(log_spec, jnp.max(log_spec) - 8.0)
    return (log_spec + 4.0) / 4.0


if __name__ == "__main__":
    key = jax.random.PRNGKey(0)
    B, T = 2, 2205                               # ~0.1 s of 22.05 kHz audio
    audio = jax.random.normal(key, (B, T), dtype=jnp.float32)

    window_np = _hann_window(N_FFT)
    cos_np, sin_np = _dft_matrices(N_FFT)
    mel_fb_np = _mel_filterbank(SAMPLE_RATE, N_FFT, N_MELS)

    dft_bf16, mel2_bf16 = prepare_mel_params(window_np, cos_np, sin_np, mel_fb_np)

    out = mel_encoder_forward(audio, dft_bf16, mel2_bf16)
    out = jax.block_until_ready(out)
    assert bool(jnp.all(jnp.isfinite(out)))

    # 1) kernel vs same-precision reference: must match tightly (verifies the
    #    Pallas tiling, per-block max reduction, clamp & normalization).
    ref_q = mel_encoder_reference_quant(audio, dft_bf16, mel2_bf16)
    assert out.shape == ref_q.shape, (out.shape, ref_q.shape)
    err_q = float(jnp.max(jnp.abs(out - ref_q)))
    assert err_q < 5e-3, f"quantized-reference max abs err = {err_q}"

    # 2) kernel vs full-f32 reference of the original module: loose bound that
    #    accounts for the intentional bf16 operand quantization (error is
    #    concentrated at near-null spectral bins many decades below the peak).
    ref_f = mel_encoder_reference_f32(audio, jnp.asarray(window_np),
                                      jnp.asarray(cos_np), jnp.asarray(sin_np),
                                      jnp.asarray(mel_fb_np))
    err_max = float(jnp.max(jnp.abs(out - ref_f)))
    err_mean = float(jnp.mean(jnp.abs(out - ref_f)))
    assert err_mean < 5e-3, f"f32-reference mean abs err = {err_mean}"
    assert err_max < 0.15, f"f32-reference max abs err = {err_max}"

    print("KERNEL_OK")
</pallas_src>

<mosaic_0001>
module attributes {stable_mosaic.version = 11 : i64} {
  func.func @_logmel_kernel(%arg0: i32, %arg1: memref<16x1024xbf16, #tpu.memory_space<vmem>>, %arg2: memref<1024x1024xbf16, #tpu.memory_space<vmem>>, %arg3: memref<1024x128xbf16, #tpu.memory_space<vmem>>, %arg4: memref<16x128xf32, #tpu.memory_space<vmem>>, %arg5: memref<8x128xf32, #tpu.memory_space<vmem>>) attributes {dimension_semantics = [#tpu.dimension_semantics<parallel>], iteration_bounds = array<i64: 2>, scalar_prefetch = 0 : i64, scratch_operands = 0 : i64, tpu.core_type = #tpu.core_type<tc>, window_params = [{transform_indices = @transform_0, window_bounds = array<i64: 16, 1024>}, {pipeline_mode = #tpu.pipeline_mode<synchronous>, transform_indices = @transform_1, window_bounds = array<i64: 1024, 1024>}, {pipeline_mode = #tpu.pipeline_mode<synchronous>, transform_indices = @transform_2, window_bounds = array<i64: 1024, 128>}, {transform_indices = @transform_3, window_bounds = array<i64: 16, 128>}, {transform_indices = @transform_4, window_bounds = array<i64: 8, 128>}]} {
    %c0 = arith.constant 0 : index
    %c0_0 = arith.constant 0 : index
    %0 = vector.load %arg1[%c0, %c0_0] : memref<16x1024xbf16, #tpu.memory_space<vmem>>, vector<16x1024xbf16>
    %c0_1 = arith.constant 0 : index
    %c0_2 = arith.constant 0 : index
    %1 = vector.load %arg2[%c0_1, %c0_2] : memref<1024x1024xbf16, #tpu.memory_space<vmem>>, vector<1024x1024xbf16>
    %cst = arith.constant dense<0.000000e+00> : vector<16x1024xf32>
    %2 = tpu.matmul %0, %1, %cst {dimension_numbers = #tpu.dot_dimension_numbers<[1], [0], [0], [1], [0, 0, 1, 1], [], []>} : vector<16x1024xbf16>, vector<1024x1024xbf16>, vector<16x1024xf32> -> vector<16x1024xf32>
    %3 = arith.mulf %2, %2 : vector<16x1024xf32>
    %4 = arith.truncf %3 : vector<16x1024xf32> to vector<16x1024xbf16>
    %c0_3 = arith.constant 0 : index
    %c0_4 = arith.constant 0 : index
    %5 = vector.load %arg3[%c0_3, %c0_4] : memref<1024x128xbf16, #tpu.memory_space<vmem>>, vector<1024x128xbf16>
    %cst_5 = arith.constant dense<0.000000e+00> : vector<16x128xf32>
    %6 = tpu.matmul %4, %5, %cst_5 {dimension_numbers = #tpu.dot_dimension_numbers<[1], [0], [0], [1], [0, 0, 1, 1], [], []>} : vector<16x1024xbf16>, vector<1024x128xbf16>, vector<16x128xf32> -> vector<16x128xf32>
    %cst_6 = arith.constant 1.000000e-10 : f32
    %7 = vector.broadcast %cst_6 : f32 to vector<16x128xf32>
    %8 = arith.maximumf %6, %7 : vector<16x128xf32>
    %9 = math.log %8 : vector<16x128xf32>
    %cst_7 = arith.constant 0.434294492 : f32
    %10 = vector.broadcast %cst_7 : f32 to vector<16x128xf32>
    %11 = arith.mulf %9, %10 : vector<16x128xf32>
    %c0_8 = arith.constant 0 : index
    %c0_9 = arith.constant 0 : index
    %12 = vector.load %arg4[%c0_8, %c0_9] : memref<16x128xf32, #tpu.memory_space<vmem>>, vector<16x128xf32>
    tpu.vector_store %arg4[%c0_8, %c0_9], %11 {strides = array<i32>} : memref<16x128xf32, #tpu.memory_space<vmem>>, vector<16x128xf32>,
    %cst_10 = arith.constant dense<0xFF800000> : vector<128xf32>
    %13 = vector.multi_reduction <maximumf>, %11, %cst_10 [0] : vector<16x128xf32> to vector<128xf32>
    %14 = vector.shape_cast %13 : vector<128xf32> to vector<1x128xf32>
    %15 = vector.shape_cast %14 : vector<1x128xf32> to vector<1x128xf32>
    %16 = vector.broadcast %15 : vector<1x128xf32> to vector<8x128xf32>
    %c0_11 = arith.constant 0 : index
    %c0_12 = arith.constant 0 : index
    %17 = vector.load %arg5[%c0_11, %c0_12] : memref<8x128xf32, #tpu.memory_space<vmem>>, vector<8x128xf32>
    tpu.vector_store %arg5[%c0_11, %c0_12], %16 {strides = array<i32>} : memref<8x128xf32, #tpu.memory_space<vmem>>, vector<8x128xf32>,
    return
  }
  func.func @transform_0(%arg0: i32) -> (i32, i32) {
    %c0_i32 = arith.constant 0 : i32
    %c0_i32_0 = arith.constant 0 : i32
    return %arg0, %c0_i32 : i32, i32
  }
  func.func @transform_1(%arg0: i32) -> (i32, i32) {
    %c0_i32 = arith.constant 0 : i32
    %c0_i32_0 = arith.constant 0 : i32
    %c0_i32_1 = arith.constant 0 : i32
    return %c0_i32, %c0_i32_0 : i32, i32
  }
  func.func @transform_2(%arg0: i32) -> (i32, i32) {
    %c0_i32 = arith.constant 0 : i32
    %c0_i32_0 = arith.constant 0 : i32
    %c0_i32_1 = arith.constant 0 : i32
    return %c0_i32, %c0_i32_0 : i32, i32
  }
  func.func @transform_3(%arg0: i32) -> (i32, i32) {
    %c0_i32 = arith.constant 0 : i32
    %c0_i32_0 = arith.constant 0 : i32
    return %arg0, %c0_i32 : i32, i32
  }
  func.func @transform_4(%arg0: i32) -> (i32, i32) {
    %c0_i32 = arith.constant 0 : i32
    %c0_i32_0 = arith.constant 0 : i32
    return %arg0, %c0_i32 : i32, i32
  }
}

</mosaic_0001>

<bundles_post_ra>
// kernel: tpu_custom_call.1
= control target key start
LH: loop header
LB: loop body
LE: loop exit
PB: predicated region body
PF: predicated region fallthrough
CT: control target
= control target key end

     0   :  { %10 = vsyncpa [#allocation3], 0  ;;  %s6382_s0 = inlined_call_operand.hbm [shape: bf16[32,1024], index: 0, kind: input, shape index: {}]   ;;  %s6383_s1 = inlined_call_operand.hbm [shape: bf16[1024,1024], index: 1, kind: input, shape index: {}]   ;;  %s6384_s2 = inlined_call_operand.hbm [shape: bf16[1024,128], index: 2, kind: input, shape index: {}]   ;;  %s6385_s3 = inlined_call_operand.hbm [shape: f32[32,128], index: 3, kind: output, shape index: {0}]   ;;  %s6386_s4 = inlined_call_operand.hbm [shape: f32[16,128], index: 4, kind: output, shape index: {1}]  }
   0x1   :  { %12 = vsyncpa [#allocation3 + $0x1], 0 }
   0x2   :  { %13 = vsyncpa [#allocation6], 0 }
   0x3   :  { %14 = vsyncpa [#allocation4], 0 }
   0x4   :  { %16 = vsyncpa [#allocation4 + $0x1], 0 }
   0x5   :  { %17 = vsyncpa [#allocation10], 0 }
   0x6   :  { %19 = vsyncpa [#allocation10 + $0x1], 0  ;;  %s6001_s15 = smov 0   ;;  %s6003_s16 = smov 0  }
   0x7   :  { %s6005_s17 = smov 0   ;;  %s6007_s18 = smov 0  }
   0x8 LB: > { %s6022_s19 = sadd.s32 4294967295, %s5963_s18   ;;  %s4942_s20 = sadd.s32 4294967294, %s5963_s18   ;;  %s5963_s18 = sphi %s6007_s18, %s6407_s18   ;;  %s5959_s17 = sphi %s6005_s17, %s6406_s17   ;;  %s5955_s16 = sphi %s6003_s16, %s6405_s16   ;;  %s5951_s15 = sphi %s6001_s15, %s6404_s15  }
   0x9   : > { %p45_p0 = scmp.ne.s32.totalorder %s5955_s16, %s5951_s15  ;;  %p6387_p1 = scmp.eq.s32.totalorder %s6022_s19, 0 }
   0xa   : > { %p111_p2 = scmp.eq.s32.totalorder %s6022_s19, 1  ;;  %p117_p3 = scmp.eq.s32.totalorder %s4942_s20, 1 }
   0xb   : > { %p6031_p4 = por %p6387_p1, %p45_p0  ;;  %p4943_p5 = scmp.ge.s32.totalorder %s5963_s18, 1 }
   0xc   : > { %p6036_p6 = por %p117_p3, %p45_p0  ;;  %p150_p7 = scmp.lt.s32.totalorder %s5963_s18, 3 }
   0xd   : > { %s6391_s21 = scalar_select %p6031_p4, 1, 0 }
   0xe   : > { %s6392_s22 = scalar_select %p6036_p6, 1, 0 }
   0xf   : > { %p6041_p8 = pnand %p4943_p5, %p150_p7  ;;  %s5965_s24 = smov [#allocation5]  }
  0x10   : > { %s162_s25 = sshll.u32 %s5965_s24, 4  ;;  %s5966_s27 = smov [#allocation7]   ;;  %s163_s25 = int_to_ptr.vmem [resolvable:$true] %s162_s25 }
  0x11   : > { %s6393_s23 = scalar_select %p6041_p8, 1, 0 }
  0x12   : > { %p5653_p9 = pneg %p6041_p8  ;;  %s175_s28 = sshll.u32 %s5966_s27, 4  ;;  %s176_s28 = int_to_ptr.vmem [resolvable:$true] %s175_s28 }
  0x13   : > { %s5796_s29 = scalar_lea.vmem %s163_s25, 65536  ;;  %p5804_p5 = scmp.lt.s32.totalorder %s163_s25, %s163_s25 }
  0x14   : > { %p6050_p11 = pnand %p5653_p9, %p6387_p1  ;;  %p5797_p13 = scmp.ne.s32.totalorder %s163_s25, %s5796_s29 }
  0x15   : > { %p5805_p7 = scmp.lt.s32.totalorder %s5796_s29, %s5796_s29 }
  0x16   : > { %p5787_p12 = pneg %p6050_p11 }
  0x17   : > { %p5806_p10 = por %p5805_p7, %p5804_p5 }
  0x18   : > { %p5799_p0 = pnand %p5797_p13, %p5787_p12 }
  0x1a   : > { %p5800_p3 = pneg %p5799_p0 }
  0x1c   : > { %p5807_p9 = pnand %p5806_p10, %p5800_p3 }
  0x1e   : > { %5810 = shalt.err (!%p5807_p9)
}
  0x1f   : > { %s5967_s30 = smov 512   ;;  %s5968_s5 = smov 32  }
  0x20   : > { %5656 = dma.hbm_to_vmem [thread:$0]  (!%p6050_p11), %s6383_s1, 65536, %s163_s25, [#allocation6], %s5967_s30, %s5967_s30, %s5968_s5  }
  0x21   : > { %s5822_s8 = scalar_lea.vmem %s176_s28, 8192  ;;  %p5830_p10 = scmp.lt.s32.totalorder %s176_s28, %s176_s28 }
  0x22   : > { %p5823_p13 = scmp.ne.s32.totalorder %s176_s28, %s5822_s8  ;;  %p5831_p3 = scmp.lt.s32.totalorder %s5822_s8, %s5822_s8 }
  0x24   : > { %p5825_p0 = pnand %p5823_p13, %p5787_p12  ;;  %p5832_p7 = por %p5831_p3, %p5830_p10 }
  0x26   : > { %p5826_p5 = pneg %p5825_p0 }
  0x28   : > { %p5833_p9 = pnand %p5832_p7, %p5826_p5 }
  0x2a   : > { %5836 = shalt.err (!%p5833_p9)
}
  0x2b   : > { %s5969_s9 = smov 64   ;;  %s5970_s10 = smov 4  }
  0x2c   : > { %5659 = dma.hbm_to_vmem [thread:$0]  (!%p6050_p11), %s6384_s2, 8192, %s176_s28, [#allocation6], %s5969_s9, %s5969_s9, %s5970_s10  }
  0x2d   : > { %s6076_s13 = sadd.s32 1, %s5963_s18   ;;  %s32_s20 = sadd.s32 1, %s5959_s17 }
  0x2e   : > { %s29_s14 = ssub.s32 %s5963_s18, %s6076_s13  ;;  %p39_p13 = scmp.ne.s32.totalorder %s5959_s17, %s5955_s16 }
  0x2f   : > { %p30_p12 = scmp.eq.s32.totalorder %s29_s14, 0  ;;  %p40_p0 = scmp.eq.s32.totalorder %s5963_s18, 0 }
  0x30   : > { %p6089_p10 = por %p111_p2, %p39_p13  ;;  %p5673_p3 = scmp.lt.s32.totalorder %s5963_s18, 2 }
  0x31   : > { %s6085_s24 = scalar_select %p30_p12, %s5959_s17, %s32_s20  }
  0x32   : > { %p41_p5 = por %p40_p0, %p39_p13  ;;  %s189_s26 = sand.u32 1, %s5959_s17  }
  0x33   : > { %s6395_s25 = scalar_select %p6089_p10, 1, 0 }
  0x34   : > { %s4947_s27 = sshll.u32 %s189_s26, 6  ;;  %s5549_s28 = sshll.u32 %s5963_s18, 10 }
  0x35   : > { %s6099_s7 = scalar_lea.hbm %s6382_s0, %s5549_s28  ;;  %s193_s8 = scalar_lea.vmem [#allocation2], %s4947_s27 }
  0x36   : > { %s201_s9 = sshll.u32 %s193_s8, 4  ;;  %p6103_p2 = pnand %p5673_p3, %p41_p5  ;;  %s6101_s9 = int_to_ptr.vmem [resolvable:$true] %s201_s9 }
  0x37   : > { %s6107_s11 = scalar_lea.sflag [#allocation3], %s189_s26  ;;  %s5837_s12 = scalar_lea.hbm %s6099_s7, 1024 }
  0x38   : > { %p5838_p11 = scmp.ne.s32.totalorder %s6099_s7, %s5837_s12  ;;  %p5839_p7 = pneg %p6103_p2 }
  0x39   : > { %s5842_s27 = scalar_lea.hbm %s6382_s0, 2048  ;;  %p5843_p13 = scmp.lt.s32.totalorder %s6099_s7, %s6382_s0 }
  0x3a   : > { %p5840_p9 = pnand %p5839_p7, %p5838_p11  ;;  %p5844_p0 = scmp.lt.s32.totalorder %s5842_s27, %s5837_s12 }
  0x3c   : > { %p5841_p12 = pneg %p5840_p9  ;;  %p5845_p5 = por %p5844_p0, %p5843_p13 }
  0x3e   : > { %p5846_p3 = pnand %p5845_p5, %p5841_p12 }
  0x40   : > { %5849 = shalt.err (!%p5846_p3)
}
  0x41   : > { %s5850_s26 = scalar_lea.vmem %s6101_s9, 1024  ;;  %s5971_s6 = smov [#allocation2]  }
  0x42   : > { %p5851_p1 = scmp.ne.s32.totalorder %s6101_s9, %s5850_s26  ;;  %s5855_s8 = sshll.u32 %s5971_s6, 4  ;;  %s5856_s8 = int_to_ptr.vmem [resolvable:$false] %s5855_s8 }
  0x43   : > { %s5857_s14 = scalar_lea.vmem %s5856_s8, 2048  ;;  %p5858_p9 = scmp.lt.s32.totalorder %s6101_s9, %s5856_s8 }
  0x44   : > { %p5853_p6 = pnand %p5851_p1, %p5839_p7  ;;  %p5859_p10 = scmp.lt.s32.totalorder %s5857_s14, %s5850_s26 }
  0x46   : > { %p5854_p11 = pneg %p5853_p6  ;;  %p5860_p4 = por %p5859_p10, %p5858_p9 }
  0x48   : > { %p5861_p8 = pnand %p5860_p4, %p5854_p11 }
  0x4a   : > { %5864 = shalt.err (!%p5861_p8)
}
  0x4b   : > { %5663 = dma.hbm_to_vmem [thread:$0]  (!%p6103_p2), %s6099_s7, 1024, %s6101_s9, %s6107_s11, %s5967_s30, %s5967_s30, %s5968_s5  }
  0x4c   : > { %p6397_p1 = scmp.ne.s32.totalorder %s6393_s23, 0 }
  0x4d   : > { %s6134_s12 = sand.u32 (!%p6397_p1), 1, %s5955_s16   ;;  %p6398_p4 = scmp.ne.s32.totalorder (!%p6397_p1), %s6391_s21, 0 }
  0x4e   : > { %213 = sbr.rel (%p6397_p1) target bundleno = 1074 (0x432), region = 32  ;;  %s4952_s20 = sshll.u32 (!%p6397_p1), %s6134_s12, 6 }
  0x4f   : > { %s216_s27 = scalar_lea.sflag (!%p6397_p1), [#allocation3], %s6134_s12  ;;  %s6138_s28 = scalar_lea.vmem (!%p6397_p1), [#allocation2], %s4952_s20 }
  0x53   : > { %5934 = dma.done.wait (%p6398_p4), %s216_s27, 1024  }
  0x54   : > { %5936 = vsyncadd (%p6398_p4), %s216_s27, 4294966272  ;;  %p6399_p6 = scmp.eq.s32.totalorder %s6022_s19, 0 }
  0x56   : > { %5938 = dma.done.wait (%p6399_p6), [#allocation6], 73728   ;;  %p6400_p8 = pmov %p6399_p6 }
  0x57   : > { %v324_v0 = vld [vmem:[#allocation5 + $0x1c0] sm:$0xff]  ;;  %v6159_v59 = vld [vmem:[%s6138_s28 + $0x8] sm:$0xff]  ;;  %s4955_s21 = sshll.u32 %s6134_s12, 4  ;;  %s5550_s23 = sshll.u32 %s6022_s19, 8 }
  0x58   : > { %5940 = vsyncadd (%p6400_p8), [#allocation6], 4294893568  ;;  %v328_v1 = vld [vmem:[#allocation5 + $0x1e0] sm:$0xff]  ;;  %v6162_v60 = vld [vmem:[%s6138_s28 + $0x28] sm:$0xff]  ;;  %s249_s30 = scalar_lea.vmem [#allocation8], %s4955_s21  ;;  %s6319_s10 = scalar_lea.hbm %s6385_s3, %s5550_s23 }
  0x59   : > { %v452_v2 = vld [vmem:[#allocation5 + $0x5c0] sm:$0xff]  ;;  %v5022_v3 = vcombine.high %v324_v0, %v328_v1  ;;  %v5021_v5 = vcombine.low %v324_v0, %v328_v1  ;;  %v6166_v63 = vcombine.high %v6159_v59, %v6162_v60  ;;  %s4805_s5 = sshll.u32 %s249_s30, 4  ;;  %s4787_s11 = scalar_lea.sflag [#allocation4], %s6134_s12  ;;  %s6321_s5 = int_to_ptr.vmem [resolvable:$true] %s4805_s5 }
  0x5a   : > { %v456_v4 = vld [vmem:[#allocation5 + $0x5e0] sm:$0xff]  ;;  %s5865_s29 = scalar_lea.vmem %s6321_s5, 256  ;;  %p6401_p2 = scmp.ne.s32.totalorder %s6395_s25, 0 }
  0x5b   : > { %v316_v6 = vld [vmem:[#allocation5 + $0x180] sm:$0xff]  ;;  %v5150_v8 = vcombine.high %v452_v2, %v456_v4  ;;  %v5149_v9 = vcombine.low %v452_v2, %v456_v4  ;;  %3380 = vmatprep.subr.bf16.mxu0 %v5022_v3  ;;  %3455 = vmatprep.mubr.bf16.mxu1 %v6166_v63  ;;  %p5866_p10 = scmp.ne.s32.totalorder %s6321_s5, %s5865_s29  ;;  %s5972_s26 = smov [#allocation8]  }
  0x5c   : > { %v320_v7 = vld [vmem:[#allocation5 + $0x1a0] sm:$0xff]  ;;  %3381 = vmatpush1.bf16.msra.mxu0 %v5021_v5  ;;  %s5869_s6 = sshll.u32 %s5972_s26, 4  ;;  %s5870_s6 = int_to_ptr.vmem [resolvable:$false] %s5869_s6 }
  0x5d   : > { %v5014_v10 = vcombine.high %v316_v6, %v320_v7  ;;  %v444_v11 = vld [vmem:[#allocation5 + $0x580] sm:$0xff]  ;;  %3423 = vmatprep.subr.bf16.mxu1 %v5150_v8  ;;  %v5013_v18 = vcombine.low %v316_v6, %v320_v7  ;;  %p5867_p7 = pnand %p5866_p10, %p6401_p2  ;;  %s5871_s8 = scalar_lea.vmem %s5870_s6, 512 }
  0x5e   : > { %v448_v12 = vld [vmem:[#allocation5 + $0x5a0] sm:$0xff]  ;;  %3424 = vmatpush1.bf16.msra.mxu1 %v5149_v9  ;;  %p5872_p13 = scmp.lt.s32.totalorder %s6321_s5, %s5870_s6  ;;  %p5873_p0 = scmp.lt.s32.totalorder %s5871_s8, %s5865_s29 }
  0x5f   : > { %v308_v13 = vld [vmem:[#allocation5 + $0x140] sm:$0xff]  ;;  %v5142_v14 = vcombine.high %v444_v11, %v448_v12  ;;  %3382 = vmatprep.subr.bf16.mxu0 %v5014_v10  ;;  %v5141_v19 = vcombine.low %v444_v11, %v448_v12  ;;  %p5868_p12 = pneg %p5867_p7 }
  0x60   : > { %v312_v15 = vld [vmem:[#allocation5 + $0x160] sm:$0xff]  ;;  %3383 = vmatpush1.bf16.msra.mxu0 %v5013_v18  ;;  %p5874_p5 = por %p5873_p0, %p5872_p13 }
  0x61   : > { %v436_v16 = vld [vmem:[#allocation5 + $0x540] sm:$0xff]  ;;  %v5006_v20 = vcombine.high %v308_v13, %v312_v15  ;;  %3425 = vmatprep.subr.bf16.mxu1 %v5142_v14  ;;  %v5005_v26 = vcombine.low %v308_v13, %v312_v15 }
  0x62   : > { %v440_v17 = vld [vmem:[#allocation5 + $0x560] sm:$0xff]  ;;  %3426 = vmatpush1.bf16.msra.mxu1 %v5141_v19  ;;  %p5875_p3 = pnand %p5874_p5, %p5868_p12 }
  0x63   : > { %v5134_v21 = vcombine.high %v436_v16, %v440_v17  ;;  %v300_v22 = vld [vmem:[#allocation5 + $0x100] sm:$0xff]  ;;  %3384 = vmatprep.subr.bf16.mxu0 %v5006_v20  ;;  %v5133_v27 = vcombine.low %v436_v16, %v440_v17 }
  0x64   : > { %v304_v23 = vld [vmem:[#allocation5 + $0x120] sm:$0xff]  ;;  %3385 = vmatpush1.bf16.msra.mxu0 %v5005_v26 }
  0x65   : > { %v428_v24 = vld [vmem:[#allocation5 + $0x500] sm:$0xff]  ;;  %v4998_v28 = vcombine.high %v300_v22, %v304_v23  ;;  %3427 = vmatprep.subr.bf16.mxu1 %v5134_v21  ;;  %v4997_v34 = vcombine.low %v300_v22, %v304_v23 }
  0x66   : > { %v432_v25 = vld [vmem:[#allocation5 + $0x520] sm:$0xff]  ;;  %3428 = vmatpush1.bf16.msra.mxu1 %v5133_v27 }
  0x67   : > { %v5126_v29 = vcombine.high %v428_v24, %v432_v25  ;;  %v292_v30 = vld [vmem:[#allocation5 + $0xc0] sm:$0xff]  ;;  %3386 = vmatprep.subr.bf16.mxu0 %v4998_v28  ;;  %v5125_v35 = vcombine.low %v428_v24, %v432_v25 }
  0x68   : > { %v296_v31 = vld [vmem:[#allocation5 + $0xe0] sm:$0xff]  ;;  %3387 = vmatpush1.bf16.msra.mxu0 %v4997_v34 }
  0x69   : > { %v420_v32 = vld [vmem:[#allocation5 + $0x4c0] sm:$0xff]  ;;  %v4990_v36 = vcombine.high %v292_v30, %v296_v31  ;;  %3429 = vmatprep.subr.bf16.mxu1 %v5126_v29  ;;  %v4989_v42 = vcombine.low %v292_v30, %v296_v31 }
  0x6a   : > { %v424_v33 = vld [vmem:[#allocation5 + $0x4e0] sm:$0xff]  ;;  %3430 = vmatpush1.bf16.msra.mxu1 %v5125_v35 }
  0x6b   : > { %v5118_v37 = vcombine.high %v420_v32, %v424_v33  ;;  %v284_v38 = vld [vmem:[#allocation5 + $0x80] sm:$0xff]  ;;  %3388 = vmatprep.subr.bf16.mxu0 %v4990_v36  ;;  %v5117_v43 = vcombine.low %v420_v32, %v424_v33 }
  0x6c   : > { %v288_v39 = vld [vmem:[#allocation5 + $0xa0] sm:$0xff]  ;;  %3389 = vmatpush1.bf16.msra.mxu0 %v4989_v42 }
  0x6d   : > { %v412_v40 = vld [vmem:[#allocation5 + $0x480] sm:$0xff]  ;;  %v4982_v44 = vcombine.high %v284_v38, %v288_v39  ;;  %3431 = vmatprep.subr.bf16.mxu1 %v5118_v37  ;;  %v4981_v50 = vcombine.low %v284_v38, %v288_v39 }
  0x6e   : > { %v416_v41 = vld [vmem:[#allocation5 + $0x4a0] sm:$0xff]  ;;  %3432 = vmatpush1.bf16.msra.mxu1 %v5117_v43 }
  0x6f   : > { %v5110_v45 = vcombine.high %v412_v40, %v416_v41  ;;  %v276_v46 = vld [vmem:[#allocation5 + $0x40] sm:$0xff]  ;;  %3390 = vmatprep.subr.bf16.mxu0 %v4982_v44  ;;  %v5109_v51 = vcombine.low %v412_v40, %v416_v41 }
  0x70   : > { %v280_v47 = vld [vmem:[#allocation5 + $0x60] sm:$0xff]  ;;  %3391 = vmatpush1.bf16.msra.mxu0 %v4981_v50 }
  0x71   : > { %v404_v48 = vld [vmem:[#allocation5 + $0x440] sm:$0xff]  ;;  %v4974_v52 = vcombine.high %v276_v46, %v280_v47  ;;  %3433 = vmatprep.subr.bf16.mxu1 %v5110_v45  ;;  %v4973_v0 = vcombine.low %v276_v46, %v280_v47 }
  0x72   : > { %v408_v49 = vld [vmem:[#allocation5 + $0x460] sm:$0xff]  ;;  %3434 = vmatpush1.bf16.msra.mxu1 %v5109_v51 }
  0x73   : > { %v268_v53 = vld [vmem:[#allocation5] sm:$0xff]  ;;  %v5102_v56 = vcombine.high %v404_v48, %v408_v49  ;;  %3392 = vmatprep.subr.bf16.mxu0 %v4974_v52  ;;  %v5101_v1 = vcombine.low %v404_v48, %v408_v49 }
  0x74   : > { %v6149_v54 = vld [vmem:[%s6138_s28] sm:$0xff]  ;;  %3393 = vmatpush1.bf16.msra.mxu0 %v4973_v0 }
  0x75   : > { %v6152_v55 = vld [vmem:[%s6138_s28 + $0x20] sm:$0xff]  ;;  %3435 = vmatprep.subr.bf16.mxu1 %v5102_v56 }
  0x76   : > { %v272_v57 = vld [vmem:[#allocation5 + $0x20] sm:$0xff]  ;;  %v6156_v58 = vcombine.high %v6149_v54, %v6152_v55  ;;  %3436 = vmatpush1.bf16.msra.mxu1 %v5101_v1 }
  0x77   : > { %v396_v61 = vld [vmem:[#allocation5 + $0x400] sm:$0xff]  ;;  %v4966_v2 = vcombine.high %v268_v53, %v272_v57  ;;  %v4965_v8 = vcombine.low %v268_v53, %v272_v57 }
  0x78   : > { %v400_v62 = vld [vmem:[#allocation5 + $0x420] sm:$0xff]  ;;  %3412 = vmatprep.mubr.bf16.mxu0 %v6156_v58 }
  0x79   : > { %v5094_v3 = vcombine.high %v396_v61, %v400_v62  ;;  %v388_v4 = vld [vmem:[#allocation5 + $0x3c0] sm:$0xff]  ;;  %3394 = vmatprep.subr.bf16.mxu0 %v4966_v2  ;;  %v5093_v9 = vcombine.low %v396_v61, %v400_v62 }
  0x7a   : > { %v392_v5 = vld [vmem:[#allocation5 + $0x3e0] sm:$0xff]  ;;  %3395 = vmatpush1.bf16.msra.mxu0 %v4965_v8 }
  0x7b   : > { %v516_v6 = vld [vmem:[#allocation5 + $0x7c0] sm:$0xff]  ;;  %v5086_v10 = vcombine.high %v388_v4, %v392_v5  ;;  %3437 = vmatprep.subr.bf16.mxu1 %v5094_v3  ;;  %v5085_v16 = vcombine.low %v388_v4, %v392_v5 }
  0x7c   : > { %v520_v7 = vld [vmem:[#allocation5 + $0x7e0] sm:$0xff]  ;;  %3438 = vmatpush1.bf16.msra.mxu1 %v5093_v9 }
  0x7d   : > { %v5214_v11 = vcombine.high %v516_v6, %v520_v7  ;;  %v380_v12 = vld [vmem:[#allocation5 + $0x380] sm:$0xff]  ;;  %3396 = vmatprep.subr.bf16.mxu0 %v5086_v10  ;;  %v5213_v17 = vcombine.low %v516_v6, %v520_v7 }
  0x7e   : > { %v384_v13 = vld [vmem:[#allocation5 + $0x3a0] sm:$0xff]  ;;  %3397 = vmatpush2.bf16.msra.mxu0 %v5085_v16 }
  0x7f   : > { %v508_v14 = vld [vmem:[#allocation5 + $0x780] sm:$0xff]  ;;  %v5078_v18 = vcombine.high %v380_v12, %v384_v13  ;;  %3439 = vmatprep.subr.bf16.mxu1 %v5214_v11  ;;  %v5077_v24 = vcombine.low %v380_v12, %v384_v13 }
  0x80   : > { %v512_v15 = vld [vmem:[#allocation5 + $0x7a0] sm:$0xff]  ;;  %3440 = vmatpush2.bf16.msra.mxu1 %v5213_v17 }
  0x81   : > { %v5206_v19 = vcombine.high %v508_v14, %v512_v15  ;;  %v372_v20 = vld [vmem:[#allocation5 + $0x340] sm:$0xff]  ;;  %3398 = vmatprep.subr.bf16.mxu0 %v5078_v18  ;;  %v5205_v25 = vcombine.low %v508_v14, %v512_v15 }
  0x82   : > { %v376_v21 = vld [vmem:[#allocation5 + $0x360] sm:$0xff]  ;;  %3399 = vmatpush2.bf16.msra.mxu0 %v5077_v24  ;;  %v6178_v24 = vld [vmem:[%s6138_s28 + $0x30] sm:$0xff] }
  0x83   : > { %v500_v22 = vld [vmem:[#allocation5 + $0x740] sm:$0xff]  ;;  %v5070_v26 = vcombine.high %v372_v20, %v376_v21  ;;  %3441 = vmatprep.subr.bf16.mxu1 %v5206_v19  ;;  %v5069_v32 = vcombine.low %v372_v20, %v376_v21  ;;  %v6172_v21 = vcombine.low %v6149_v54, %v6152_v55 }
  0x84   : > { %v504_v23 = vld [vmem:[#allocation5 + $0x760] sm:$0xff]  ;;  %3442 = vmatpush2.bf16.msra.mxu1 %v5205_v25  ;;  %v6182_v25 = vcombine.low %v6159_v59, %v6162_v60 }
  0x85   : > { %v5198_v27 = vcombine.high %v500_v22, %v504_v23  ;;  %v364_v28 = vld [vmem:[#allocation5 + $0x300] sm:$0xff]  ;;  %3400 = vmatprep.subr.bf16.mxu0 %v5070_v26  ;;  %v5197_v33 = vcombine.low %v500_v22, %v504_v23  ;;  %v6175_v23 = vld [vmem:[%s6138_s28 + $0x10] sm:$0xff] }
  0x86   : > { %v368_v29 = vld [vmem:[#allocation5 + $0x320] sm:$0xff]  ;;  %3401 = vmatpush2.bf16.msra.mxu0 %v5069_v32  ;;  %v6192_v32 = vcombine.high %v6175_v23, %v6178_v24 }
  0x87   : > { %v492_v30 = vld [vmem:[#allocation5 + $0x700] sm:$0xff]  ;;  %v5062_v34 = vcombine.high %v364_v28, %v368_v29  ;;  %3443 = vmatprep.subr.bf16.mxu1 %v5198_v27  ;;  %v5061_v40 = vcombine.low %v364_v28, %v368_v29  ;;  %v6185_v27 = vld [vmem:[%s6138_s28 + $0x18] sm:$0xff] }
  0x88   : > { %v496_v31 = vld [vmem:[#allocation5 + $0x720] sm:$0xff]  ;;  %3444 = vmatpush2.bf16.msra.mxu1 %v5197_v33  ;;  %v6188_v28 = vld [vmem:[%s6138_s28 + $0x38] sm:$0xff] }
  0x89   : > { %v5190_v35 = vcombine.high %v492_v30, %v496_v31  ;;  %v356_v36 = vld [vmem:[#allocation5 + $0x2c0] sm:$0xff]  ;;  %3402 = vmatprep.subr.bf16.mxu0 %v5062_v34  ;;  %v5189_v41 = vcombine.low %v492_v30, %v496_v31  ;;  %v6197_v33 = vcombine.high %v6185_v27, %v6188_v28 }
  0x8a   : > { %v360_v37 = vld [vmem:[#allocation5 + $0x2e0] sm:$0xff]  ;;  %3403 = vmatpush2.bf16.msra.mxu0 %v5061_v40 }
  0x8b   : > { %v484_v38 = vld [vmem:[#allocation5 + $0x6c0] sm:$0xff]  ;;  %v5054_v42 = vcombine.high %v356_v36, %v360_v37  ;;  %3445 = vmatprep.subr.bf16.mxu1 %v5190_v35  ;;  %v5053_v48 = vcombine.low %v356_v36, %v360_v37 }
  0x8c   : > { %v488_v39 = vld [vmem:[#allocation5 + $0x6e0] sm:$0xff]  ;;  %3446 = vmatpush2.bf16.msra.mxu1 %v5189_v41 }
  0x8d   : > { %v5182_v43 = vcombine.high %v484_v38, %v488_v39  ;;  %v348_v44 = vld [vmem:[#allocation5 + $0x280] sm:$0xff]  ;;  %3404 = vmatprep.subr.bf16.mxu0 %v5054_v42  ;;  %v5181_v49 = vcombine.low %v484_v38, %v488_v39 }
  0x8e   : > { %v352_v45 = vld [vmem:[#allocation5 + $0x2a0] sm:$0xff]  ;;  %3405 = vmatpush2.bf16.msra.mxu0 %v5053_v48 }
  0x8f   : > { %v476_v46 = vld [vmem:[#allocation5 + $0x680] sm:$0xff]  ;;  %v5046_v50 = vcombine.high %v348_v44, %v352_v45  ;;  %3447 = vmatprep.subr.bf16.mxu1 %v5182_v43  ;;  %v5045_v61 = vcombine.low %v348_v44, %v352_v45 }
  0x90   : > { %v480_v47 = vld [vmem:[#allocation5 + $0x6a0] sm:$0xff]  ;;  %3448 = vmatpush2.bf16.msra.mxu1 %v5181_v49 }
  0x91   : > { %v5174_v51 = vcombine.high %v476_v46, %v480_v47  ;;  %v340_v52 = vld [vmem:[#allocation5 + $0x240] sm:$0xff]  ;;  %3406 = vmatprep.subr.bf16.mxu0 %v5046_v50  ;;  %v5173_v62 = vcombine.low %v476_v46, %v480_v47 }
  0x92   : > { %v344_v53 = vld [vmem:[#allocation5 + $0x260] sm:$0xff]  ;;  %3407 = vmatpush2.bf16.msra.mxu0 %v5045_v61 }
  0x93   : > { %v468_v56 = vld [vmem:[#allocation5 + $0x640] sm:$0xff]  ;;  %v5038_v0 = vcombine.high %v340_v52, %v344_v53  ;;  %3449 = vmatprep.subr.bf16.mxu1 %v5174_v51  ;;  %v5037_v6 = vcombine.low %v340_v52, %v344_v53 }
  0x94   : > { %v472_v57 = vld [vmem:[#allocation5 + $0x660] sm:$0xff]  ;;  %3450 = vmatpush2.bf16.msra.mxu1 %v5173_v62 }
  0x95   : > { %v5166_v1 = vcombine.high %v468_v56, %v472_v57  ;;  %v332_v2 = vld [vmem:[#allocation5 + $0x200] sm:$0xff]  ;;  %3408 = vmatprep.subr.bf16.mxu0 %v5038_v0  ;;  %v5165_v7 = vcombine.low %v468_v56, %v472_v57 }
  0x96   : > { %v336_v3 = vld [vmem:[#allocation5 + $0x220] sm:$0xff]  ;;  %3409 = vmatpush2.bf16.msra.mxu0 %v5037_v6 }
  0x97   : > { %v460_v4 = vld [vmem:[#allocation5 + $0x600] sm:$0xff]  ;;  %v5030_v8 = vcombine.high %v332_v2, %v336_v3  ;;  %3451 = vmatprep.subr.bf16.mxu1 %v5166_v1  ;;  %v5029_v14 = vcombine.low %v332_v2, %v336_v3 }
  0x98   : > { %v464_v5 = vld [vmem:[#allocation5 + $0x620] sm:$0xff]  ;;  %3452 = vmatpush2.bf16.msra.mxu1 %v5165_v7 }
  0x99   : > { %v5158_v9 = vcombine.high %v460_v4, %v464_v5  ;;  %v580_v10 = vld [vmem:[#allocation5 + $0x9c0] sm:$0xff]  ;;  %3410 = vmatprep.subr.bf16.mxu0 %v5030_v8  ;;  %v5157_v15 = vcombine.low %v460_v4, %v464_v5 }
  0x9a   : > { %v584_v11 = vld [vmem:[#allocation5 + $0x9e0] sm:$0xff]  ;;  %3411 = vmatpush2.bf16.msra.mxu0 %v5029_v14 }
  0x9b   : > { %v708_v12 = vld [vmem:[#allocation5 + $0xdc0] sm:$0xff]  ;;  %v5278_v16 = vcombine.high %v580_v10, %v584_v11  ;;  %3453 = vmatprep.subr.bf16.mxu1 %v5158_v9  ;;  %v5277_v26 = vcombine.low %v580_v10, %v584_v11 }
  0x9c   : > { %v712_v13 = vld [vmem:[#allocation5 + $0xde0] sm:$0xff]  ;;  %3454 = vmatpush2.bf16.msra.mxu1 %v5157_v15 }
  0x9d   : > { %v5406_v17 = vcombine.high %v708_v12, %v712_v13  ;;  %v572_v18 = vld [vmem:[#allocation5 + $0x980] sm:$0xff]  ;;  %3466 = vmatprep.subr.bf16.mxu0 %v5278_v16  ;;  %v5405_v29 = vcombine.low %v708_v12, %v712_v13  ;;  %3413 = vmatmul.mubr.bf16.vlgmr.msra.gmra.mxu0 %v6172_v21 }
  0x9e   : > { %v576_v19 = vld [vmem:[#allocation5 + $0x9a0] sm:$0xff]  ;;  %3467 = vmatpush1.bf16.msra.mxu0 %v5277_v26  ;;  %3498 = vmatprep.mubr.bf16.mxu0 %v6192_v32 }
  0x9f   : > { %v700_v20 = vld [vmem:[#allocation5 + $0xd80] sm:$0xff]  ;;  %v5270_v54 = vcombine.high %v572_v18, %v576_v19  ;;  %3509 = vmatprep.subr.bf16.mxu1 %v5406_v17  ;;  %3456 = vmatmul.mubr.bf16.vlgmr.msra.gmra.mxu1 %v6182_v25  ;;  %v5269_v34 = vcombine.low %v572_v18, %v576_v19 }
  0xa0   : > { %v704_v22 = vld [vmem:[#allocation5 + $0xda0] sm:$0xff]  ;;  %3510 = vmatpush1.bf16.msra.mxu1 %v5405_v29  ;;  %3541 = vmatprep.mubr.bf16.mxu1 %v6197_v33 }
  0xa1   : > { %v5398_v55 = vcombine.high %v700_v20, %v704_v22  ;;  %v564_v30 = vld [vmem:[#allocation5 + $0x940] sm:$0xff]  ;;  %3468 = vmatprep.subr.bf16.mxu0 %v5270_v54  ;;  %v5397_v35 = vcombine.low %v700_v20, %v704_v22 }
  0xa2   : > { %v568_v31 = vld [vmem:[#allocation5 + $0x960] sm:$0xff]  ;;  %3469 = vmatpush1.bf16.msra.mxu0 %v5269_v34 }
  0xa3   : > { %v692_v59 = vld [vmem:[#allocation5 + $0xd40] sm:$0xff]  ;;  %v5262_v36 = vcombine.high %v564_v30, %v568_v31  ;;  %3511 = vmatprep.subr.bf16.mxu1 %v5398_v55  ;;  %v5261_v42 = vcombine.low %v564_v30, %v568_v31 }
  0xa4   : > { %v696_v60 = vld [vmem:[#allocation5 + $0xd60] sm:$0xff]  ;;  %3512 = vmatpush1.bf16.msra.mxu1 %v5397_v35 }
  0xa5   : > { %v556_v37 = vld [vmem:[#allocation5 + $0x900] sm:$0xff]  ;;  %v5390_v40 = vcombine.high %v692_v59, %v696_v60  ;;  %3470 = vmatprep.subr.bf16.mxu0 %v5262_v36  ;;  %v5389_v43 = vcombine.low %v692_v59, %v696_v60 }
  0xa6   : > { %v560_v38 = vld [vmem:[#allocation5 + $0x920] sm:$0xff]  ;;  %3471 = vmatpush1.bf16.msra.mxu0 %v5261_v42 }
  0xa7   : > { %v684_v39 = vld [vmem:[#allocation5 + $0xd00] sm:$0xff]  ;;  %v5254_v44 = vcombine.high %v556_v37, %v560_v38  ;;  %3513 = vmatprep.subr.bf16.mxu1 %v5390_v40  ;;  %v5253_v50 = vcombine.low %v556_v37, %v560_v38 }
  0xa8   : > { %v688_v41 = vld [vmem:[#allocation5 + $0xd20] sm:$0xff]  ;;  %3514 = vmatpush1.bf16.msra.mxu1 %v5389_v43 }
  0xa9   : > { %v548_v45 = vld [vmem:[#allocation5 + $0x8c0] sm:$0xff]  ;;  %v5382_v48 = vcombine.high %v684_v39, %v688_v41  ;;  %3472 = vmatprep.subr.bf16.mxu0 %v5254_v44  ;;  %v5381_v51 = vcombine.low %v684_v39, %v688_v41 }
  0xaa   : > { %v552_v46 = vld [vmem:[#allocation5 + $0x8e0] sm:$0xff]  ;;  %3473 = vmatpush1.bf16.msra.mxu0 %v5253_v50 }
  0xab   : > { %v676_v47 = vld [vmem:[#allocation5 + $0xcc0] sm:$0xff]  ;;  %v5246_v52 = vcombine.high %v548_v45, %v552_v46  ;;  %3515 = vmatprep.subr.bf16.mxu1 %v5382_v48  ;;  %v5245_v0 = vcombine.low %v548_v45, %v552_v46 }
  0xac   : > { %v680_v49 = vld [vmem:[#allocation5 + $0xce0] sm:$0xff]  ;;  %3516 = vmatpush1.bf16.msra.mxu1 %v5381_v51 }
  0xad   : > { %v540_v53 = vld [vmem:[#allocation5 + $0x880] sm:$0xff]  ;;  %v5374_v61 = vcombine.high %v676_v47, %v680_v49  ;;  %3474 = vmatprep.subr.bf16.mxu0 %v5246_v52  ;;  %v5373_v1 = vcombine.low %v676_v47, %v680_v49 }
  0xae   : > { %v544_v56 = vld [vmem:[#allocation5 + $0x8a0] sm:$0xff]  ;;  %3475 = vmatpush1.bf16.msra.mxu0 %v5245_v0 }
  0xaf   : > { %v668_v57 = vld [vmem:[#allocation5 + $0xc80] sm:$0xff]  ;;  %v5238_v2 = vcombine.high %v540_v53, %v544_v56  ;;  %3517 = vmatprep.subr.bf16.mxu1 %v5374_v61  ;;  %v5237_v8 = vcombine.low %v540_v53, %v544_v56 }
  0xb0   : > { %v672_v62 = vld [vmem:[#allocation5 + $0xca0] sm:$0xff]  ;;  %3518 = vmatpush1.bf16.msra.mxu1 %v5373_v1 }
  0xb1   : > { %v532_v3 = vld [vmem:[#allocation5 + $0x840] sm:$0xff]  ;;  %v5366_v6 = vcombine.high %v668_v57, %v672_v62  ;;  %3476 = vmatprep.subr.bf16.mxu0 %v5238_v2  ;;  %v5365_v9 = vcombine.low %v668_v57, %v672_v62 }
  0xb2   : > { %v536_v4 = vld [vmem:[#allocation5 + $0x860] sm:$0xff]  ;;  %3477 = vmatpush1.bf16.msra.mxu0 %v5237_v8 }
  0xb3   : > { %v660_v5 = vld [vmem:[#allocation5 + $0xc40] sm:$0xff]  ;;  %v5230_v10 = vcombine.high %v532_v3, %v536_v4  ;;  %3519 = vmatprep.subr.bf16.mxu1 %v5366_v6  ;;  %v5229_v16 = vcombine.low %v532_v3, %v536_v4 }
  0xb4   : > { %v664_v7 = vld [vmem:[#allocation5 + $0xc60] sm:$0xff]  ;;  %3520 = vmatpush1.bf16.msra.mxu1 %v5365_v9 }
  0xb5   : > { %v524_v11 = vld [vmem:[#allocation5 + $0x800] sm:$0xff]  ;;  %v5358_v14 = vcombine.high %v660_v5, %v664_v7  ;;  %3478 = vmatprep.subr.bf16.mxu0 %v5230_v10  ;;  %v5357_v17 = vcombine.low %v660_v5, %v664_v7 }
  0xb6   : > { %v528_v12 = vld [vmem:[#allocation5 + $0x820] sm:$0xff]  ;;  %3479 = vmatpush1.bf16.msra.mxu0 %v5229_v16 }
  0xb7   : > { %v652_v13 = vld [vmem:[#allocation5 + $0xc00] sm:$0xff]  ;;  %v5222_v18 = vcombine.high %v524_v11, %v528_v12  ;;  %3521 = vmatprep.subr.bf16.mxu1 %v5358_v14  ;;  %v5221_v54 = vcombine.low %v524_v11, %v528_v12 }
  0xb8   : > { %v656_v15 = vld [vmem:[#allocation5 + $0xc20] sm:$0xff]  ;;  %3522 = vmatpush1.bf16.msra.mxu1 %v5357_v17 }
  0xb9   : > { %v644_v19 = vld [vmem:[#allocation5 + $0xbc0] sm:$0xff]  ;;  %v5350_v26 = vcombine.high %v652_v13, %v656_v15  ;;  %3480 = vmatprep.subr.bf16.mxu0 %v5222_v18  ;;  %v5349_v55 = vcombine.low %v652_v13, %v656_v15 }
  0xba   : > { %v648_v20 = vld [vmem:[#allocation5 + $0xbe0] sm:$0xff]  ;;  %3481 = vmatpush1.bf16.msra.mxu0 %v5221_v54 }
  0xbb   : > { %v772_v22 = vld [vmem:[#allocation5 + $0xfc0] sm:$0xff]  ;;  %v5342_v30 = vcombine.high %v644_v19, %v648_v20  ;;  %3523 = vmatprep.subr.bf16.mxu1 %v5350_v26  ;;  %v5341_v36 = vcombine.low %v644_v19, %v648_v20 }
  0xbc   : > { %v776_v29 = vld [vmem:[#allocation5 + $0xfe0] sm:$0xff]  ;;  %3524 = vmatpush1.bf16.msra.mxu1 %v5349_v55 }
  0xbd   : > { %v636_v31 = vld [vmem:[#allocation5 + $0xb80] sm:$0xff]  ;;  %v5470_v34 = vcombine.high %v772_v22, %v776_v29  ;;  %3482 = vmatprep.subr.bf16.mxu0 %v5342_v30  ;;  %v5469_v37 = vcombine.low %v772_v22, %v776_v29 }
  0xbe   : > { %v640_v59 = vld [vmem:[#allocation5 + $0xba0] sm:$0xff]  ;;  %3483 = vmatpush2.bf16.msra.mxu0 %v5341_v36 }
  0xbf   : > { %v764_v60 = vld [vmem:[#allocation5 + $0xf80] sm:$0xff]  ;;  %v5334_v38 = vcombine.high %v636_v31, %v640_v59  ;;  %3525 = vmatprep.subr.bf16.mxu1 %v5470_v34  ;;  %v5333_v44 = vcombine.low %v636_v31, %v640_v59  ;;  %v329_v34 = vld [vmem:[#allocation5 + $0x1e8] sm:$0xff] }
  0xc0   : > { %v768_v35 = vld [vmem:[#allocation5 + $0xfa0] sm:$0xff]  ;;  %3526 = vmatpush2.bf16.msra.mxu1 %v5469_v37  ;;  %v457_v37 = vld [vmem:[#allocation5 + $0x5e8] sm:$0xff] }
  0xc1   : > { %v628_v39 = vld [vmem:[#allocation5 + $0xb40] sm:$0xff]  ;;  %v5462_v42 = vcombine.high %v764_v60, %v768_v35  ;;  %3484 = vmatprep.subr.bf16.mxu0 %v5334_v38  ;;  %v5461_v45 = vcombine.low %v764_v60, %v768_v35  ;;  %v325_v60 = vld [vmem:[#allocation5 + $0x1c8] sm:$0xff] }
  0xc2   : > { %v632_v40 = vld [vmem:[#allocation5 + $0xb60] sm:$0xff]  ;;  %3485 = vmatpush2.bf16.msra.mxu0 %v5333_v44  ;;  %v453_v35 = vld [vmem:[#allocation5 + $0x5c8] sm:$0xff] }
  0xc3   : > { %v756_v41 = vld [vmem:[#allocation5 + $0xf40] sm:$0xff]  ;;  %v5326_v46 = vcombine.high %v628_v39, %v632_v40  ;;  %3527 = vmatprep.subr.bf16.mxu1 %v5462_v42  ;;  %v5325_v52 = vcombine.low %v628_v39, %v632_v40  ;;  %v5024_v40 = vcombine.high %v325_v60, %v329_v34  ;;  %v321_v42 = vld [vmem:[#allocation5 + $0x1a8] sm:$0xff]  ;;  %v5152_v44 = vcombine.high %v453_v35, %v457_v37 }
  0xc4   : > { %v760_v43 = vld [vmem:[#allocation5 + $0xf60] sm:$0xff]  ;;  %3528 = vmatpush2.bf16.msra.mxu1 %v5461_v45  ;;  %v449_v45 = vld [vmem:[#allocation5 + $0x5a8] sm:$0xff] }
  0xc5   : > { %v620_v47 = vld [vmem:[#allocation5 + $0xb00] sm:$0xff]  ;;  %v5454_v50 = vcombine.high %v756_v41, %v760_v43  ;;  %3486 = vmatprep.subr.bf16.mxu0 %v5326_v46  ;;  %v5453_v53 = vcombine.low %v756_v41, %v760_v43  ;;  %v317_v41 = vld [vmem:[#allocation5 + $0x188] sm:$0xff]  ;;  %v6204_v46 = vcombine.low %v6175_v23, %v6178_v24 }
  0xc6   : > { %v624_v48 = vld [vmem:[#allocation5 + $0xb20] sm:$0xff]  ;;  %3487 = vmatpush2.bf16.msra.mxu0 %v5325_v52  ;;  %v445_v43 = vld [vmem:[#allocation5 + $0x588] sm:$0xff]  ;;  %v5015_v23 = vcombine.low %v317_v41, %v321_v42 }
  0xc7   : > { %v748_v49 = vld [vmem:[#allocation5 + $0xf00] sm:$0xff]  ;;  %v5318_v56 = vcombine.high %v620_v47, %v624_v48  ;;  %3529 = vmatprep.subr.bf16.mxu1 %v5454_v50  ;;  %v5317_v2 = vcombine.low %v620_v47, %v624_v48  ;;  %v6208_v47 = vcombine.low %v6185_v27, %v6188_v28  ;;  %v5023_v48 = vcombine.low %v325_v60, %v329_v34  ;;  %v313_v52 = vld [vmem:[#allocation5 + $0x168] sm:$0xff] }
  0xc8   : > { %v752_v51 = vld [vmem:[#allocation5 + $0xf20] sm:$0xff]  ;;  %3530 = vmatpush2.bf16.msra.mxu1 %v5453_v53  ;;  %v5016_v50 = vcombine.high %v317_v41, %v321_v42  ;;  %v437_v53 = vld [vmem:[#allocation5 + $0x548] sm:$0xff]  ;;  %v5143_v24 = vcombine.low %v445_v43, %v449_v45 }
  0xc9   : > { %v612_v57 = vld [vmem:[#allocation5 + $0xac0] sm:$0xff]  ;;  %v5446_v0 = vcombine.high %v748_v49, %v752_v51  ;;  %3488 = vmatprep.subr.bf16.mxu0 %v5318_v56  ;;  %v5445_v3 = vcombine.low %v748_v49, %v752_v51  ;;  %v5151_v49 = vcombine.low %v453_v35, %v457_v37  ;;  %v309_v51 = vld [vmem:[#allocation5 + $0x148] sm:$0xff]  ;;  %v5144_v56 = vcombine.high %v445_v43, %v449_v45 }
  0xca   : > { %v616_v61 = vld [vmem:[#allocation5 + $0xae0] sm:$0xff]  ;;  %3489 = vmatpush2.bf16.msra.mxu0 %v5317_v2  ;;  %v5008_v27 = vcombine.high %v309_v51, %v313_v52  ;;  %v5007_v2 = vcombine.low %v309_v51, %v313_v52  ;;  %v269_v34 = vld [vmem:[#allocation5 + $0x8] sm:$0xff] }
  0xcb   : > { %v740_v62 = vld [vmem:[#allocation5 + $0xec0] sm:$0xff]  ;;  %v5310_v4 = vcombine.high %v612_v57, %v616_v61  ;;  %3531 = vmatprep.subr.bf16.mxu1 %v5446_v0  ;;  %v5309_v10 = vcombine.low %v612_v57, %v616_v61  ;;  %v441_v57 = vld [vmem:[#allocation5 + $0x568] sm:$0xff] }
  0xcc   : > { %v744_v1 = vld [vmem:[#allocation5 + $0xee0] sm:$0xff]  ;;  %3532 = vmatpush2.bf16.msra.mxu1 %v5445_v3  ;;  %v5136_v28 = vcombine.high %v437_v53, %v441_v57  ;;  %v301_v61 = vld [vmem:[#allocation5 + $0x108] sm:$0xff]  ;;  %v5135_v3 = vcombine.low %v437_v53, %v441_v57 }
  0xcd   : > { %v604_v5 = vld [vmem:[#allocation5 + $0xa80] sm:$0xff]  ;;  %v5438_v8 = vcombine.high %v740_v62, %v744_v1  ;;  %3490 = vmatprep.subr.bf16.mxu0 %v5310_v4  ;;  %v5437_v11 = vcombine.low %v740_v62, %v744_v1  ;;  %v305_v62 = vld [vmem:[#allocation5 + $0x128] sm:$0xff] }
  0xce   : > { %v608_v6 = vld [vmem:[#allocation5 + $0xaa0] sm:$0xff]  ;;  %3491 = vmatpush2.bf16.msra.mxu0 %v5309_v10  ;;  %v429_v0 = vld [vmem:[#allocation5 + $0x508] sm:$0xff]  ;;  %v5000_v4 = vcombine.high %v301_v61, %v305_v62  ;;  %v4999_v10 = vcombine.low %v301_v61, %v305_v62 }
  0xcf   : > { %v732_v7 = vld [vmem:[#allocation5 + $0xe80] sm:$0xff]  ;;  %v5302_v12 = vcombine.high %v604_v5, %v608_v6  ;;  %3533 = vmatprep.subr.bf16.mxu1 %v5438_v8  ;;  %v5301_v18 = vcombine.low %v604_v5, %v608_v6  ;;  %v433_v1 = vld [vmem:[#allocation5 + $0x528] sm:$0xff] }
  0xd0   : > { %v736_v9 = vld [vmem:[#allocation5 + $0xea0] sm:$0xff]  ;;  %3534 = vmatpush2.bf16.msra.mxu1 %v5437_v11  ;;  %v5128_v5 = vcombine.high %v429_v0, %v433_v1  ;;  %v293_v6 = vld [vmem:[#allocation5 + $0xc8] sm:$0xff]  ;;  %v5127_v11 = vcombine.low %v429_v0, %v433_v1 }
  0xd1   : > { %v596_v13 = vld [vmem:[#allocation5 + $0xa40] sm:$0xff]  ;;  %v5430_v16 = vcombine.high %v732_v7, %v736_v9  ;;  %3492 = vmatprep.subr.bf16.mxu0 %v5302_v12  ;;  %v5429_v19 = vcombine.low %v732_v7, %v736_v9  ;;  %v297_v7 = vld [vmem:[#allocation5 + $0xe8] sm:$0xff] }
  0xd2   : > { %v600_v14 = vld [vmem:[#allocation5 + $0xa60] sm:$0xff]  ;;  %3493 = vmatpush2.bf16.msra.mxu0 %v5301_v18  ;;  %v421_v8 = vld [vmem:[#allocation5 + $0x4c8] sm:$0xff]  ;;  %v4992_v12 = vcombine.high %v293_v6, %v297_v7  ;;  %v4991_v18 = vcombine.low %v293_v6, %v297_v7 }
  0xd3   : > { %v724_v15 = vld [vmem:[#allocation5 + $0xe40] sm:$0xff]  ;;  %v5294_v20 = vcombine.high %v596_v13, %v600_v14  ;;  %3535 = vmatprep.subr.bf16.mxu1 %v5430_v16  ;;  %v5293_v30 = vcombine.low %v596_v13, %v600_v14  ;;  %v425_v9 = vld [vmem:[#allocation5 + $0x4e8] sm:$0xff] }
  0xd4   : > { %v728_v17 = vld [vmem:[#allocation5 + $0xe60] sm:$0xff]  ;;  %3536 = vmatpush2.bf16.msra.mxu1 %v5429_v19  ;;  %v5120_v13 = vcombine.high %v421_v8, %v425_v9  ;;  %v285_v14 = vld [vmem:[#allocation5 + $0x88] sm:$0xff]  ;;  %v5119_v19 = vcombine.low %v421_v8, %v425_v9 }
  0xd5   : > { %v588_v22 = vld [vmem:[#allocation5 + $0xa00] sm:$0xff]  ;;  %v5422_v54 = vcombine.high %v724_v15, %v728_v17  ;;  %3494 = vmatprep.subr.bf16.mxu0 %v5294_v20  ;;  %v5421_v31 = vcombine.low %v724_v15, %v728_v17  ;;  %v289_v15 = vld [vmem:[#allocation5 + $0xa8] sm:$0xff] }
  0xd6   : > { %v592_v26 = vld [vmem:[#allocation5 + $0xa20] sm:$0xff]  ;;  %3495 = vmatpush2.bf16.msra.mxu0 %v5293_v30  ;;  %v413_v16 = vld [vmem:[#allocation5 + $0x488] sm:$0xff]  ;;  %v4984_v20 = vcombine.high %v285_v14, %v289_v15  ;;  %v4983_v30 = vcombine.low %v285_v14, %v289_v15 }
  0xd7   : > { %v716_v29 = vld [vmem:[#allocation5 + $0xe00] sm:$0xff]  ;;  %v5286_v59 = vcombine.high %v588_v22, %v592_v26  ;;  %3537 = vmatprep.subr.bf16.mxu1 %v5422_v54  ;;  %v5285_v38 = vcombine.low %v588_v22, %v592_v26  ;;  %v417_v17 = vld [vmem:[#allocation5 + $0x4a8] sm:$0xff] }
  0xd8   : > { %v720_v55 = vld [vmem:[#allocation5 + $0xe20] sm:$0xff]  ;;  %3538 = vmatpush2.bf16.msra.mxu1 %v5421_v31  ;;  %v5112_v22 = vcombine.high %v413_v16, %v417_v17  ;;  %v277_v26 = vld [vmem:[#allocation5 + $0x48] sm:$0xff]  ;;  %v5111_v31 = vcombine.low %v413_v16, %v417_v17 }
  0xd9   : > { %v5414_v36 = vcombine.high %v716_v29, %v720_v55  ;;  %3496 = vmatprep.subr.bf16.mxu0 %v5286_v59  ;;  %v5413_v39 = vcombine.low %v716_v29, %v720_v55  ;;  %v281_v29 = vld [vmem:[#allocation5 + $0x68] sm:$0xff] }
  0xda   : > { %3497 = vmatpush2.bf16.msra.mxu0 %v5285_v38  ;;  %v405_v54 = vld [vmem:[#allocation5 + $0x448] sm:$0xff]  ;;  %v4976_v59 = vcombine.high %v277_v26, %v281_v29  ;;  %v4975_v38 = vcombine.low %v277_v26, %v281_v29 }
  0xdb   : > { %3539 = vmatprep.subr.bf16.mxu1 %v5414_v36  ;;  %3552 = vmatprep.subr.bf16.mxu0 %v5024_v40  ;;  %v409_v55 = vld [vmem:[#allocation5 + $0x468] sm:$0xff] }
  0xdc   : > { %3540 = vmatpush2.bf16.msra.mxu1 %v5413_v39  ;;  %v5104_v60 = vcombine.high %v405_v54, %v409_v55  ;;  %v273_v35 = vld [vmem:[#allocation5 + $0x28] sm:$0xff]  ;;  %v5103_v39 = vcombine.low %v405_v54, %v409_v55 }
  0xdd   : > { %3595 = vmatprep.subr.bf16.mxu1 %v5152_v44  ;;  %3499 = vmatmul.mubr.bf16.vlgmr.msra.gmra.mxu0 %v6204_v46  ;;  %v397_v36 = vld [vmem:[#allocation5 + $0x408] sm:$0xff]  ;;  %v4968_v40 = vcombine.high %v269_v34, %v273_v35 }
  0xde   : > { %3553 = vmatpush1.bf16.msra.mxu0 %v5023_v48  ;;  %3584 = vmatprep.mubr.bf16.mxu0 %v6156_v58  ;;  %v401_v37 = vld [vmem:[#allocation5 + $0x428] sm:$0xff]  ;;  %v4967_v48 = vcombine.low %v269_v34, %v273_v35 }
  0xdf   : > { %3542 = vmatmul.mubr.bf16.vlgmr.msra.gmra.mxu1 %v6208_v47  ;;  %3554 = vmatprep.subr.bf16.mxu0 %v5016_v50  ;;  %v5096_v41 = vcombine.high %v397_v36, %v401_v37  ;;  %v389_v42 = vld [vmem:[#allocation5 + $0x3c8] sm:$0xff] }
  0xe0   : > { %3596 = vmatpush1.bf16.msra.mxu1 %v5151_v49  ;;  %3627 = vmatprep.mubr.bf16.mxu1 %v6166_v63  ;;  %v393_v43 = vld [vmem:[#allocation5 + $0x3e8] sm:$0xff]  ;;  %v5095_v49 = vcombine.low %v397_v36, %v401_v37 }
  0xe1   : > { %3597 = vmatprep.subr.bf16.mxu1 %v5144_v56  ;;  %v517_v44 = vld [vmem:[#allocation5 + $0x7c8] sm:$0xff]  ;;  %v5088_v50 = vcombine.high %v389_v42, %v393_v43 }
  0xe2   : > { %3555 = vmatpush1.bf16.msra.mxu0 %v5015_v23  ;;  %v521_v45 = vld [vmem:[#allocation5 + $0x7e8] sm:$0xff]  ;;  %v5087_v23 = vcombine.low %v389_v42, %v393_v43 }
  0xe3   : > { %3556 = vmatprep.subr.bf16.mxu0 %v5008_v27  ;;  %v5216_v51 = vcombine.high %v517_v44, %v521_v45  ;;  %v381_v52 = vld [vmem:[#allocation5 + $0x388] sm:$0xff] }
  0xe4   : > { %3598 = vmatpush1.bf16.msra.mxu1 %v5143_v24  ;;  %v385_v53 = vld [vmem:[#allocation5 + $0x3a8] sm:$0xff]  ;;  %v5215_v24 = vcombine.low %v517_v44, %v521_v45 }
  0xe5   : > { %3599 = vmatprep.subr.bf16.mxu1 %v5136_v28  ;;  %v509_v56 = vld [vmem:[#allocation5 + $0x788] sm:$0xff]  ;;  %v5080_v27 = vcombine.high %v381_v52, %v385_v53 }
  0xe6   : > { %3557 = vmatpush1.bf16.msra.mxu0 %v5007_v2  ;;  %v513_v57 = vld [vmem:[#allocation5 + $0x7a8] sm:$0xff]  ;;  %v5079_v2 = vcombine.low %v381_v52, %v385_v53 }
  0xe7   : > { %3558 = vmatprep.subr.bf16.mxu0 %v5000_v4  ;;  %v5208_v28 = vcombine.high %v509_v56, %v513_v57  ;;  %v373_v61 = vld [vmem:[#allocation5 + $0x348] sm:$0xff] }
  0xe8   : > { %3600 = vmatpush1.bf16.msra.mxu1 %v5135_v3  ;;  %v377_v62 = vld [vmem:[#allocation5 + $0x368] sm:$0xff]  ;;  %v5207_v3 = vcombine.low %v509_v56, %v513_v57 }
  0xe9   : > { %3601 = vmatprep.subr.bf16.mxu1 %v5128_v5  ;;  %v501_v0 = vld [vmem:[#allocation5 + $0x748] sm:$0xff]  ;;  %v5072_v4 = vcombine.high %v373_v61, %v377_v62 }
  0xea   : > { %3559 = vmatpush1.bf16.msra.mxu0 %v4999_v10  ;;  %v505_v1 = vld [vmem:[#allocation5 + $0x768] sm:$0xff]  ;;  %v5071_v10 = vcombine.low %v373_v61, %v377_v62 }
  0xeb   : > { %3560 = vmatprep.subr.bf16.mxu0 %v4992_v12  ;;  %v5200_v5 = vcombine.high %v501_v0, %v505_v1  ;;  %v365_v6 = vld [vmem:[#allocation5 + $0x308] sm:$0xff] }
  0xec   : > { %3602 = vmatpush1.bf16.msra.mxu1 %v5127_v11  ;;  %v369_v7 = vld [vmem:[#allocation5 + $0x328] sm:$0xff]  ;;  %v5199_v11 = vcombine.low %v501_v0, %v505_v1 }
  0xed   : > { %3603 = vmatprep.subr.bf16.mxu1 %v5120_v13  ;;  %v493_v8 = vld [vmem:[#allocation5 + $0x708] sm:$0xff]  ;;  %v5064_v12 = vcombine.high %v365_v6, %v369_v7 }
  0xee   : > { %3561 = vmatpush1.bf16.msra.mxu0 %v4991_v18  ;;  %v497_v9 = vld [vmem:[#allocation5 + $0x728] sm:$0xff]  ;;  %v5063_v18 = vcombine.low %v365_v6, %v369_v7 }
  0xef   : > { %3562 = vmatprep.subr.bf16.mxu0 %v4984_v20  ;;  %v5192_v13 = vcombine.high %v493_v8, %v497_v9  ;;  %v357_v14 = vld [vmem:[#allocation5 + $0x2c8] sm:$0xff] }
  0xf0   : > { %3604 = vmatpush1.bf16.msra.mxu1 %v5119_v19  ;;  %v361_v15 = vld [vmem:[#allocation5 + $0x2e8] sm:$0xff]  ;;  %v5191_v19 = vcombine.low %v493_v8, %v497_v9 }
  0xf1   : > { %3605 = vmatprep.subr.bf16.mxu1 %v5112_v22  ;;  %v485_v16 = vld [vmem:[#allocation5 + $0x6c8] sm:$0xff]  ;;  %v5056_v20 = vcombine.high %v357_v14, %v361_v15 }
  0xf2   : > { %3563 = vmatpush1.bf16.msra.mxu0 %v4983_v30  ;;  %v489_v17 = vld [vmem:[#allocation5 + $0x6e8] sm:$0xff]  ;;  %v5055_v30 = vcombine.low %v357_v14, %v361_v15 }
  0xf3   : > { %3564 = vmatprep.subr.bf16.mxu0 %v4976_v59  ;;  %v5184_v22 = vcombine.high %v485_v16, %v489_v17  ;;  %v349_v26 = vld [vmem:[#allocation5 + $0x288] sm:$0xff] }
  0xf4   : > { %3606 = vmatpush1.bf16.msra.mxu1 %v5111_v31  ;;  %v353_v29 = vld [vmem:[#allocation5 + $0x2a8] sm:$0xff]  ;;  %v5183_v31 = vcombine.low %v485_v16, %v489_v17 }
  0xf5   : > { %3607 = vmatprep.subr.bf16.mxu1 %v5104_v60  ;;  %v477_v54 = vld [vmem:[#allocation5 + $0x688] sm:$0xff]  ;;  %v5048_v59 = vcombine.high %v349_v26, %v353_v29 }
  0xf6   : > { %3565 = vmatpush1.bf16.msra.mxu0 %v4975_v38  ;;  %v481_v55 = vld [vmem:[#allocation5 + $0x6a8] sm:$0xff]  ;;  %v5047_v38 = vcombine.low %v349_v26, %v353_v29 }
  0xf7   : > { %3566 = vmatprep.subr.bf16.mxu0 %v4968_v40  ;;  %v5176_v60 = vcombine.high %v477_v54, %v481_v55  ;;  %v341_v34 = vld [vmem:[#allocation5 + $0x248] sm:$0xff] }
  0xf8   : > { %3608 = vmatpush1.bf16.msra.mxu1 %v5103_v39  ;;  %v345_v35 = vld [vmem:[#allocation5 + $0x268] sm:$0xff]  ;;  %v5175_v39 = vcombine.low %v477_v54, %v481_v55 }
  0xf9   : > { %3609 = vmatprep.subr.bf16.mxu1 %v5096_v41  ;;  %v469_v36 = vld [vmem:[#allocation5 + $0x648] sm:$0xff]  ;;  %v5040_v40 = vcombine.high %v341_v34, %v345_v35 }
  0xfa   : > { %3567 = vmatpush1.bf16.msra.mxu0 %v4967_v48  ;;  %v473_v37 = vld [vmem:[#allocation5 + $0x668] sm:$0xff]  ;;  %v5039_v48 = vcombine.low %v341_v34, %v345_v35 }
  0xfb   : > { %3568 = vmatprep.subr.bf16.mxu0 %v5088_v50  ;;  %v5168_v41 = vcombine.high %v469_v36, %v473_v37  ;;  %v333_v42 = vld [vmem:[#allocation5 + $0x208] sm:$0xff] }
  0xfc   : > { %3610 = vmatpush1.bf16.msra.mxu1 %v5095_v49  ;;  %v337_v43 = vld [vmem:[#allocation5 + $0x228] sm:$0xff]  ;;  %v5167_v49 = vcombine.low %v469_v36, %v473_v37 }
  0xfd   : > { %3611 = vmatprep.subr.bf16.mxu1 %v5216_v51  ;;  %v461_v44 = vld [vmem:[#allocation5 + $0x608] sm:$0xff]  ;;  %v5032_v50 = vcombine.high %v333_v42, %v337_v43 }
  0xfe   : > { %3569 = vmatpush2.bf16.msra.mxu0 %v5087_v23  ;;  %v465_v45 = vld [vmem:[#allocation5 + $0x628] sm:$0xff]  ;;  %v5031_v23 = vcombine.low %v333_v42, %v337_v43 }
  0xff   : > { %3570 = vmatprep.subr.bf16.mxu0 %v5080_v27  ;;  %v5160_v51 = vcombine.high %v461_v44, %v465_v45  ;;  %v581_v52 = vld [vmem:[#allocation5 + $0x9c8] sm:$0xff] }
 0x100   : > { %3612 = vmatpush2.bf16.msra.mxu1 %v5215_v24  ;;  %v585_v53 = vld [vmem:[#allocation5 + $0x9e8] sm:$0xff]  ;;  %v5159_v24 = vcombine.low %v461_v44, %v465_v45 }
 0x101   : > { %3613 = vmatprep.subr.bf16.mxu1 %v5208_v28  ;;  %v709_v56 = vld [vmem:[#allocation5 + $0xdc8] sm:$0xff]  ;;  %v5280_v27 = vcombine.high %v581_v52, %v585_v53 }
 0x102   : > { %3571 = vmatpush2.bf16.msra.mxu0 %v5079_v2  ;;  %v713_v57 = vld [vmem:[#allocation5 + $0xde8] sm:$0xff]  ;;  %v5279_v2 = vcombine.low %v581_v52, %v585_v53 }
 0x103   : > { %3572 = vmatprep.subr.bf16.mxu0 %v5072_v4  ;;  %v5408_v28 = vcombine.high %v709_v56, %v713_v57  ;;  %v573_v61 = vld [vmem:[#allocation5 + $0x988] sm:$0xff] }
 0x104   : > { %3614 = vmatpush2.bf16.msra.mxu1 %v5207_v3  ;;  %v577_v62 = vld [vmem:[#allocation5 + $0x9a8] sm:$0xff]  ;;  %v5407_v3 = vcombine.low %v709_v56, %v713_v57 }
 0x105   : > { %3615 = vmatprep.subr.bf16.mxu1 %v5200_v5  ;;  %v701_v0 = vld [vmem:[#allocation5 + $0xd88] sm:$0xff]  ;;  %v5272_v4 = vcombine.high %v573_v61, %v577_v62 }
 0x106   : > { %3573 = vmatpush2.bf16.msra.mxu0 %v5071_v10  ;;  %v705_v1 = vld [vmem:[#allocation5 + $0xda8] sm:$0xff]  ;;  %v5271_v10 = vcombine.low %v573_v61, %v577_v62 }
 0x107   : > { %3574 = vmatprep.subr.bf16.mxu0 %v5064_v12  ;;  %v5400_v5 = vcombine.high %v701_v0, %v705_v1  ;;  %v565_v6 = vld [vmem:[#allocation5 + $0x948] sm:$0xff] }
 0x108   : > { %3616 = vmatpush2.bf16.msra.mxu1 %v5199_v11  ;;  %v569_v7 = vld [vmem:[#allocation5 + $0x968] sm:$0xff]  ;;  %v5399_v11 = vcombine.low %v701_v0, %v705_v1 }
 0x109   : > { %3617 = vmatprep.subr.bf16.mxu1 %v5192_v13  ;;  %v693_v8 = vld [vmem:[#allocation5 + $0xd48] sm:$0xff]  ;;  %v5264_v12 = vcombine.high %v565_v6, %v569_v7 }
 0x10a   : > { %3575 = vmatpush2.bf16.msra.mxu0 %v5063_v18  ;;  %v697_v9 = vld [vmem:[#allocation5 + $0xd68] sm:$0xff]  ;;  %v5263_v18 = vcombine.low %v565_v6, %v569_v7 }
 0x10b   : > { %3576 = vmatprep.subr.bf16.mxu0 %v5056_v20  ;;  %v5392_v13 = vcombine.high %v693_v8, %v697_v9  ;;  %v557_v14 = vld [vmem:[#allocation5 + $0x908] sm:$0xff] }
 0x10c   : > { %3618 = vmatpush2.bf16.msra.mxu1 %v5191_v19  ;;  %v561_v15 = vld [vmem:[#allocation5 + $0x928] sm:$0xff]  ;;  %v5391_v19 = vcombine.low %v693_v8, %v697_v9 }
 0x10d   : > { %3619 = vmatprep.subr.bf16.mxu1 %v5184_v22  ;;  %v685_v16 = vld [vmem:[#allocation5 + $0xd08] sm:$0xff]  ;;  %v5256_v20 = vcombine.high %v557_v14, %v561_v15 }
 0x10e   : > { %3577 = vmatpush2.bf16.msra.mxu0 %v5055_v30  ;;  %v689_v17 = vld [vmem:[#allocation5 + $0xd28] sm:$0xff]  ;;  %v5255_v30 = vcombine.low %v557_v14, %v561_v15 }
 0x10f   : > { %3578 = vmatprep.subr.bf16.mxu0 %v5048_v59  ;;  %v5384_v22 = vcombine.high %v685_v16, %v689_v17  ;;  %v549_v26 = vld [vmem:[#allocation5 + $0x8c8] sm:$0xff] }
 0x110   : > { %3620 = vmatpush2.bf16.msra.mxu1 %v5183_v31  ;;  %v553_v29 = vld [vmem:[#allocation5 + $0x8e8] sm:$0xff]  ;;  %v5383_v31 = vcombine.low %v685_v16, %v689_v17 }
 0x111   : > { %3621 = vmatprep.subr.bf16.mxu1 %v5176_v60  ;;  %v677_v54 = vld [vmem:[#allocation5 + $0xcc8] sm:$0xff]  ;;  %v5248_v59 = vcombine.high %v549_v26, %v553_v29 }
 0x112   : > { %3579 = vmatpush2.bf16.msra.mxu0 %v5047_v38  ;;  %v681_v55 = vld [vmem:[#allocation5 + $0xce8] sm:$0xff]  ;;  %v5247_v38 = vcombine.low %v549_v26, %v553_v29 }
 0x113   : > { %3580 = vmatprep.subr.bf16.mxu0 %v5040_v40  ;;  %v5376_v60 = vcombine.high %v677_v54, %v681_v55  ;;  %v541_v34 = vld [vmem:[#allocation5 + $0x888] sm:$0xff] }
 0x114   : > { %3622 = vmatpush2.bf16.msra.mxu1 %v5175_v39  ;;  %v545_v35 = vld [vmem:[#allocation5 + $0x8a8] sm:$0xff]  ;;  %v5375_v39 = vcombine.low %v677_v54, %v681_v55 }
 0x115   : > { %3623 = vmatprep.subr.bf16.mxu1 %v5168_v41  ;;  %v669_v36 = vld [vmem:[#allocation5 + $0xc88] sm:$0xff]  ;;  %v5240_v40 = vcombine.high %v541_v34, %v545_v35 }
 0x116   : > { %3581 = vmatpush2.bf16.msra.mxu0 %v5039_v48  ;;  %v673_v37 = vld [vmem:[#allocation5 + $0xca8] sm:$0xff]  ;;  %v5239_v48 = vcombine.low %v541_v34, %v545_v35 }
 0x117   : > { %3582 = vmatprep.subr.bf16.mxu0 %v5032_v50  ;;  %v5368_v41 = vcombine.high %v669_v36, %v673_v37  ;;  %v533_v42 = vld [vmem:[#allocation5 + $0x848] sm:$0xff] }
 0x118   : > { %3624 = vmatpush2.bf16.msra.mxu1 %v5167_v49  ;;  %v537_v43 = vld [vmem:[#allocation5 + $0x868] sm:$0xff]  ;;  %v5367_v49 = vcombine.low %v669_v36, %v673_v37 }
 0x119   : > { %3625 = vmatprep.subr.bf16.mxu1 %v5160_v51  ;;  %v661_v44 = vld [vmem:[#allocation5 + $0xc48] sm:$0xff]  ;;  %v5232_v50 = vcombine.high %v533_v42, %v537_v43 }
 0x11a   : > { %3583 = vmatpush2.bf16.msra.mxu0 %v5031_v23  ;;  %v665_v45 = vld [vmem:[#allocation5 + $0xc68] sm:$0xff]  ;;  %v5231_v23 = vcombine.low %v533_v42, %v537_v43 }
 0x11b   : > { %3638 = vmatprep.subr.bf16.mxu0 %v5280_v27  ;;  %v5360_v51 = vcombine.high %v661_v44, %v665_v45  ;;  %v525_v52 = vld [vmem:[#allocation5 + $0x808] sm:$0xff] }
 0x11c   : > { %3626 = vmatpush2.bf16.msra.mxu1 %v5159_v24  ;;  %v529_v53 = vld [vmem:[#allocation5 + $0x828] sm:$0xff]  ;;  %v5359_v24 = vcombine.low %v661_v44, %v665_v45 }
 0x11d   : > { %3681 = vmatprep.subr.bf16.mxu1 %v5408_v28  ;;  %3585 = vmatmul.mubr.bf16.vlgmr.msra.gmra.mxu0 %v6172_v21  ;;  %v653_v56 = vld [vmem:[#allocation5 + $0xc08] sm:$0xff]  ;;  %v5224_v27 = vcombine.high %v525_v52, %v529_v53 }
 0x11e   : > { %3639 = vmatpush1.bf16.msra.mxu0 %v5279_v2  ;;  %3670 = vmatprep.mubr.bf16.mxu0 %v6192_v32  ;;  %v657_v57 = vld [vmem:[#allocation5 + $0xc28] sm:$0xff]  ;;  %v5223_v2 = vcombine.low %v525_v52, %v529_v53 }
 0x11f   : > { %3628 = vmatmul.mubr.bf16.vlgmr.msra.gmra.mxu1 %v6182_v25  ;;  %3640 = vmatprep.subr.bf16.mxu0 %v5272_v4  ;;  %v5352_v28 = vcombine.high %v653_v56, %v657_v57  ;;  %v645_v61 = vld [vmem:[#allocation5 + $0xbc8] sm:$0xff] }
 0x120   : > { %3682 = vmatpush1.bf16.msra.mxu1 %v5407_v3  ;;  %3713 = vmatprep.mubr.bf16.mxu1 %v6197_v33  ;;  %v649_v62 = vld [vmem:[#allocation5 + $0xbe8] sm:$0xff]  ;;  %v5351_v3 = vcombine.low %v653_v56, %v657_v57 }
 0x121   : > { %3683 = vmatprep.subr.bf16.mxu1 %v5400_v5  ;;  %v773_v0 = vld [vmem:[#allocation5 + $0xfc8] sm:$0xff]  ;;  %v5344_v4 = vcombine.high %v645_v61, %v649_v62 }
 0x122   : > { %3641 = vmatpush1.bf16.msra.mxu0 %v5271_v10  ;;  %v777_v1 = vld [vmem:[#allocation5 + $0xfe8] sm:$0xff]  ;;  %v5343_v10 = vcombine.low %v645_v61, %v649_v62 }
 0x123   : > { %3642 = vmatprep.subr.bf16.mxu0 %v5264_v12  ;;  %v5472_v5 = vcombine.high %v773_v0, %v777_v1  ;;  %v637_v6 = vld [vmem:[#allocation5 + $0xb88] sm:$0xff] }
 0x124   : > { %3684 = vmatpush1.bf16.msra.mxu1 %v5399_v11  ;;  %v641_v7 = vld [vmem:[#allocation5 + $0xba8] sm:$0xff]  ;;  %v5471_v11 = vcombine.low %v773_v0, %v777_v1 }
 0x125   : > { %3685 = vmatprep.subr.bf16.mxu1 %v5392_v13  ;;  %v765_v8 = vld [vmem:[#allocation5 + $0xf88] sm:$0xff]  ;;  %v5336_v12 = vcombine.high %v637_v6, %v641_v7 }
 0x126   : > { %3643 = vmatpush1.bf16.msra.mxu0 %v5263_v18  ;;  %v769_v9 = vld [vmem:[#allocation5 + $0xfa8] sm:$0xff]  ;;  %v5335_v18 = vcombine.low %v637_v6, %v641_v7  ;;  %v326_v6 = vld [vmem:[#allocation5 + $0x1d0] sm:$0xff] }
 0x127   : > { %3644 = vmatprep.subr.bf16.mxu0 %v5256_v20  ;;  %v5464_v13 = vcombine.high %v765_v8, %v769_v9  ;;  %v629_v14 = vld [vmem:[#allocation5 + $0xb48] sm:$0xff]  ;;  %v330_v7 = vld [vmem:[#allocation5 + $0x1f0] sm:$0xff] }
 0x128   : > { %3686 = vmatpush1.bf16.msra.mxu1 %v5391_v19  ;;  %v633_v15 = vld [vmem:[#allocation5 + $0xb68] sm:$0xff]  ;;  %v5463_v19 = vcombine.low %v765_v8, %v769_v9  ;;  %v454_v8 = vld [vmem:[#allocation5 + $0x5d0] sm:$0xff] }
 0x129   : > { %3687 = vmatprep.subr.bf16.mxu1 %v5384_v22  ;;  %v757_v16 = vld [vmem:[#allocation5 + $0xf48] sm:$0xff]  ;;  %v5328_v20 = vcombine.high %v629_v14, %v633_v15  ;;  %v458_v9 = vld [vmem:[#allocation5 + $0x5f0] sm:$0xff] }
 0x12a   : > { %3645 = vmatpush1.bf16.msra.mxu0 %v5255_v30  ;;  %v761_v17 = vld [vmem:[#allocation5 + $0xf68] sm:$0xff]  ;;  %v5327_v30 = vcombine.low %v629_v14, %v633_v15  ;;  %v318_v14 = vld [vmem:[#allocation5 + $0x190] sm:$0xff] }
 0x12b   : > { %3646 = vmatprep.subr.bf16.mxu0 %v5248_v59  ;;  %v5456_v22 = vcombine.high %v757_v16, %v761_v17  ;;  %v621_v26 = vld [vmem:[#allocation5 + $0xb08] sm:$0xff]  ;;  %v322_v15 = vld [vmem:[#allocation5 + $0x1b0] sm:$0xff] }
 0x12c   : > { %3688 = vmatpush1.bf16.msra.mxu1 %v5383_v31  ;;  %v625_v29 = vld [vmem:[#allocation5 + $0xb28] sm:$0xff]  ;;  %v5455_v31 = vcombine.low %v757_v16, %v761_v17  ;;  %v446_v16 = vld [vmem:[#allocation5 + $0x590] sm:$0xff] }
 0x12d   : > { %3689 = vmatprep.subr.bf16.mxu1 %v5376_v60  ;;  %v749_v54 = vld [vmem:[#allocation5 + $0xf08] sm:$0xff]  ;;  %v5320_v59 = vcombine.high %v621_v26, %v625_v29  ;;  %v450_v17 = vld [vmem:[#allocation5 + $0x5b0] sm:$0xff] }
 0x12e   : > { %3647 = vmatpush1.bf16.msra.mxu0 %v5247_v38  ;;  %v753_v55 = vld [vmem:[#allocation5 + $0xf28] sm:$0xff]  ;;  %v5319_v38 = vcombine.low %v621_v26, %v625_v29  ;;  %v310_v26 = vld [vmem:[#allocation5 + $0x150] sm:$0xff] }
 0x12f   : > { %3648 = vmatprep.subr.bf16.mxu0 %v5240_v40  ;;  %v5448_v60 = vcombine.high %v749_v54, %v753_v55  ;;  %v613_v34 = vld [vmem:[#allocation5 + $0xac8] sm:$0xff]  ;;  %v314_v29 = vld [vmem:[#allocation5 + $0x170] sm:$0xff] }
 0x130   : > { %3690 = vmatpush1.bf16.msra.mxu1 %v5375_v39  ;;  %v617_v35 = vld [vmem:[#allocation5 + $0xae8] sm:$0xff]  ;;  %v5447_v39 = vcombine.low %v749_v54, %v753_v55  ;;  %v438_v54 = vld [vmem:[#allocation5 + $0x550] sm:$0xff] }
 0x131   : > { %3691 = vmatprep.subr.bf16.mxu1 %v5368_v41  ;;  %v741_v36 = vld [vmem:[#allocation5 + $0xec8] sm:$0xff]  ;;  %v5312_v40 = vcombine.high %v613_v34, %v617_v35  ;;  %v442_v55 = vld [vmem:[#allocation5 + $0x570] sm:$0xff] }
 0x132   : > { %3649 = vmatpush1.bf16.msra.mxu0 %v5239_v48  ;;  %v745_v37 = vld [vmem:[#allocation5 + $0xee8] sm:$0xff]  ;;  %v5311_v48 = vcombine.low %v613_v34, %v617_v35  ;;  %v302_v34 = vld [vmem:[#allocation5 + $0x110] sm:$0xff] }
 0x133   : > { %3650 = vmatprep.subr.bf16.mxu0 %v5232_v50  ;;  %v5440_v41 = vcombine.high %v741_v36, %v745_v37  ;;  %v605_v42 = vld [vmem:[#allocation5 + $0xa88] sm:$0xff]  ;;  %v306_v35 = vld [vmem:[#allocation5 + $0x130] sm:$0xff] }
 0x134   : > { %3692 = vmatpush1.bf16.msra.mxu1 %v5367_v49  ;;  %v609_v43 = vld [vmem:[#allocation5 + $0xaa8] sm:$0xff]  ;;  %v5439_v49 = vcombine.low %v741_v36, %v745_v37  ;;  %v430_v36 = vld [vmem:[#allocation5 + $0x510] sm:$0xff] }
 0x135   : > { %3693 = vmatprep.subr.bf16.mxu1 %v5360_v51  ;;  %v733_v44 = vld [vmem:[#allocation5 + $0xe88] sm:$0xff]  ;;  %v5304_v50 = vcombine.high %v605_v42, %v609_v43  ;;  %v434_v37 = vld [vmem:[#allocation5 + $0x530] sm:$0xff] }
 0x136   : > { %3651 = vmatpush1.bf16.msra.mxu0 %v5231_v23  ;;  %v737_v45 = vld [vmem:[#allocation5 + $0xea8] sm:$0xff]  ;;  %v5303_v23 = vcombine.low %v605_v42, %v609_v43  ;;  %v294_v42 = vld [vmem:[#allocation5 + $0xd0] sm:$0xff] }
 0x137   : > { %3652 = vmatprep.subr.bf16.mxu0 %v5224_v27  ;;  %v5432_v51 = vcombine.high %v733_v44, %v737_v45  ;;  %v597_v52 = vld [vmem:[#allocation5 + $0xa48] sm:$0xff]  ;;  %v298_v43 = vld [vmem:[#allocation5 + $0xf0] sm:$0xff] }
 0x138   : > { %3694 = vmatpush1.bf16.msra.mxu1 %v5359_v24  ;;  %v601_v53 = vld [vmem:[#allocation5 + $0xa68] sm:$0xff]  ;;  %v5431_v24 = vcombine.low %v733_v44, %v737_v45  ;;  %v422_v44 = vld [vmem:[#allocation5 + $0x4d0] sm:$0xff] }
 0x139   : > { %3695 = vmatprep.subr.bf16.mxu1 %v5352_v28  ;;  %v725_v56 = vld [vmem:[#allocation5 + $0xe48] sm:$0xff]  ;;  %v5296_v27 = vcombine.high %v597_v52, %v601_v53  ;;  %v426_v45 = vld [vmem:[#allocation5 + $0x4f0] sm:$0xff] }
 0x13a   : > { %3653 = vmatpush1.bf16.msra.mxu0 %v5223_v2  ;;  %v729_v57 = vld [vmem:[#allocation5 + $0xe68] sm:$0xff]  ;;  %v5295_v2 = vcombine.low %v597_v52, %v601_v53  ;;  %v286_v52 = vld [vmem:[#allocation5 + $0x90] sm:$0xff] }
 0x13b   : > { %3654 = vmatprep.subr.bf16.mxu0 %v5344_v4  ;;  %v5424_v28 = vcombine.high %v725_v56, %v729_v57  ;;  %v589_v61 = vld [vmem:[#allocation5 + $0xa08] sm:$0xff]  ;;  %v290_v53 = vld [vmem:[#allocation5 + $0xb0] sm:$0xff] }
 0x13c   : > { %3696 = vmatpush1.bf16.msra.mxu1 %v5351_v3  ;;  %v593_v62 = vld [vmem:[#allocation5 + $0xa28] sm:$0xff]  ;;  %v5423_v3 = vcombine.low %v725_v56, %v729_v57  ;;  %v414_v56 = vld [vmem:[#allocation5 + $0x490] sm:$0xff] }
 0x13d   : > { %3697 = vmatprep.subr.bf16.mxu1 %v5472_v5  ;;  %v717_v0 = vld [vmem:[#allocation5 + $0xe08] sm:$0xff]  ;;  %v5288_v4 = vcombine.high %v589_v61, %v593_v62  ;;  %v418_v57 = vld [vmem:[#allocation5 + $0x4b0] sm:$0xff] }
 0x13e   : > { %3655 = vmatpush2.bf16.msra.mxu0 %v5343_v10  ;;  %v721_v1 = vld [vmem:[#allocation5 + $0xe28] sm:$0xff]  ;;  %v5287_v10 = vcombine.low %v589_v61, %v593_v62  ;;  %v278_v61 = vld [vmem:[#allocation5 + $0x50] sm:$0xff] }
 0x13f   : > { %3656 = vmatprep.subr.bf16.mxu0 %v5336_v12  ;;  %v5416_v5 = vcombine.high %v717_v0, %v721_v1  ;;  %v5026_v12 = vcombine.high %v326_v6, %v330_v7  ;;  %v282_v62 = vld [vmem:[#allocation5 + $0x70] sm:$0xff] }
 0x140   : > { %3698 = vmatpush2.bf16.msra.mxu1 %v5471_v11  ;;  %v5415_v11 = vcombine.low %v717_v0, %v721_v1  ;;  %v406_v0 = vld [vmem:[#allocation5 + $0x450] sm:$0xff] }
 0x141   : > { %3699 = vmatprep.subr.bf16.mxu1 %v5464_v13  ;;  %v5154_v13 = vcombine.high %v454_v8, %v458_v9  ;;  %v410_v1 = vld [vmem:[#allocation5 + $0x470] sm:$0xff] }
 0x142   : > { %3657 = vmatpush2.bf16.msra.mxu0 %v5335_v18  ;;  %v5025_v18 = vcombine.low %v326_v6, %v330_v7  ;;  %v270_v6 = vld [vmem:[#allocation5 + $0x10] sm:$0xff] }
 0x143   : > { %3658 = vmatprep.subr.bf16.mxu0 %v5328_v20  ;;  %v5018_v20 = vcombine.high %v318_v14, %v322_v15  ;;  %v274_v7 = vld [vmem:[#allocation5 + $0x30] sm:$0xff] }
 0x144   : > { %3700 = vmatpush2.bf16.msra.mxu1 %v5463_v19  ;;  %v5153_v19 = vcombine.low %v454_v8, %v458_v9  ;;  %v398_v8 = vld [vmem:[#allocation5 + $0x410] sm:$0xff] }
 0x145   : > { %3701 = vmatprep.subr.bf16.mxu1 %v5456_v22  ;;  %v5146_v22 = vcombine.high %v446_v16, %v450_v17  ;;  %v402_v9 = vld [vmem:[#allocation5 + $0x430] sm:$0xff] }
 0x146   : > { %3659 = vmatpush2.bf16.msra.mxu0 %v5327_v30  ;;  %v5017_v30 = vcombine.low %v318_v14, %v322_v15  ;;  %v390_v14 = vld [vmem:[#allocation5 + $0x3d0] sm:$0xff] }
 0x147   : > { %3660 = vmatprep.subr.bf16.mxu0 %v5320_v59  ;;  %v5010_v59 = vcombine.high %v310_v26, %v314_v29  ;;  %v394_v15 = vld [vmem:[#allocation5 + $0x3f0] sm:$0xff] }
 0x148   : > { %3702 = vmatpush2.bf16.msra.mxu1 %v5455_v31  ;;  %v5145_v31 = vcombine.low %v446_v16, %v450_v17  ;;  %v518_v16 = vld [vmem:[#allocation5 + $0x7d0] sm:$0xff] }
 0x149   : > { %3703 = vmatprep.subr.bf16.mxu1 %v5448_v60  ;;  %v5138_v60 = vcombine.high %v438_v54, %v442_v55  ;;  %v522_v17 = vld [vmem:[#allocation5 + $0x7f0] sm:$0xff] }
 0x14a   : > { %3661 = vmatpush2.bf16.msra.mxu0 %v5319_v38  ;;  %v5009_v38 = vcombine.low %v310_v26, %v314_v29  ;;  %v382_v26 = vld [vmem:[#allocation5 + $0x390] sm:$0xff] }
 0x14b   : > { %3662 = vmatprep.subr.bf16.mxu0 %v5312_v40  ;;  %v5002_v40 = vcombine.high %v302_v34, %v306_v35  ;;  %v386_v29 = vld [vmem:[#allocation5 + $0x3b0] sm:$0xff] }
 0x14c   : > { %3704 = vmatpush2.bf16.msra.mxu1 %v5447_v39  ;;  %v5137_v39 = vcombine.low %v438_v54, %v442_v55  ;;  %v510_v54 = vld [vmem:[#allocation5 + $0x790] sm:$0xff] }
 0x14d   : > { %3705 = vmatprep.subr.bf16.mxu1 %v5440_v41  ;;  %v5130_v41 = vcombine.high %v430_v36, %v434_v37  ;;  %v514_v55 = vld [vmem:[#allocation5 + $0x7b0] sm:$0xff] }
 0x14e   : > { %3663 = vmatpush2.bf16.msra.mxu0 %v5311_v48  ;;  %v5001_v48 = vcombine.low %v302_v34, %v306_v35  ;;  %v374_v34 = vld [vmem:[#allocation5 + $0x350] sm:$0xff] }
 0x14f   : > { %3664 = vmatprep.subr.bf16.mxu0 %v5304_v50  ;;  %v4994_v50 = vcombine.high %v294_v42, %v298_v43  ;;  %v378_v35 = vld [vmem:[#allocation5 + $0x370] sm:$0xff] }
 0x150   : > { %3706 = vmatpush2.bf16.msra.mxu1 %v5439_v49  ;;  %v5129_v49 = vcombine.low %v430_v36, %v434_v37  ;;  %v502_v36 = vld [vmem:[#allocation5 + $0x750] sm:$0xff] }
 0x151   : > { %3707 = vmatprep.subr.bf16.mxu1 %v5432_v51  ;;  %v5122_v51 = vcombine.high %v422_v44, %v426_v45  ;;  %v506_v37 = vld [vmem:[#allocation5 + $0x770] sm:$0xff] }
 0x152   : > { %3665 = vmatpush2.bf16.msra.mxu0 %v5303_v23  ;;  %v4993_v23 = vcombine.low %v294_v42, %v298_v43  ;;  %v366_v42 = vld [vmem:[#allocation5 + $0x310] sm:$0xff] }
 0x153   : > { %3666 = vmatprep.subr.bf16.mxu0 %v5296_v27  ;;  %v4986_v27 = vcombine.high %v286_v52, %v290_v53  ;;  %v370_v43 = vld [vmem:[#allocation5 + $0x330] sm:$0xff] }
 0x154   : > { %3708 = vmatpush2.bf16.msra.mxu1 %v5431_v24  ;;  %v5121_v24 = vcombine.low %v422_v44, %v426_v45  ;;  %v494_v44 = vld [vmem:[#allocation5 + $0x710] sm:$0xff] }
 0x155   : > { %3709 = vmatprep.subr.bf16.mxu1 %v5424_v28  ;;  %v5114_v28 = vcombine.high %v414_v56, %v418_v57  ;;  %v498_v45 = vld [vmem:[#allocation5 + $0x730] sm:$0xff] }
 0x156   : > { %3667 = vmatpush2.bf16.msra.mxu0 %v5295_v2  ;;  %v4985_v2 = vcombine.low %v286_v52, %v290_v53  ;;  %v358_v52 = vld [vmem:[#allocation5 + $0x2d0] sm:$0xff] }
 0x157   : > { %3668 = vmatprep.subr.bf16.mxu0 %v5288_v4  ;;  %v4978_v4 = vcombine.high %v278_v61, %v282_v62  ;;  %v362_v53 = vld [vmem:[#allocation5 + $0x2f0] sm:$0xff] }
 0x158   : > { %3710 = vmatpush2.bf16.msra.mxu1 %v5423_v3  ;;  %v5113_v3 = vcombine.low %v414_v56, %v418_v57  ;;  %v486_v56 = vld [vmem:[#allocation5 + $0x6d0] sm:$0xff] }
 0x159   : > { %3711 = vmatprep.subr.bf16.mxu1 %v5416_v5  ;;  %v5106_v5 = vcombine.high %v406_v0, %v410_v1  ;;  %v490_v57 = vld [vmem:[#allocation5 + $0x6f0] sm:$0xff] }
 0x15a   : > { %3669 = vmatpush2.bf16.msra.mxu0 %v5287_v10  ;;  %v4977_v10 = vcombine.low %v278_v61, %v282_v62  ;;  %v350_v61 = vld [vmem:[#allocation5 + $0x290] sm:$0xff] }
 0x15b   : > { %3724 = vmatprep.subr.bf16.mxu0 %v5026_v12  ;;  %v4970_v12 = vcombine.high %v270_v6, %v274_v7  ;;  %v354_v62 = vld [vmem:[#allocation5 + $0x2b0] sm:$0xff] }
 0x15c   : > { %3712 = vmatpush2.bf16.msra.mxu1 %v5415_v11  ;;  %v5105_v11 = vcombine.low %v406_v0, %v410_v1  ;;  %v478_v0 = vld [vmem:[#allocation5 + $0x690] sm:$0xff] }
 0x15d   : > { %3767 = vmatprep.subr.bf16.mxu1 %v5154_v13  ;;  %3671 = vmatmul.mubr.bf16.vlgmr.msra.gmra.mxu0 %v6204_v46  ;;  %v5098_v13 = vcombine.high %v398_v8, %v402_v9  ;;  %v482_v1 = vld [vmem:[#allocation5 + $0x6b0] sm:$0xff] }
 0x15e   : > { %3725 = vmatpush1.bf16.msra.mxu0 %v5025_v18  ;;  %3756 = vmatprep.mubr.bf16.mxu0 %v6156_v58  ;;  %v4969_v18 = vcombine.low %v270_v6, %v274_v7  ;;  %v342_v6 = vld [vmem:[#allocation5 + $0x250] sm:$0xff] }
 0x15f   : > { %3714 = vmatmul.mubr.bf16.vlgmr.msra.gmra.mxu1 %v6208_v47  ;;  %3726 = vmatprep.subr.bf16.mxu0 %v5018_v20  ;;  %v5090_v20 = vcombine.high %v390_v14, %v394_v15  ;;  %v346_v7 = vld [vmem:[#allocation5 + $0x270] sm:$0xff] }
 0x160   : > { %3768 = vmatpush1.bf16.msra.mxu1 %v5153_v19  ;;  %3799 = vmatprep.mubr.bf16.mxu1 %v6166_v63  ;;  %v5097_v19 = vcombine.low %v398_v8, %v402_v9  ;;  %v470_v8 = vld [vmem:[#allocation5 + $0x650] sm:$0xff] }
 0x161   : > { %3769 = vmatprep.subr.bf16.mxu1 %v5146_v22  ;;  %v5218_v22 = vcombine.high %v518_v16, %v522_v17  ;;  %v474_v9 = vld [vmem:[#allocation5 + $0x670] sm:$0xff] }
 0x162   : > { %3727 = vmatpush1.bf16.msra.mxu0 %v5017_v30  ;;  %v5089_v30 = vcombine.low %v390_v14, %v394_v15  ;;  %v334_v14 = vld [vmem:[#allocation5 + $0x210] sm:$0xff] }
 0x163   : > { %3728 = vmatprep.subr.bf16.mxu0 %v5010_v59  ;;  %v5082_v59 = vcombine.high %v382_v26, %v386_v29  ;;  %v338_v15 = vld [vmem:[#allocation5 + $0x230] sm:$0xff] }
 0x164   : > { %3770 = vmatpush1.bf16.msra.mxu1 %v5145_v31  ;;  %v5217_v31 = vcombine.low %v518_v16, %v522_v17  ;;  %v462_v16 = vld [vmem:[#allocation5 + $0x610] sm:$0xff] }
 0x165   : > { %3771 = vmatprep.subr.bf16.mxu1 %v5138_v60  ;;  %v5210_v60 = vcombine.high %v510_v54, %v514_v55  ;;  %v466_v17 = vld [vmem:[#allocation5 + $0x630] sm:$0xff] }
 0x166   : > { %3729 = vmatpush1.bf16.msra.mxu0 %v5009_v38  ;;  %v5081_v38 = vcombine.low %v382_v26, %v386_v29  ;;  %v582_v26 = vld [vmem:[#allocation5 + $0x9d0] sm:$0xff] }
 0x167   : > { %3730 = vmatprep.subr.bf16.mxu0 %v5002_v40  ;;  %v5074_v40 = vcombine.high %v374_v34, %v378_v35  ;;  %v586_v29 = vld [vmem:[#allocation5 + $0x9f0] sm:$0xff] }
 0x168   : > { %3772 = vmatpush1.bf16.msra.mxu1 %v5137_v39  ;;  %v5209_v39 = vcombine.low %v510_v54, %v514_v55  ;;  %v710_v54 = vld [vmem:[#allocation5 + $0xdd0] sm:$0xff] }
 0x169   : > { %3773 = vmatprep.subr.bf16.mxu1 %v5130_v41  ;;  %v5202_v41 = vcombine.high %v502_v36, %v506_v37  ;;  %v714_v55 = vld [vmem:[#allocation5 + $0xdf0] sm:$0xff] }
 0x16a   : > { %3731 = vmatpush1.bf16.msra.mxu0 %v5001_v48  ;;  %v5073_v48 = vcombine.low %v374_v34, %v378_v35  ;;  %v574_v34 = vld [vmem:[#allocation5 + $0x990] sm:$0xff] }
 0x16b   : > { %3732 = vmatprep.subr.bf16.mxu0 %v4994_v50  ;;  %v5066_v50 = vcombine.high %v366_v42, %v370_v43  ;;  %v578_v35 = vld [vmem:[#allocation5 + $0x9b0] sm:$0xff] }
 0x16c   : > { %3774 = vmatpush1.bf16.msra.mxu1 %v5129_v49  ;;  %v5201_v49 = vcombine.low %v502_v36, %v506_v37  ;;  %v702_v36 = vld [vmem:[#allocation5 + $0xd90] sm:$0xff] }
 0x16d   : > { %3775 = vmatprep.subr.bf16.mxu1 %v5122_v51  ;;  %v5194_v51 = vcombine.high %v494_v44, %v498_v45  ;;  %v706_v37 = vld [vmem:[#allocation5 + $0xdb0] sm:$0xff] }
 0x16e   : > { %3733 = vmatpush1.bf16.msra.mxu0 %v4993_v23  ;;  %v5065_v23 = vcombine.low %v366_v42, %v370_v43  ;;  %v566_v42 = vld [vmem:[#allocation5 + $0x950] sm:$0xff] }
 0x16f   : > { %3734 = vmatprep.subr.bf16.mxu0 %v4986_v27  ;;  %v5058_v27 = vcombine.high %v358_v52, %v362_v53  ;;  %v570_v43 = vld [vmem:[#allocation5 + $0x970] sm:$0xff] }
 0x170   : > { %3776 = vmatpush1.bf16.msra.mxu1 %v5121_v24  ;;  %v5193_v24 = vcombine.low %v494_v44, %v498_v45  ;;  %v694_v44 = vld [vmem:[#allocation5 + $0xd50] sm:$0xff] }
 0x171   : > { %3777 = vmatprep.subr.bf16.mxu1 %v5114_v28  ;;  %v5186_v28 = vcombine.high %v486_v56, %v490_v57  ;;  %v698_v45 = vld [vmem:[#allocation5 + $0xd70] sm:$0xff] }
 0x172   : > { %3735 = vmatpush1.bf16.msra.mxu0 %v4985_v2  ;;  %v5057_v2 = vcombine.low %v358_v52, %v362_v53  ;;  %v558_v52 = vld [vmem:[#allocation5 + $0x910] sm:$0xff] }
 0x173   : > { %3736 = vmatprep.subr.bf16.mxu0 %v4978_v4  ;;  %v5050_v4 = vcombine.high %v350_v61, %v354_v62  ;;  %v562_v53 = vld [vmem:[#allocation5 + $0x930] sm:$0xff] }
 0x174   : > { %3778 = vmatpush1.bf16.msra.mxu1 %v5113_v3  ;;  %v5185_v3 = vcombine.low %v486_v56, %v490_v57  ;;  %v686_v56 = vld [vmem:[#allocation5 + $0xd10] sm:$0xff] }
 0x175   : > { %3779 = vmatprep.subr.bf16.mxu1 %v5106_v5  ;;  %v5178_v5 = vcombine.high %v478_v0, %v482_v1  ;;  %v690_v57 = vld [vmem:[#allocation5 + $0xd30] sm:$0xff] }
 0x176   : > { %3737 = vmatpush1.bf16.msra.mxu0 %v4977_v10  ;;  %v5049_v10 = vcombine.low %v350_v61, %v354_v62  ;;  %v550_v61 = vld [vmem:[#allocation5 + $0x8d0] sm:$0xff] }
 0x177   : > { %3738 = vmatprep.subr.bf16.mxu0 %v4970_v12  ;;  %v5042_v12 = vcombine.high %v342_v6, %v346_v7  ;;  %v554_v62 = vld [vmem:[#allocation5 + $0x8f0] sm:$0xff] }
 0x178   : > { %3780 = vmatpush1.bf16.msra.mxu1 %v5105_v11  ;;  %v5177_v11 = vcombine.low %v478_v0, %v482_v1  ;;  %v678_v0 = vld [vmem:[#allocation5 + $0xcd0] sm:$0xff] }
 0x179   : > { %3781 = vmatprep.subr.bf16.mxu1 %v5098_v13  ;;  %v5170_v13 = vcombine.high %v470_v8, %v474_v9  ;;  %v682_v1 = vld [vmem:[#allocation5 + $0xcf0] sm:$0xff] }
 0x17a   : > { %3739 = vmatpush1.bf16.msra.mxu0 %v4969_v18  ;;  %v5041_v18 = vcombine.low %v342_v6, %v346_v7  ;;  %v542_v6 = vld [vmem:[#allocation5 + $0x890] sm:$0xff] }
 0x17b   : > { %3740 = vmatprep.subr.bf16.mxu0 %v5090_v20  ;;  %v5034_v20 = vcombine.high %v334_v14, %v338_v15  ;;  %v546_v7 = vld [vmem:[#allocation5 + $0x8b0] sm:$0xff] }
 0x17c   : > { %3782 = vmatpush1.bf16.msra.mxu1 %v5097_v19  ;;  %v5169_v19 = vcombine.low %v470_v8, %v474_v9  ;;  %v670_v8 = vld [vmem:[#allocation5 + $0xc90] sm:$0xff] }
 0x17d   : > { %3783 = vmatprep.subr.bf16.mxu1 %v5218_v22  ;;  %v5162_v22 = vcombine.high %v462_v16, %v466_v17  ;;  %v674_v9 = vld [vmem:[#allocation5 + $0xcb0] sm:$0xff] }
 0x17e   : > { %3741 = vmatpush2.bf16.msra.mxu0 %v5089_v30  ;;  %v5033_v30 = vcombine.low %v334_v14, %v338_v15  ;;  %v534_v14 = vld [vmem:[#allocation5 + $0x850] sm:$0xff] }
 0x17f   : > { %3742 = vmatprep.subr.bf16.mxu0 %v5082_v59  ;;  %v5282_v59 = vcombine.high %v582_v26, %v586_v29  ;;  %v538_v15 = vld [vmem:[#allocation5 + $0x870] sm:$0xff] }
 0x180   : > { %3784 = vmatpush2.bf16.msra.mxu1 %v5217_v31  ;;  %v5161_v31 = vcombine.low %v462_v16, %v466_v17  ;;  %v662_v16 = vld [vmem:[#allocation5 + $0xc50] sm:$0xff] }
 0x181   : > { %3785 = vmatprep.subr.bf16.mxu1 %v5210_v60  ;;  %v5410_v60 = vcombine.high %v710_v54, %v714_v55  ;;  %v666_v17 = vld [vmem:[#allocation5 + $0xc70] sm:$0xff] }
 0x182   : > { %3743 = vmatpush2.bf16.msra.mxu0 %v5081_v38  ;;  %v5281_v38 = vcombine.low %v582_v26, %v586_v29  ;;  %v526_v26 = vld [vmem:[#allocation5 + $0x810] sm:$0xff] }
 0x183   : > { %3744 = vmatprep.subr.bf16.mxu0 %v5074_v40  ;;  %v5274_v40 = vcombine.high %v574_v34, %v578_v35  ;;  %v530_v29 = vld [vmem:[#allocation5 + $0x830] sm:$0xff] }
 0x184   : > { %3786 = vmatpush2.bf16.msra.mxu1 %v5209_v39  ;;  %v5409_v39 = vcombine.low %v710_v54, %v714_v55  ;;  %v654_v54 = vld [vmem:[#allocation5 + $0xc10] sm:$0xff] }
 0x185   : > { %3787 = vmatprep.subr.bf16.mxu1 %v5202_v41  ;;  %v5402_v41 = vcombine.high %v702_v36, %v706_v37  ;;  %v658_v55 = vld [vmem:[#allocation5 + $0xc30] sm:$0xff] }
 0x186   : > { %3745 = vmatpush2.bf16.msra.mxu0 %v5073_v48  ;;  %v5273_v48 = vcombine.low %v574_v34, %v578_v35  ;;  %v646_v34 = vld [vmem:[#allocation5 + $0xbd0] sm:$0xff] }
 0x187   : > { %3746 = vmatprep.subr.bf16.mxu0 %v5066_v50  ;;  %v5266_v50 = vcombine.high %v566_v42, %v570_v43  ;;  %v650_v35 = vld [vmem:[#allocation5 + $0xbf0] sm:$0xff] }
 0x188   : > { %3788 = vmatpush2.bf16.msra.mxu1 %v5201_v49  ;;  %v5401_v49 = vcombine.low %v702_v36, %v706_v37  ;;  %v774_v36 = vld [vmem:[#allocation5 + $0xfd0] sm:$0xff] }
 0x189   : > { %3789 = vmatprep.subr.bf16.mxu1 %v5194_v51  ;;  %v5394_v51 = vcombine.high %v694_v44, %v698_v45  ;;  %v778_v37 = vld [vmem:[#allocation5 + $0xff0] sm:$0xff] }
 0x18a   : > { %3747 = vmatpush2.bf16.msra.mxu0 %v5065_v23  ;;  %v5265_v23 = vcombine.low %v566_v42, %v570_v43  ;;  %v638_v42 = vld [vmem:[#allocation5 + $0xb90] sm:$0xff] }
 0x18b   : > { %3748 = vmatprep.subr.bf16.mxu0 %v5058_v27  ;;  %v5258_v27 = vcombine.high %v558_v52, %v562_v53  ;;  %v642_v43 = vld [vmem:[#allocation5 + $0xbb0] sm:$0xff] }
 0x18c   : > { %3790 = vmatpush2.bf16.msra.mxu1 %v5193_v24  ;;  %v5393_v24 = vcombine.low %v694_v44, %v698_v45  ;;  %v766_v44 = vld [vmem:[#allocation5 + $0xf90] sm:$0xff] }
 0x18d   : > { %3791 = vmatprep.subr.bf16.mxu1 %v5186_v28  ;;  %v5386_v28 = vcombine.high %v686_v56, %v690_v57  ;;  %v770_v45 = vld [vmem:[#allocation5 + $0xfb0] sm:$0xff] }
 0x18e   : > { %3749 = vmatpush2.bf16.msra.mxu0 %v5057_v2  ;;  %v5257_v2 = vcombine.low %v558_v52, %v562_v53  ;;  %v630_v52 = vld [vmem:[#allocation5 + $0xb50] sm:$0xff] }
 0x18f   : > { %3750 = vmatprep.subr.bf16.mxu0 %v5050_v4  ;;  %v5250_v4 = vcombine.high %v550_v61, %v554_v62  ;;  %v634_v53 = vld [vmem:[#allocation5 + $0xb70] sm:$0xff] }
 0x190   : > { %3792 = vmatpush2.bf16.msra.mxu1 %v5185_v3  ;;  %v5385_v3 = vcombine.low %v686_v56, %v690_v57  ;;  %v758_v56 = vld [vmem:[#allocation5 + $0xf50] sm:$0xff] }
 0x191   : > { %3793 = vmatprep.subr.bf16.mxu1 %v5178_v5  ;;  %v5378_v5 = vcombine.high %v678_v0, %v682_v1  ;;  %v762_v57 = vld [vmem:[#allocation5 + $0xf70] sm:$0xff] }
 0x192   : > { %3751 = vmatpush2.bf16.msra.mxu0 %v5049_v10  ;;  %v5249_v10 = vcombine.low %v550_v61, %v554_v62  ;;  %v622_v61 = vld [vmem:[#allocation5 + $0xb10] sm:$0xff] }
 0x193   : > { %3752 = vmatprep.subr.bf16.mxu0 %v5042_v12  ;;  %v5242_v12 = vcombine.high %v542_v6, %v546_v7  ;;  %v626_v62 = vld [vmem:[#allocation5 + $0xb30] sm:$0xff] }
 0x194   : > { %3794 = vmatpush2.bf16.msra.mxu1 %v5177_v11  ;;  %v5377_v11 = vcombine.low %v678_v0, %v682_v1  ;;  %v750_v0 = vld [vmem:[#allocation5 + $0xf10] sm:$0xff] }
 0x195   : > { %3795 = vmatprep.subr.bf16.mxu1 %v5170_v13  ;;  %v5370_v13 = vcombine.high %v670_v8, %v674_v9  ;;  %v754_v1 = vld [vmem:[#allocation5 + $0xf30] sm:$0xff] }
 0x196   : > { %3753 = vmatpush2.bf16.msra.mxu0 %v5041_v18  ;;  %v5241_v18 = vcombine.low %v542_v6, %v546_v7  ;;  %v614_v6 = vld [vmem:[#allocation5 + $0xad0] sm:$0xff] }
 0x197   : > { %3754 = vmatprep.subr.bf16.mxu0 %v5034_v20  ;;  %v5234_v20 = vcombine.high %v534_v14, %v538_v15  ;;  %v618_v7 = vld [vmem:[#allocation5 + $0xaf0] sm:$0xff] }
 0x198   : > { %3796 = vmatpush2.bf16.msra.mxu1 %v5169_v19  ;;  %v5369_v19 = vcombine.low %v670_v8, %v674_v9  ;;  %v742_v8 = vld [vmem:[#allocation5 + $0xed0] sm:$0xff] }
 0x199   : > { %3797 = vmatprep.subr.bf16.mxu1 %v5162_v22  ;;  %v5362_v22 = vcombine.high %v662_v16, %v666_v17  ;;  %v746_v9 = vld [vmem:[#allocation5 + $0xef0] sm:$0xff] }
 0x19a   : > { %3755 = vmatpush2.bf16.msra.mxu0 %v5033_v30  ;;  %v5233_v30 = vcombine.low %v534_v14, %v538_v15  ;;  %v606_v14 = vld [vmem:[#allocation5 + $0xa90] sm:$0xff] }
 0x19b   : > { %3810 = vmatprep.subr.bf16.mxu0 %v5282_v59  ;;  %v5226_v59 = vcombine.high %v526_v26, %v530_v29  ;;  %v610_v15 = vld [vmem:[#allocation5 + $0xab0] sm:$0xff] }
 0x19c   : > { %3798 = vmatpush2.bf16.msra.mxu1 %v5161_v31  ;;  %v5361_v31 = vcombine.low %v662_v16, %v666_v17  ;;  %v734_v16 = vld [vmem:[#allocation5 + $0xe90] sm:$0xff] }
 0x19d   : > { %3853 = vmatprep.subr.bf16.mxu1 %v5410_v60  ;;  %3757 = vmatmul.mubr.bf16.vlgmr.msra.gmra.mxu0 %v6172_v21  ;;  %v5354_v60 = vcombine.high %v654_v54, %v658_v55  ;;  %v738_v17 = vld [vmem:[#allocation5 + $0xeb0] sm:$0xff] }
 0x19e   : > { %3811 = vmatpush1.bf16.msra.mxu0 %v5281_v38  ;;  %3842 = vmatprep.mubr.bf16.mxu0 %v6192_v32  ;;  %v5225_v38 = vcombine.low %v526_v26, %v530_v29  ;;  %v598_v26 = vld [vmem:[#allocation5 + $0xa50] sm:$0xff] }
 0x19f   : > { %3800 = vmatmul.mubr.bf16.vlgmr.msra.gmra.mxu1 %v6182_v25  ;;  %3812 = vmatprep.subr.bf16.mxu0 %v5274_v40  ;;  %v5346_v40 = vcombine.high %v646_v34, %v650_v35  ;;  %v602_v29 = vld [vmem:[#allocation5 + $0xa70] sm:$0xff] }
 0x1a0   : > { %3854 = vmatpush1.bf16.msra.mxu1 %v5409_v39  ;;  %3885 = vmatprep.mubr.bf16.mxu1 %v6197_v33  ;;  %v5353_v39 = vcombine.low %v654_v54, %v658_v55  ;;  %v726_v54 = vld [vmem:[#allocation5 + $0xe50] sm:$0xff] }
 0x1a1   : > { %3855 = vmatprep.subr.bf16.mxu1 %v5402_v41  ;;  %v5474_v41 = vcombine.high %v774_v36, %v778_v37  ;;  %v730_v55 = vld [vmem:[#allocation5 + $0xe70] sm:$0xff] }
 0x1a2   : > { %3813 = vmatpush1.bf16.msra.mxu0 %v5273_v48  ;;  %v5345_v48 = vcombine.low %v646_v34, %v650_v35  ;;  %v590_v34 = vld [vmem:[#allocation5 + $0xa10] sm:$0xff] }
 0x1a3   : > { %3814 = vmatprep.subr.bf16.mxu0 %v5266_v50  ;;  %v5338_v50 = vcombine.high %v638_v42, %v642_v43  ;;  %v594_v35 = vld [vmem:[#allocation5 + $0xa30] sm:$0xff] }
 0x1a4   : > { %3856 = vmatpush1.bf16.msra.mxu1 %v5401_v49  ;;  %v5473_v49 = vcombine.low %v774_v36, %v778_v37  ;;  %v718_v36 = vld [vmem:[#allocation5 + $0xe10] sm:$0xff] }
 0x1a5   : > { %3857 = vmatprep.subr.bf16.mxu1 %v5394_v51  ;;  %v5466_v51 = vcombine.high %v766_v44, %v770_v45  ;;  %v722_v37 = vld [vmem:[#allocation5 + $0xe30] sm:$0xff] }
 0x1a6   : > { %3815 = vmatpush1.bf16.msra.mxu0 %v5265_v23  ;;  %v5337_v23 = vcombine.low %v638_v42, %v642_v43  ;;  %v327_v42 = vld [vmem:[#allocation5 + $0x1d8] sm:$0xff] }
 0x1a7   : > { %3816 = vmatprep.subr.bf16.mxu0 %v5258_v27  ;;  %v5330_v27 = vcombine.high %v630_v52, %v634_v53  ;;  %v331_v43 = vld [vmem:[#allocation5 + $0x1f8] sm:$0xff] }
 0x1a8   : > { %3858 = vmatpush1.bf16.msra.mxu1 %v5393_v24  ;;  %v5465_v24 = vcombine.low %v766_v44, %v770_v45  ;;  %v455_v44 = vld [vmem:[#allocation5 + $0x5d8] sm:$0xff] }
 0x1a9   : > { %3859 = vmatprep.subr.bf16.mxu1 %v5386_v28  ;;  %v5458_v28 = vcombine.high %v758_v56, %v762_v57  ;;  %v459_v45 = vld [vmem:[#allocation5 + $0x5f8] sm:$0xff] }
 0x1aa   : > { %3817 = vmatpush1.bf16.msra.mxu0 %v5257_v2  ;;  %v5329_v2 = vcombine.low %v630_v52, %v634_v53  ;;  %v319_v52 = vld [vmem:[#allocation5 + $0x198] sm:$0xff] }
 0x1ab   : > { %3818 = vmatprep.subr.bf16.mxu0 %v5250_v4  ;;  %v5322_v4 = vcombine.high %v622_v61, %v626_v62  ;;  %v323_v53 = vld [vmem:[#allocation5 + $0x1b8] sm:$0xff] }
 0x1ac   : > { %3860 = vmatpush1.bf16.msra.mxu1 %v5385_v3  ;;  %v5457_v3 = vcombine.low %v758_v56, %v762_v57  ;;  %v447_v56 = vld [vmem:[#allocation5 + $0x598] sm:$0xff] }
 0x1ad   : > { %3861 = vmatprep.subr.bf16.mxu1 %v5378_v5  ;;  %v5450_v5 = vcombine.high %v750_v0, %v754_v1  ;;  %v451_v57 = vld [vmem:[#allocation5 + $0x5b8] sm:$0xff] }
 0x1ae   : > { %3819 = vmatpush1.bf16.msra.mxu0 %v5249_v10  ;;  %v5321_v10 = vcombine.low %v622_v61, %v626_v62  ;;  %v311_v61 = vld [vmem:[#allocation5 + $0x158] sm:$0xff] }
 0x1af   : > { %3820 = vmatprep.subr.bf16.mxu0 %v5242_v12  ;;  %v5314_v12 = vcombine.high %v614_v6, %v618_v7  ;;  %v315_v62 = vld [vmem:[#allocation5 + $0x178] sm:$0xff] }
 0x1b0   : > { %3862 = vmatpush1.bf16.msra.mxu1 %v5377_v11  ;;  %v5449_v11 = vcombine.low %v750_v0, %v754_v1  ;;  %v439_v0 = vld [vmem:[#allocation5 + $0x558] sm:$0xff] }
 0x1b1   : > { %3863 = vmatprep.subr.bf16.mxu1 %v5370_v13  ;;  %v5442_v13 = vcombine.high %v742_v8, %v746_v9  ;;  %v443_v1 = vld [vmem:[#allocation5 + $0x578] sm:$0xff] }
 0x1b2   : > { %3821 = vmatpush1.bf16.msra.mxu0 %v5241_v18  ;;  %v5313_v18 = vcombine.low %v614_v6, %v618_v7  ;;  %v303_v6 = vld [vmem:[#allocation5 + $0x118] sm:$0xff] }
 0x1b3   : > { %3822 = vmatprep.subr.bf16.mxu0 %v5234_v20  ;;  %v5306_v20 = vcombine.high %v606_v14, %v610_v15  ;;  %v307_v7 = vld [vmem:[#allocation5 + $0x138] sm:$0xff] }
 0x1b4   : > { %3864 = vmatpush1.bf16.msra.mxu1 %v5369_v19  ;;  %v5441_v19 = vcombine.low %v742_v8, %v746_v9  ;;  %v431_v8 = vld [vmem:[#allocation5 + $0x518] sm:$0xff] }
 0x1b5   : > { %3865 = vmatprep.subr.bf16.mxu1 %v5362_v22  ;;  %v5434_v22 = vcombine.high %v734_v16, %v738_v17  ;;  %v435_v9 = vld [vmem:[#allocation5 + $0x538] sm:$0xff] }
 0x1b6   : > { %3823 = vmatpush1.bf16.msra.mxu0 %v5233_v30  ;;  %v5305_v30 = vcombine.low %v606_v14, %v610_v15  ;;  %v295_v14 = vld [vmem:[#allocation5 + $0xd8] sm:$0xff] }
 0x1b7   : > { %3824 = vmatprep.subr.bf16.mxu0 %v5226_v59  ;;  %v5298_v59 = vcombine.high %v598_v26, %v602_v29  ;;  %v299_v15 = vld [vmem:[#allocation5 + $0xf8] sm:$0xff] }
 0x1b8   : > { %3866 = vmatpush1.bf16.msra.mxu1 %v5361_v31  ;;  %v5433_v31 = vcombine.low %v734_v16, %v738_v17  ;;  %v423_v16 = vld [vmem:[#allocation5 + $0x4d8] sm:$0xff] }
 0x1b9   : > { %3867 = vmatprep.subr.bf16.mxu1 %v5354_v60  ;;  %v5426_v60 = vcombine.high %v726_v54, %v730_v55  ;;  %v427_v17 = vld [vmem:[#allocation5 + $0x4f8] sm:$0xff] }
 0x1ba   : > { %3825 = vmatpush1.bf16.msra.mxu0 %v5225_v38  ;;  %v5297_v38 = vcombine.low %v598_v26, %v602_v29  ;;  %v415_v26 = vld [vmem:[#allocation5 + $0x498] sm:$0xff] }
 0x1bb   : > { %3826 = vmatprep.subr.bf16.mxu0 %v5346_v40  ;;  %v5290_v40 = vcombine.high %v590_v34, %v594_v35  ;;  %v419_v29 = vld [vmem:[#allocation5 + $0x4b8] sm:$0xff] }
 0x1bc   : > { %3868 = vmatpush1.bf16.msra.mxu1 %v5353_v39  ;;  %v5425_v39 = vcombine.low %v726_v54, %v730_v55  ;;  %v4995_v54 = vcombine.low %v295_v14, %v299_v15  ;;  %v5123_v55 = vcombine.low %v423_v16, %v427_v17 }
 0x1bd   : > { %3869 = vmatprep.subr.bf16.mxu1 %v5474_v41  ;;  %v5418_v41 = vcombine.high %v718_v36, %v722_v37 }
 0x1be   : > { %3827 = vmatpush2.bf16.msra.mxu0 %v5345_v48  ;;  %v5289_v48 = vcombine.low %v590_v34, %v594_v35  ;;  %v407_v34 = vld [vmem:[#allocation5 + $0x458] sm:$0xff] }
 0x1bf   : > { %3828 = vmatprep.subr.bf16.mxu0 %v5338_v50  ;;  %v5028_v50 = vcombine.high %v327_v42, %v331_v43  ;;  %v411_v35 = vld [vmem:[#allocation5 + $0x478] sm:$0xff] }
 0x1c0   : > { %3870 = vmatpush2.bf16.msra.mxu1 %v5473_v49  ;;  %v5417_v49 = vcombine.low %v718_v36, %v722_v37  ;;  %v5115_v37 = vcombine.low %v415_v26, %v419_v29 }
 0x1c1   : > { %3871 = vmatprep.subr.bf16.mxu1 %v5466_v51  ;;  %v5156_v51 = vcombine.high %v455_v44, %v459_v45 }
 0x1c2   : > { %3829 = vmatpush2.bf16.msra.mxu0 %v5337_v23  ;;  %v5027_v23 = vcombine.low %v327_v42, %v331_v43  ;;  %v399_v42 = vld [vmem:[#allocation5 + $0x418] sm:$0xff] }
 0x1c3   : > { %3830 = vmatprep.subr.bf16.mxu0 %v5330_v27  ;;  %v5020_v27 = vcombine.high %v319_v52, %v323_v53  ;;  %v403_v43 = vld [vmem:[#allocation5 + $0x438] sm:$0xff] }
 0x1c4   : > { %3872 = vmatpush2.bf16.msra.mxu1 %v5465_v24  ;;  %v5155_v24 = vcombine.low %v455_v44, %v459_v45  ;;  %v5107_v45 = vcombine.low %v407_v34, %v411_v35 }
 0x1c5   : > { %3873 = vmatprep.subr.bf16.mxu1 %v5458_v28  ;;  %v5148_v28 = vcombine.high %v447_v56, %v451_v57 }
 0x1c6   : > { %3831 = vmatpush2.bf16.msra.mxu0 %v5329_v2  ;;  %v5019_v2 = vcombine.low %v319_v52, %v323_v53  ;;  %v519_v52 = vld [vmem:[#allocation5 + $0x7d8] sm:$0xff] }
 0x1c7   : > { %3832 = vmatprep.subr.bf16.mxu0 %v5322_v4  ;;  %v5012_v4 = vcombine.high %v311_v61, %v315_v62  ;;  %v523_v53 = vld [vmem:[#allocation5 + $0x7f8] sm:$0xff] }
 0x1c8   : > { %3874 = vmatpush2.bf16.msra.mxu1 %v5457_v3  ;;  %v5147_v3 = vcombine.low %v447_v56, %v451_v57  ;;  %v5099_v57 = vcombine.low %v399_v42, %v403_v43 }
 0x1c9   : > { %3875 = vmatprep.subr.bf16.mxu1 %v5450_v5  ;;  %v5140_v5 = vcombine.high %v439_v0, %v443_v1 }
 0x1ca   : > { %3833 = vmatpush2.bf16.msra.mxu0 %v5321_v10  ;;  %v5011_v10 = vcombine.low %v311_v61, %v315_v62  ;;  %v511_v61 = vld [vmem:[#allocation5 + $0x798] sm:$0xff] }
 0x1cb   : > { %3834 = vmatprep.subr.bf16.mxu0 %v5314_v12  ;;  %v5004_v12 = vcombine.high %v303_v6, %v307_v7  ;;  %v515_v62 = vld [vmem:[#allocation5 + $0x7b8] sm:$0xff] }
 0x1cc   : > { %3876 = vmatpush2.bf16.msra.mxu1 %v5449_v11  ;;  %v5139_v11 = vcombine.low %v439_v0, %v443_v1  ;;  %v5219_v1 = vcombine.low %v519_v52, %v523_v53 }
 0x1cd   : > { %3877 = vmatprep.subr.bf16.mxu1 %v5442_v13  ;;  %v5132_v13 = vcombine.high %v431_v8, %v435_v9 }
 0x1ce   : > { %3835 = vmatpush2.bf16.msra.mxu0 %v5313_v18  ;;  %v5003_v18 = vcombine.low %v303_v6, %v307_v7  ;;  %v503_v6 = vld [vmem:[#allocation5 + $0x758] sm:$0xff] }
 0x1cf   : > { %3836 = vmatprep.subr.bf16.mxu0 %v5306_v20  ;;  %v287_v20 = vld [vmem:[#allocation5 + $0x98] sm:$0xff] }
 0x1d0   : > { %3878 = vmatpush2.bf16.msra.mxu1 %v5441_v19  ;;  %v4996_v19 = vcombine.high %v295_v14, %v299_v15  ;;  %v507_v7 = vld [vmem:[#allocation5 + $0x778] sm:$0xff] }
 0x1d1   : > { %3879 = vmatprep.subr.bf16.mxu1 %v5434_v22  ;;  %v291_v22 = vld [vmem:[#allocation5 + $0xb8] sm:$0xff] }
 0x1d2   : > { %3837 = vmatpush2.bf16.msra.mxu0 %v5305_v30  ;;  %v4988_v30 = vcombine.high %v287_v20, %v291_v22  ;;  %v4987_v36 = vcombine.low %v287_v20, %v291_v22  ;;  %v495_v14 = vld [vmem:[#allocation5 + $0x718] sm:$0xff] }
 0x1d3   : > { %3838 = vmatprep.subr.bf16.mxu0 %v5298_v59  ;;  %v279_v59 = vld [vmem:[#allocation5 + $0x58] sm:$0xff] }
 0x1d4   : > { %3880 = vmatpush2.bf16.msra.mxu1 %v5433_v31  ;;  %v5116_v31 = vcombine.high %v415_v26, %v419_v29  ;;  %v499_v15 = vld [vmem:[#allocation5 + $0x738] sm:$0xff] }
 0x1d5   : > { %3881 = vmatprep.subr.bf16.mxu1 %v5426_v60  ;;  %v283_v60 = vld [vmem:[#allocation5 + $0x78] sm:$0xff]  ;;  %v5195_v29 = vcombine.low %v495_v14, %v499_v15 }
 0x1d6   : > { %3839 = vmatpush2.bf16.msra.mxu0 %v5297_v38  ;;  %v4980_v38 = vcombine.high %v279_v59, %v283_v60  ;;  %v4979_v44 = vcombine.low %v279_v59, %v283_v60  ;;  %v487_v20 = vld [vmem:[#allocation5 + $0x6d8] sm:$0xff] }
 0x1d7   : > { %3840 = vmatprep.subr.bf16.mxu0 %v5290_v40  ;;  %v271_v40 = vld [vmem:[#allocation5 + $0x18] sm:$0xff] }
 0x1d8   : > { %3882 = vmatpush2.bf16.msra.mxu1 %v5425_v39  ;;  %v5108_v39 = vcombine.high %v407_v34, %v411_v35  ;;  %v491_v22 = vld [vmem:[#allocation5 + $0x6f8] sm:$0xff] }
 0x1d9   : > { %3883 = vmatprep.subr.bf16.mxu1 %v5418_v41  ;;  %v275_v41 = vld [vmem:[#allocation5 + $0x38] sm:$0xff]  ;;  %v5187_v35 = vcombine.low %v487_v20, %v491_v22 }
 0x1da   : > { %3841 = vmatpush2.bf16.msra.mxu0 %v5289_v48  ;;  %v4972_v48 = vcombine.high %v271_v40, %v275_v41  ;;  %v4971_v56 = vcombine.low %v271_v40, %v275_v41  ;;  %v479_v59 = vld [vmem:[#allocation5 + $0x698] sm:$0xff] }
 0x1db   : > { %3896 = vmatprep.subr.bf16.mxu0 %v5028_v50  ;;  %v391_v50 = vld [vmem:[#allocation5 + $0x3d8] sm:$0xff] }
 0x1dc   : > { %3884 = vmatpush2.bf16.msra.mxu1 %v5417_v49  ;;  %v5100_v49 = vcombine.high %v399_v42, %v403_v43  ;;  %v483_v60 = vld [vmem:[#allocation5 + $0x6b8] sm:$0xff] }
 0x1dd   : > { %3939 = vmatprep.subr.bf16.mxu1 %v5156_v51  ;;  %3843 = vmatmul.mubr.bf16.vlgmr.msra.gmra.mxu0 %v6204_v46  ;;  %v395_v51 = vld [vmem:[#allocation5 + $0x3f8] sm:$0xff]  ;;  %v5179_v43 = vcombine.low %v479_v59, %v483_v60 }
 0x1de   : > { %3897 = vmatpush1.bf16.msra.mxu0 %v5027_v23  ;;  %3928 = vmatprep.mubr.bf16.mxu0 %v6156_v58  ;;  %v5131_v58 = vcombine.low %v431_v8, %v435_v9  ;;  %v5092_v23 = vcombine.high %v391_v50, %v395_v51  ;;  %v5091_v0 = vcombine.low %v391_v50, %v395_v51  ;;  %v471_v40 = vld [vmem:[#allocation5 + $0x658] sm:$0xff] }
 0x1df   : > { %3886 = vmatmul.mubr.bf16.vlgmr.msra.gmra.mxu1 %v6208_v47  ;;  %3898 = vmatprep.subr.bf16.mxu0 %v5020_v27  ;;  %v383_v27 = vld [vmem:[#allocation5 + $0x398] sm:$0xff]  ;;  %v5211_v9 = vcombine.low %v511_v61, %v515_v62 }
 0x1e0   : > { %3940 = vmatpush1.bf16.msra.mxu1 %v5155_v24  ;;  %3971 = vmatprep.mubr.bf16.mxu1 %v6166_v63  ;;  %v5124_v63 = vcombine.high %v423_v16, %v427_v17  ;;  %v5220_v24 = vcombine.high %v519_v52, %v523_v53  ;;  %v5203_v17 = vcombine.low %v503_v6, %v507_v7  ;;  %v475_v41 = vld [vmem:[#allocation5 + $0x678] sm:$0xff] }
 0x1e1   : > { %3941 = vmatprep.subr.bf16.mxu1 %v5148_v28  ;;  %v387_v28 = vld [vmem:[#allocation5 + $0x3b8] sm:$0xff]  ;;  %v5171_v53 = vcombine.low %v471_v40, %v475_v41 }
 0x1e2   : > { %3899 = vmatpush1.bf16.msra.mxu0 %v5019_v2  ;;  %v5084_v2 = vcombine.high %v383_v27, %v387_v28  ;;  %v5083_v8 = vcombine.low %v383_v27, %v387_v28  ;;  %v463_v50 = vld [vmem:[#allocation5 + $0x618] sm:$0xff] }
 0x1e3   : > { %3900 = vmatprep.subr.bf16.mxu0 %v5012_v4  ;;  %v375_v4 = vld [vmem:[#allocation5 + $0x358] sm:$0xff] }
 0x1e4   : > { %3942 = vmatpush1.bf16.msra.mxu1 %v5147_v3  ;;  %v5212_v3 = vcombine.high %v511_v61, %v515_v62  ;;  %v467_v51 = vld [vmem:[#allocation5 + $0x638] sm:$0xff] }
 0x1e5   : > { %3943 = vmatprep.subr.bf16.mxu1 %v5140_v5  ;;  %v379_v5 = vld [vmem:[#allocation5 + $0x378] sm:$0xff]  ;;  %v5163_v62 = vcombine.low %v463_v50, %v467_v51 }
 0x1e6   : > { %3901 = vmatpush1.bf16.msra.mxu0 %v5011_v10  ;;  %v5076_v10 = vcombine.high %v375_v4, %v379_v5  ;;  %v5075_v16 = vcombine.low %v375_v4, %v379_v5  ;;  %v711_v27 = vld [vmem:[#allocation5 + $0xdd8] sm:$0xff]  ;;  %v6230_v4 = vpop.f32.mrf.mxu0 }
 0x1e7   : > { %3902 = vmatprep.subr.bf16.mxu0 %v5004_v12  ;;  %v367_v12 = vld [vmem:[#allocation5 + $0x318] sm:$0xff] }
 0x1e8   : > { %3944 = vmatpush1.bf16.msra.mxu1 %v5139_v11  ;;  %v5204_v11 = vcombine.high %v503_v6, %v507_v7  ;;  %v715_v28 = vld [vmem:[#allocation5 + $0xdf8] sm:$0xff] }
 0x1e9   : > { %3945 = vmatprep.subr.bf16.mxu1 %v5132_v13  ;;  %v371_v13 = vld [vmem:[#allocation5 + $0x338] sm:$0xff] }
 0x1ea   : > { %3903 = vmatpush1.bf16.msra.mxu0 %v5003_v18  ;;  %v5068_v18 = vcombine.high %v367_v12, %v371_v13  ;;  %v5067_v26 = vcombine.low %v367_v12, %v371_v13  ;;  %v703_v5 = vld [vmem:[#allocation5 + $0xd98] sm:$0xff]  ;;  %v6232_v13 = vpop.f32.mrf.mxu0 }
 0x1eb   : > { %3904 = vmatprep.subr.bf16.mxu0 %v4996_v19  ;;  %v359_v19 = vld [vmem:[#allocation5 + $0x2d8] sm:$0xff] }
 0x1ec   : > { %3946 = vmatpush1.bf16.msra.mxu1 %v5131_v58  ;;  %v5196_v58 = vcombine.high %v495_v14, %v499_v15  ;;  %v707_v6 = vld [vmem:[#allocation5 + $0xdb8] sm:$0xff] }
 0x1ed   : > { %3947 = vmatprep.subr.bf16.mxu1 %v5124_v63  ;;  %v363_v63 = vld [vmem:[#allocation5 + $0x2f8] sm:$0xff] }
 0x1ee   : > { %3905 = vmatpush1.bf16.msra.mxu0 %v4995_v54  ;;  %v5060_v54 = vcombine.high %v359_v19, %v363_v63  ;;  %v5059_v34 = vcombine.low %v359_v19, %v363_v63  ;;  %v571_v12 = vld [vmem:[#allocation5 + $0x978] sm:$0xff] }
 0x1ef   : > { %3906 = vmatprep.subr.bf16.mxu0 %v4988_v30  ;;  %v351_v30 = vld [vmem:[#allocation5 + $0x298] sm:$0xff] }
 0x1f0   : > { %3948 = vmatpush1.bf16.msra.mxu1 %v5123_v55  ;;  %v5188_v55 = vcombine.high %v487_v20, %v491_v22  ;;  %v695_v14 = vld [vmem:[#allocation5 + $0xd58] sm:$0xff]  ;;  %v6239_v22 = vpop.f32.mrf.mxu0 }
 0x1f1   : > { %3949 = vmatprep.subr.bf16.mxu1 %v5116_v31  ;;  %v355_v31 = vld [vmem:[#allocation5 + $0x2b8] sm:$0xff] }
 0x1f2   : > { %3907 = vmatpush1.bf16.msra.mxu0 %v4987_v36  ;;  %v5052_v36 = vcombine.high %v351_v30, %v355_v31  ;;  %v5051_v42 = vcombine.low %v351_v30, %v355_v31  ;;  %v699_v15 = vld [vmem:[#allocation5 + $0xd78] sm:$0xff] }
 0x1f3   : > { %3908 = vmatprep.subr.bf16.mxu0 %v4980_v38  ;;  %v343_v38 = vld [vmem:[#allocation5 + $0x258] sm:$0xff]  ;;  %v5396_v19 = vcombine.high %v695_v14, %v699_v15 }
 0x1f4   : > { %3950 = vmatpush1.bf16.msra.mxu1 %v5115_v37  ;;  %v5180_v37 = vcombine.high %v479_v59, %v483_v60  ;;  %v559_v63 = vld [vmem:[#allocation5 + $0x918] sm:$0xff]  ;;  %v6244_v60 = vpop.f32.mrf.mxu0 }
 0x1f5   : > { %3951 = vmatprep.subr.bf16.mxu1 %v5108_v39  ;;  %v347_v39 = vld [vmem:[#allocation5 + $0x278] sm:$0xff] }
 0x1f6   : > { %3909 = vmatpush1.bf16.msra.mxu0 %v4979_v44  ;;  %v5044_v44 = vcombine.high %v343_v38, %v347_v39  ;;  %v5043_v52 = vcombine.low %v343_v38, %v347_v39  ;;  %v563_v20 = vld [vmem:[#allocation5 + $0x938] sm:$0xff] }
 0x1f7   : > { %3910 = vmatprep.subr.bf16.mxu0 %v4972_v48  ;;  %v335_v48 = vld [vmem:[#allocation5 + $0x218] sm:$0xff] }
 0x1f8   : > { %3952 = vmatpush1.bf16.msra.mxu1 %v5107_v45  ;;  %v5172_v45 = vcombine.high %v471_v40, %v475_v41  ;;  %v551_v31 = vld [vmem:[#allocation5 + $0x8d8] sm:$0xff] }
 0x1f9   : > { %3953 = vmatprep.subr.bf16.mxu1 %v5100_v49  ;;  %v339_v49 = vld [vmem:[#allocation5 + $0x238] sm:$0xff] }
 0x1fa   : > { %3911 = vmatpush1.bf16.msra.mxu0 %v4971_v56  ;;  %v5036_v56 = vcombine.high %v335_v48, %v339_v49  ;;  %v5035_v61 = vcombine.low %v335_v48, %v339_v49  ;;  %v555_v59 = vld [vmem:[#allocation5 + $0x8f8] sm:$0xff] }
 0x1fb   : > { %3912 = vmatprep.subr.bf16.mxu0 %v5092_v23  ;;  %v583_v23 = vld [vmem:[#allocation5 + $0x9d8] sm:$0xff]  ;;  %v5252_v38 = vcombine.high %v551_v31, %v555_v59 }
 0x1fc   : > { %3954 = vmatpush1.bf16.msra.mxu1 %v5099_v57  ;;  %v5164_v57 = vcombine.high %v463_v50, %v467_v51  ;;  %v543_v40 = vld [vmem:[#allocation5 + $0x898] sm:$0xff] }
 0x1fd   : > { %3955 = vmatprep.subr.bf16.mxu1 %v5220_v24  ;;  %v587_v24 = vld [vmem:[#allocation5 + $0x9f8] sm:$0xff] }
 0x1fe   : > { %3913 = vmatpush2.bf16.msra.mxu0 %v5091_v0  ;;  %v5284_v0 = vcombine.high %v583_v23, %v587_v24  ;;  %v5283_v7 = vcombine.low %v583_v23, %v587_v24  ;;  %v547_v41 = vld [vmem:[#allocation5 + $0x8b8] sm:$0xff] }
 0x1ff   : > { %3914 = vmatprep.subr.bf16.mxu0 %v5084_v2  ;;  %v575_v2 = vld [vmem:[#allocation5 + $0x998] sm:$0xff]  ;;  %v5244_v50 = vcombine.high %v543_v40, %v547_v41  ;;  %v5243_v24 = vcombine.low %v543_v40, %v547_v41 }
 0x200   : > { %3956 = vmatpush2.bf16.msra.mxu1 %v5219_v1  ;;  %v5412_v1 = vcombine.high %v711_v27, %v715_v28  ;;  %v667_v23 = vld [vmem:[#allocation5 + $0xc78] sm:$0xff] }
 0x201   : > { %3957 = vmatprep.subr.bf16.mxu1 %v5212_v3  ;;  %v579_v3 = vld [vmem:[#allocation5 + $0x9b8] sm:$0xff] }
 0x202   : > { %3915 = vmatpush2.bf16.msra.mxu0 %v5083_v8  ;;  %v5411_v8 = vcombine.low %v711_v27, %v715_v28  ;;  %v759_v40 = vld [vmem:[#allocation5 + $0xf58] sm:$0xff] }
 0x203   : > { %3916 = vmatprep.subr.bf16.mxu0 %v5076_v10  ;;  %v5404_v10 = vcombine.high %v703_v5, %v707_v6  ;;  %v763_v41 = vld [vmem:[#allocation5 + $0xf78] sm:$0xff] }
 0x204   : > { %3958 = vmatpush2.bf16.msra.mxu1 %v5211_v9  ;;  %v5276_v9 = vcombine.high %v575_v2, %v579_v3 }
 0x205   : > { %3959 = vmatprep.subr.bf16.mxu1 %v5204_v11  ;;  %v567_v11 = vld [vmem:[#allocation5 + $0x958] sm:$0xff] }
 0x206   : > { %3917 = vmatpush2.bf16.msra.mxu0 %v5075_v16  ;;  %v5275_v16 = vcombine.low %v575_v2, %v579_v3  ;;  %v655_v3 = vld [vmem:[#allocation5 + $0xc18] sm:$0xff] }
 0x207   : > { %3918 = vmatprep.subr.bf16.mxu0 %v5068_v18  ;;  %v5403_v18 = vcombine.low %v703_v5, %v707_v6  ;;  %v659_v5 = vld [vmem:[#allocation5 + $0xc38] sm:$0xff] }
 0x208   : > { %3960 = vmatpush2.bf16.msra.mxu1 %v5203_v17  ;;  %v6236_v17 = vpop.f32.mrf.mxu1 }
 0x209   : > { %3961 = vmatprep.subr.bf16.mxu1 %v5196_v58  ;;  %v5268_v58 = vcombine.high %v567_v11, %v571_v12 }
 0x20a   : > { %3919 = vmatpush2.bf16.msra.mxu0 %v5067_v26  ;;  %v691_v26 = vld [vmem:[#allocation5 + $0xd38] sm:$0xff] }
 0x20b   : > { %3920 = vmatprep.subr.bf16.mxu0 %v5060_v54  ;;  %v5395_v54 = vcombine.low %v695_v14, %v699_v15 }
 0x20c   : > { %3962 = vmatpush2.bf16.msra.mxu1 %v5195_v29  ;;  %v6242_v29 = vpop.f32.mrf.mxu1 }
 0x20d   : > { %3963 = vmatprep.subr.bf16.mxu1 %v5188_v55  ;;  %v5260_v55 = vcombine.high %v559_v63, %v563_v20 }
 0x20e   : > { %3921 = vmatpush2.bf16.msra.mxu0 %v5059_v34  ;;  %v683_v34 = vld [vmem:[#allocation5 + $0xcf8] sm:$0xff] }
 0x20f   : > { %3922 = vmatprep.subr.bf16.mxu0 %v5052_v36  ;;  %v6246_v36 = vpop.f32.mrf.mxu1 }
 0x210   : > { %3964 = vmatpush2.bf16.msra.mxu1 %v5187_v35  ;;  %v5259_v35 = vcombine.low %v559_v63, %v563_v20 }
 0x211   : > { %3965 = vmatprep.subr.bf16.mxu1 %v5180_v37 }
 0x212   : > { %3923 = vmatpush2.bf16.msra.mxu0 %v5051_v42  ;;  %v671_v42 = vld [vmem:[#allocation5 + $0xc98] sm:$0xff] }
 0x213   : > { %3924 = vmatprep.subr.bf16.mxu0 %v5044_v44  ;;  %v5251_v44 = vcombine.low %v551_v31, %v555_v59 }
 0x214   : > { %3966 = vmatpush2.bf16.msra.mxu1 %v5179_v43  ;;  %v675_v43 = vld [vmem:[#allocation5 + $0xcb8] sm:$0xff] }
 0x215   : > { %3967 = vmatprep.subr.bf16.mxu1 %v5172_v45  ;;  %v6250_v45 = vpop.f32.mrf.mxu1  ;;  %v5372_v51 = vcombine.high %v671_v42, %v675_v43  ;;  %v5371_v28 = vcombine.low %v671_v42, %v675_v43 }
 0x216   : > { %3925 = vmatpush2.bf16.msra.mxu0 %v5043_v52  ;;  %v535_v52 = vld [vmem:[#allocation5 + $0x858] sm:$0xff] }
 0x217   : > { %3926 = vmatprep.subr.bf16.mxu0 %v5036_v56  ;;  %v6254_v56 = vpop.f32.mrf.mxu1 }
 0x218   : > { %3968 = vmatpush2.bf16.msra.mxu1 %v5171_v53  ;;  %v539_v53 = vld [vmem:[#allocation5 + $0x878] sm:$0xff] }
 0x219   : > { %3969 = vmatprep.subr.bf16.mxu1 %v5164_v57  ;;  %v663_v57 = vld [vmem:[#allocation5 + $0xc58] sm:$0xff]  ;;  %v6258_v2 = vpop.f32.mrf.mxu1  ;;  %v5235_v6 = vcombine.low %v535_v52, %v539_v53 }
 0x21a   : > { %3927 = vmatpush2.bf16.msra.mxu0 %v5035_v61  ;;  %v5236_v61 = vcombine.high %v535_v52, %v539_v53  ;;  %v627_v52 = vld [vmem:[#allocation5 + $0xb38] sm:$0xff] }
 0x21b   : > { %3982 = vmatprep.subr.bf16.mxu0 %v5284_v0  ;;  %v527_v0 = vld [vmem:[#allocation5 + $0x818] sm:$0xff]  ;;  %v6262_v14 = vpop.f32.mrf.mxu1 }
 0x21c   : > { %3970 = vmatpush2.bf16.msra.mxu1 %v5163_v62  ;;  %v5364_v62 = vcombine.high %v663_v57, %v667_v23 }
 0x21d   : > { %4025 = vmatprep.subr.bf16.mxu1 %v5412_v1  ;;  %3929 = vmatmul.mubr.bf16.vlgmr.msra.gmra.mxu0 %v6172_v21  ;;  %v687_v21 = vld [vmem:[#allocation5 + $0xd18] sm:$0xff] }
 0x21e   : > { %3983 = vmatpush1.bf16.msra.mxu0 %v5283_v7  ;;  %4014 = vmatprep.mubr.bf16.mxu0 %v6192_v32  ;;  %v5388_v30 = vcombine.high %v687_v21, %v691_v26  ;;  %v679_v32 = vld [vmem:[#allocation5 + $0xcd8] sm:$0xff]  ;;  %v5387_v37 = vcombine.low %v687_v21, %v691_v26 }
 0x21f   : > { %3972 = vmatmul.mubr.bf16.vlgmr.msra.gmra.mxu1 %v6182_v25  ;;  %3984 = vmatprep.subr.bf16.mxu0 %v5276_v9  ;;  %v5267_v25 = vcombine.low %v567_v11, %v571_v12  ;;  %v5380_v39 = vcombine.high %v679_v32, %v683_v34  ;;  %v5379_v49 = vcombine.low %v679_v32, %v683_v34  ;;  %v531_v1 = vld [vmem:[#allocation5 + $0x838] sm:$0xff] }
 0x220   : > { %4026 = vmatpush1.bf16.msra.mxu1 %v5411_v8  ;;  %4057 = vmatprep.mubr.bf16.mxu1 %v6197_v33  ;;  %v6248_v33 = vpop.f32.mrf.mxu0  ;;  %v5363_v8 = vcombine.low %v663_v57, %v667_v23  ;;  %v5228_v9 = vcombine.high %v527_v0, %v531_v1  ;;  %v647_v11 = vld [vmem:[#allocation5 + $0xbd8] sm:$0xff] }
 0x221   : > { %4027 = vmatprep.subr.bf16.mxu1 %v5404_v10  ;;  %v5356_v10 = vcombine.high %v655_v3, %v659_v5  ;;  %v651_v12 = vld [vmem:[#allocation5 + $0xbf8] sm:$0xff] }
 0x222   : > { %3985 = vmatpush1.bf16.msra.mxu0 %v5275_v16  ;;  %v6252_v48 = vpop.f32.mrf.mxu0  ;;  %v775_v16 = vld [vmem:[#allocation5 + $0xfd8] sm:$0xff]  ;;  %v5348_v63 = vcombine.high %v647_v11, %v651_v12  ;;  %v5347_v31 = vcombine.low %v647_v11, %v651_v12 }
 0x223   : > { %3986 = vmatprep.subr.bf16.mxu0 %v5268_v58  ;;  %v5227_v58 = vcombine.low %v527_v0, %v531_v1  ;;  %v639_v21 = vld [vmem:[#allocation5 + $0xb98] sm:$0xff] }
 0x224   : > { %4028 = vmatpush1.bf16.msra.mxu1 %v5403_v18  ;;  %v6256_v27 = vpop.f32.mrf.mxu0  ;;  %v779_v18 = vld [vmem:[#allocation5 + $0xff8] sm:$0xff] }
 0x225   : > { %4029 = vmatprep.subr.bf16.mxu1 %v5396_v19  ;;  %v5355_v19 = vcombine.low %v655_v3, %v659_v5  ;;  %v5476_v20 = vcombine.high %v775_v16, %v779_v18  ;;  %v643_v26 = vld [vmem:[#allocation5 + $0xbb8] sm:$0xff]  ;;  %v5475_v32 = vcombine.low %v775_v16, %v779_v18 }
 0x226   : > { %3987 = vmatpush1.bf16.msra.mxu0 %v5267_v25  ;;  %v6260_v7 = vpop.f32.mrf.mxu0  ;;  %v6266_v25 = vpop.f32.mrf.mxu1  ;;  %v5340_v34 = vcombine.high %v639_v21, %v643_v26  ;;  %v5339_v42 = vcombine.low %v639_v21, %v643_v26  ;;  %v751_v57 = vld [vmem:[#allocation5 + $0xf18] sm:$0xff] }
 0x227   : > { %3988 = vmatprep.subr.bf16.mxu0 %v5260_v55  ;;  %v767_v55 = vld [vmem:[#allocation5 + $0xf98] sm:$0xff] }
 0x228   : > { %4030 = vmatpush1.bf16.msra.mxu1 %v5395_v54  ;;  %v6264_v15 = vpop.f32.mrf.mxu0  ;;  %v6270_v59 = vpop.f32.mrf.mxu1  ;;  %v755_v23 = vld [vmem:[#allocation5 + $0xf38] sm:$0xff] }
 0x229   : > { %4031 = vmatprep.subr.bf16.mxu1 %v5388_v30  ;;  %v771_v30 = vld [vmem:[#allocation5 + $0xfb8] sm:$0xff]  ;;  %v5452_v1 = vcombine.high %v751_v57, %v755_v23  ;;  %v5451_v12 = vcombine.low %v751_v57, %v755_v23 }
 0x22a   : > { %3989 = vmatpush1.bf16.msra.mxu0 %v5259_v35  ;;  %v6268_v54 = vpop.f32.mrf.mxu0  ;;  %v5468_v35 = vcombine.high %v767_v55, %v771_v30  ;;  %v6274_v43 = vpop.f32.mrf.mxu1  ;;  %v615_v3 = vld [vmem:[#allocation5 + $0xad8] sm:$0xff] }
 0x22b   : > { %3990 = vmatprep.subr.bf16.mxu0 %v5252_v38  ;;  %v635_v38 = vld [vmem:[#allocation5 + $0xb78] sm:$0xff] }
 0x22c   : > { %4032 = vmatpush1.bf16.msra.mxu1 %v5387_v37  ;;  %v631_v37 = vld [vmem:[#allocation5 + $0xb58] sm:$0xff] }
 0x22d   : > { %4033 = vmatprep.subr.bf16.mxu1 %v5380_v39  ;;  %v6272_v39 = vpop.f32.mrf.mxu0  ;;  %v619_v5 = vld [vmem:[#allocation5 + $0xaf8] sm:$0xff] }
 0x22e   : > { %3991 = vmatpush1.bf16.msra.mxu0 %v5251_v44  ;;  %v5467_v44 = vcombine.low %v767_v55, %v771_v30  ;;  %v5316_v16 = vcombine.high %v615_v3, %v619_v5  ;;  %v739_v21 = vld [vmem:[#allocation5 + $0xeb8] sm:$0xff]  ;;  %v5315_v26 = vcombine.low %v615_v3, %v619_v5 }
 0x22f   : > { %3992 = vmatprep.subr.bf16.mxu0 %v5244_v50  ;;  %v5460_v50 = vcombine.high %v759_v40, %v763_v41  ;;  %v3592_v53 = vpop.f32.mrf.mxu0  ;;  %v591_v57 = vld [vmem:[#allocation5 + $0xa18] sm:$0xff] }
 0x230   : > { %4034 = vmatpush1.bf16.msra.mxu1 %v5379_v49  ;;  %v5332_v49 = vcombine.high %v631_v37, %v635_v38  ;;  %v595_v23 = vld [vmem:[#allocation5 + $0xa38] sm:$0xff] }
 0x231   : > { %4035 = vmatprep.subr.bf16.mxu1 %v5372_v51  ;;  %v623_v51 = vld [vmem:[#allocation5 + $0xb18] sm:$0xff] }
 0x232   : > { %3993 = vmatpush1.bf16.msra.mxu0 %v5243_v24  ;;  %v5331_v24 = vcombine.low %v631_v37, %v635_v38  ;;  %v5324_v0 = vcombine.high %v623_v51, %v627_v52  ;;  %v727_v38 = vld [vmem:[#allocation5 + $0xe58] sm:$0xff] }
 0x233   : > { %3994 = vmatprep.subr.bf16.mxu0 %v5236_v61  ;;  %v6278_v61 = vpop.f32.mrf.mxu0  ;;  %v723_v3 = vld [vmem:[#allocation5 + $0xe38] sm:$0xff] }
 0x234   : > { %4036 = vmatpush1.bf16.msra.mxu1 %v5371_v28  ;;  %v6276_v28 = vpop.f32.mrf.mxu1 }
 0x235   : > { %4037 = vmatprep.subr.bf16.mxu1 %v5364_v62  ;;  %v5459_v62 = vcombine.low %v759_v40, %v763_v41  ;;  %v3674_v11 = vpop.f32.mrf.mxu0  ;;  %v731_v40 = vld [vmem:[#allocation5 + $0xe78] sm:$0xff] }
 0x236   : > { %3995 = vmatpush1.bf16.msra.mxu0 %v5235_v6  ;;  %v743_v6 = vld [vmem:[#allocation5 + $0xed8] sm:$0xff] }
 0x237   : > { %3996 = vmatprep.subr.bf16.mxu0 %v5228_v9  ;;  %v5323_v9 = vcombine.low %v623_v51, %v627_v52  ;;  %v6282_v55 = vpop.f32.mrf.mxu0  ;;  %v5428_v52 = vcombine.high %v727_v38, %v731_v40 }
 0x238   : > { %4038 = vmatpush1.bf16.msra.mxu1 %v5363_v8  ;;  %v747_v8 = vld [vmem:[#allocation5 + $0xef8] sm:$0xff] }
 0x239   : > { %4039 = vmatprep.subr.bf16.mxu1 %v5356_v10  ;;  %v3635_v10 = vpop.f32.mrf.mxu1  ;;  %v5444_v18 = vcombine.high %v743_v6, %v747_v8  ;;  %v5443_v30 = vcombine.low %v743_v6, %v747_v8  ;;  %v5427_v6 = vcombine.low %v727_v38, %v731_v40  ;;  %v5292_v8 = vcombine.high %v591_v57, %v595_v23  ;;  %v5727_v38 = vld [vmem:[#allocation7 + $0x28] sm:$0xff]  }
 0x23a   : > { %3997 = vmatpush1.bf16.msra.mxu0 %v5227_v58  ;;  %v607_v58 = vld [vmem:[#allocation5 + $0xa98] sm:$0xff]  ;;  %v3636_v51 = vadd.f32 %v3635_v10, %v3592_v53  ;;  %v5728_v40 = vld [vmem:[#allocation7 + $0xa8] sm:$0xff]  }
 0x23b   : > { %3998 = vmatprep.subr.bf16.mxu0 %v5348_v63  ;;  %v6280_v63 = vpop.f32.mrf.mxu1 }
 0x23c   : > { %4040 = vmatpush1.bf16.msra.mxu1 %v5355_v19  ;;  %v611_v19 = vld [vmem:[#allocation5 + $0xab8] sm:$0xff] }
 0x23d   : > { %4041 = vmatprep.subr.bf16.mxu1 %v5476_v20  ;;  %v735_v20 = vld [vmem:[#allocation5 + $0xe98] sm:$0xff]  ;;  %v3717_v37 = vpop.f32.mrf.mxu1  ;;  %v5307_v41 = vcombine.low %v607_v58, %v611_v19 }
 0x23e   : > { %3999 = vmatpush2.bf16.msra.mxu0 %v5347_v31  ;;  %v5308_v31 = vcombine.high %v607_v58, %v611_v19 }
 0x23f   : > { %4000 = vmatprep.subr.bf16.mxu0 %v5340_v34  ;;  %v599_v34 = vld [vmem:[#allocation5 + $0xa58] sm:$0xff] }
 0x240   : > { %4042 = vmatpush2.bf16.msra.mxu1 %v5475_v32  ;;  %v5436_v32 = vcombine.high %v735_v20, %v739_v21 }
 0x241   : > { %4043 = vmatprep.subr.bf16.mxu1 %v5468_v35  ;;  %v603_v35 = vld [vmem:[#allocation5 + $0xa78] sm:$0xff] }
 0x242   : > { %4001 = vmatpush2.bf16.msra.mxu0 %v5339_v42  ;;  %v3464_v42 = vadd.f32 %v6250_v45, %v6244_v60  ;;  %v3632_v60 = vadd.f32 %v6274_v43, %v6268_v54  ;;  %v5299_v5 = vcombine.low %v599_v34, %v603_v35 }
 0x243   : > { %4002 = vmatprep.subr.bf16.mxu0 %v5332_v49  ;;  %v5435_v49 = vcombine.low %v735_v20, %v739_v21 }
 0x244   : > { %4044 = vmatpush2.bf16.msra.mxu1 %v5467_v44  ;;  %v3678_v44 = vpop.f32.mrf.mxu0 }
 0x245   : > { %4045 = vmatprep.subr.bf16.mxu1 %v5460_v50  ;;  %v5300_v50 = vcombine.high %v599_v34, %v603_v35  ;;  %v3679_v45 = vadd.f32 %v3678_v44, %v3636_v51  ;;  %v5724_v34 = vld [vmem:[#allocation7 + $0xb0] sm:$0xff]   ;;  %v5725_v35 = vld [vmem:[#allocation7 + $0x68] sm:$0xff]   ;;  %v5733_v44 = vld [vmem:[#allocation7 + $0x58] sm:$0xff]  }
 0x246   : > { %4003 = vmatpush2.bf16.msra.mxu0 %v5331_v24  ;;  %v3460_v24 = vadd.f32 %v6242_v29, %v6232_v13  ;;  %v5736_v51 = vld [vmem:[#allocation7 + $0x98] sm:$0xff]  }
 0x247   : > { %4004 = vmatprep.subr.bf16.mxu0 %v5324_v0  ;;  %v6289_v0 = vpop.f32.mrf.mxu1 }
 0x248   : > { %4046 = vmatpush2.bf16.msra.mxu1 %v5459_v62  ;;  %v3507_v62 = vadd.f32 %v6260_v7, %v3464_v42  ;;  %v3503_v53 = vadd.f32 %v6252_v48, %v3460_v24  ;;  %v5732_v42 = vld [vmem:[#allocation7 + $0xa0] sm:$0xff]   ;;  %v3634_v24 = vadd.f32 %v6276_v28, %v6272_v39  ;;  %v5743_v28 = vld [vmem:[#allocation7 + $0x8] sm:$0xff]  }
 0x249   : > { %4047 = vmatprep.subr.bf16.mxu1 %v5452_v1  ;;  %v719_v1 = vld [vmem:[#allocation5 + $0xe18] sm:$0xff]  ;;  %v3721_v7 = vpop.f32.mrf.mxu1 }
 0x24a   : > { %4005 = vmatpush2.bf16.msra.mxu0 %v5323_v9  ;;  %v3675_v9 = vadd.f32 %v3674_v11, %v3632_v60  ;;  %v5420_v13 = vcombine.high %v719_v1, %v723_v3  ;;  %v3550_v29 = vadd.f32 %v6266_v25, %v3507_v62  ;;  %v3722_v10 = vadd.f32 %v3721_v7, %v3679_v45  ;;  %v5719_v11 = vld [vmem:[#allocation7 + $0x38] sm:$0xff]   ;;  %v5739_v62 = vld [vmem:[#allocation7 + $0x10] sm:$0xff]   ;;  %v5741_v45 = vld [vmem:[#allocation7 + $0x48] sm:$0xff]  }
 0x24b   : > { %4006 = vmatprep.subr.bf16.mxu0 %v5316_v16  ;;  %v3546_v54 = vadd.f32 %v6258_v2, %v3503_v53  ;;  %v5419_v43 = vcombine.low %v719_v1, %v723_v3  ;;  %v5717_v16 = vld [vmem:[#allocation7 + $0x78] sm:$0xff]   ;;  %v5722_v2 = vld [vmem:[#allocation7 + $0xf0] sm:$0xff]   ;;  %v3458_v1 = vadd.f32 %v6236_v17, %v6230_v4  ;;  %v3677_v53 = vadd.f32 %v6282_v55, %v3634_v24  ;;  %v5744_v17 = vld [vmem:[#allocation7 + $0x88] sm:$0xff]  }
 0x24c   : > { %4048 = vmatpush2.bf16.msra.mxu1 %v5451_v12  ;;  %v5291_v12 = vcombine.low %v591_v57, %v595_v23  ;;  %v3718_v48 = vadd.f32 %v3717_v37, %v3675_v9  ;;  %v4077_v58 = vmul.f32 %v3550_v29, %v3550_v29  ;;  %v4079_v19 = vmul.f32 %v3722_v10, %v3722_v10  ;;  %v5720_v25 = vld [vmem:[#allocation7 + $0xb8] sm:$0xff]   ;;  %v5726_v37 = vld [vmem:[#allocation7 + $0xe8] sm:$0xff]   ;;  %v5738_v57 = vld [vmem:[#allocation7 + $0xd0] sm:$0xff]  }
 0x24d   : > { %4049 = vmatprep.subr.bf16.mxu1 %v5444_v18  ;;  %v5718_v18 = vld [vmem:[#allocation7 + $0xf8] sm:$0xff]   ;;  %v4069_v20 = vmul.f32 %v3546_v54, %v3546_v54  ;;  %v3462_v23 = vadd.f32 %v6246_v36, %v6239_v22  ;;  %v5740_v60 = vld [vmem:[#allocation7 + $0x90] sm:$0xff]   ;;  %v5742_v22 = vld [vmem:[#allocation7 + $0xc8] sm:$0xff]   ;;  %v3501_v36 = vadd.f32 %v6248_v33, %v3458_v1 }
 0x24e   : > { %4007 = vmatpush2.bf16.msra.mxu0 %v5315_v26  ;;  %v4071_v21 = vmul.f32 %v3718_v48, %v3718_v48  ;;  %v5721_v26 = vld [vmem:[#allocation7 + $0x70] sm:$0xff]   ;;  %v5747_v33 = vld [vmem:[#allocation7] sm:$0xff]   ;;  %v5749_v9 = vld [vmem:[#allocation7 + $0x178] sm:$0xff]  }
 0x24f   : > { %4008 = vmatprep.subr.bf16.mxu0 %v5308_v31  ;;  %v3505_v3 = vadd.f32 %v6256_v27, %v3462_v23  ;;  %v5745_v27 = vld [vmem:[#allocation7 + $0x40] sm:$0xff]   ;;  %v5767_v54 = vld [vmem:[#allocation7 + $0x1f0] sm:$0xff]   ;;  %v5774_v23 = vld [vmem:[#allocation7 + $0x198] sm:$0xff]  }
 0x250   : > { %4050 = vmatpush2.bf16.msra.mxu1 %v5443_v30  ;;  %v4085_v30 = vpack.c.bf16 %v4077_v58, %v4069_v20  ;;  %v4087_v31 = vpack.c.bf16 %v4079_v19, %v4071_v21  ;;  %v5768_v48 = vld [vmem:[#allocation7 + $0x1b0] sm:$0xff]   ;;  %v5754_v58 = vld [vmem:[#allocation7 + $0x128] sm:$0xff]   ;;  %v5755_v19 = vld [vmem:[#allocation7 + $0x160] sm:$0xff]  }
 0x251   : > { %4051 = vmatprep.subr.bf16.mxu1 %v5436_v32  ;;  %v5723_v32 = vld [vmem:[#allocation7 + $0x30] sm:$0xff]   ;;  %v3548_v4 = vadd.f32 %v6262_v14, %v3505_v3  ;;  %v5771_v20 = vld [vmem:[#allocation7 + $0x1e0] sm:$0xff]   ;;  %v5757_v21 = vld [vmem:[#allocation7 + $0x158] sm:$0xff]  }
 0x252   : > { %4009 = vmatpush2.bf16.msra.mxu0 %v5307_v41  ;;  %v5730_v41 = vld [vmem:[#allocation7 + $0xe0] sm:$0xff]  }
 0x253   : > { %4010 = vmatprep.subr.bf16.mxu0 %v5300_v50  ;;  %v5735_v50 = vld [vmem:[#allocation7 + $0x18] sm:$0xff]  }
 0x254   : > { %4052 = vmatpush2.bf16.msra.mxu1 %v5435_v49  ;;  %v5734_v49 = vld [vmem:[#allocation7 + $0xd8] sm:$0xff]  }
 0x255   : > { %4053 = vmatprep.subr.bf16.mxu1 %v5428_v52  ;;  %v5737_v52 = vld [vmem:[#allocation7 + $0x50] sm:$0xff]  }
 0x256   : > { %4011 = vmatpush2.bf16.msra.mxu0 %v5299_v5  ;;  %v3630_v5 = vadd.f32 %v6270_v59, %v6264_v15  ;;  %v5746_v15 = vld [vmem:[#allocation7 + $0xc0] sm:$0xff]   ;;  %v3544_v59 = vadd.f32 %v6254_v56, %v3501_v36  ;;  %v5751_v56 = vld [vmem:[#allocation7 + $0x170] sm:$0xff]  }
 0x257   : > { %4012 = vmatprep.subr.bf16.mxu0 %v5292_v8  ;;  %v4076_v8 = vmul.f32 %v3548_v4, %v3548_v4 }
 0x258   : > { %4054 = vmatpush2.bf16.msra.mxu1 %v5427_v6  ;;  %v3673_v39 = vadd.f32 %v6278_v61, %v3630_v5  ;;  %v3720_v6 = vadd.f32 %v6289_v0, %v3677_v53  ;;  %v5748_v61 = vld [vmem:[#allocation7 + $0x80] sm:$0xff]   ;;  %v4068_v29 = vmul.f32 %v3544_v59, %v3544_v59  ;;  %v5750_v0 = vld [vmem:[#allocation7 + $0x138] sm:$0xff]   ;;  %v5775_v53 = vld [vmem:[#allocation7 + $0x1d0] sm:$0xff]  }
 0x259   : > { %4055 = vmatprep.subr.bf16.mxu1 %v5420_v13  ;;  %v5765_v13 = vld [vmem:[#allocation7 + $0x1f8] sm:$0xff]  }
 0x25a   : > { %4013 = vmatpush2.bf16.msra.mxu0 %v5291_v12  ;;  %v3716_v55 = vadd.f32 %v6280_v63, %v3673_v39  ;;  %v4078_v14 = vmul.f32 %v3720_v6, %v3720_v6  ;;  %v4084_v10 = vpack.c.bf16 %v4076_v8, %v4068_v29  ;;  %v5766_v12 = vld [vmem:[#allocation7 + $0x1b8] sm:$0xff]   ;;  %v5778_v8 = vld [vmem:[#allocation7 + $0x188] sm:$0xff]   ;;  %v5779_v29 = vld [vmem:[#allocation7 + $0x1c0] sm:$0xff]  }
 0x25b   : > { %5551 = vmatprep.subr.bf16.mxu0 %v5717_v16  ;;  %v5753_v16 = vld [vmem:[#allocation7 + $0x168] sm:$0xff]  }
 0x25c   : > { %4056 = vmatpush2.bf16.msra.mxu1 %v5419_v43  ;;  %v4070_v7 = vmul.f32 %v3716_v55, %v3716_v55  ;;  %v5752_v43 = vld [vmem:[#allocation7 + $0x130] sm:$0xff]   ;;  %v5777_v55 = vld [vmem:[#allocation7 + $0x1c8] sm:$0xff]  }
 0x25d   : > { %5573 = vmatprep.subr.bf16.mxu1 %v5718_v18  ;;  %4015 = vmatmul.mubr.bf16.vlgmr.msra.gmra.mxu0 %v6204_v46  ;;  %v5729_v46 = vld [vmem:[#allocation7 + $0x60] sm:$0xff]   ;;  %v5769_v18 = vld [vmem:[#allocation7 + $0x1e8] sm:$0xff]  }
 0x25e   : > { %5552 = vmatpush3.bf16.msra.mxu0 %v5719_v11  ;;  %4636 = vmatprep.mubr.bf16.mxu0 %v4085_v30  ;;  %v4086_v63 = vpack.c.bf16 %v4078_v14, %v4070_v7  ;;  %v5770_v11 = vld [vmem:[#allocation7 + $0x1a8] sm:$0xff]   ;;  %v5758_v30 = vld [vmem:[#allocation7 + $0x118] sm:$0xff]  }
 0x25f   : > { %4058 = vmatmul.mubr.bf16.vlgmr.msra.gmra.mxu1 %v6208_v47  ;;  %5553 = vmatprep.subr.bf16.mxu0 %v5721_v26  ;;  %v5731_v47 = vld [vmem:[#allocation7 + $0x20] sm:$0xff]  }
 0x260   : > { %5574 = vmatpush3.bf16.msra.mxu1 %v5720_v25  ;;  %4677 = vmatprep.mubr.bf16.mxu1 %v4087_v31  ;;  %v5756_v25 = vld [vmem:[#allocation7 + $0x120] sm:$0xff]   ;;  %v5760_v31 = vld [vmem:[#allocation7 + $0x110] sm:$0xff]  }
 0x261   : > { %5575 = vmatprep.subr.bf16.mxu1 %v5722_v2  ;;  %v5772_v26 = vld [vmem:[#allocation7 + $0x1a0] sm:$0xff]   ;;  %v5759_v2 = vld [vmem:[#allocation7 + $0x150] sm:$0xff]  }
 0x262   : > { %5554 = vmatpush3.bf16.msra.mxu0 %v5723_v32  ;;  %v3758_v32 = vpop.f32.mrf.mxu0 }
 0x263   : > { %5555 = vmatprep.subr.bf16.mxu0 %v5725_v35  ;;  %v3801_v35 = vpop.f32.mrf.mxu1 }
 0x264   : > { %5576 = vmatpush3.bf16.msra.mxu1 %v5724_v34  ;;  %v5761_v34 = vld [vmem:[#allocation7 + $0x148] sm:$0xff]   ;;  %v3802_v24 = vadd.f32 %v3801_v35, %v3758_v32 }
 0x265   : > { %5577 = vmatprep.subr.bf16.mxu1 %v5726_v37  ;;  %v5762_v37 = vld [vmem:[#allocation7 + $0x108] sm:$0xff]  }
 0x266   : > { %5556 = vmatpush3.bf16.msra.mxu0 %v5727_v38  ;;  %v3760_v38 = vpop.f32.mrf.mxu0 }
 0x267   : > { %5557 = vmatprep.subr.bf16.mxu0 %v5729_v46  ;;  %v3803_v46 = vpop.f32.mrf.mxu1 }
 0x268   : > { %5578 = vmatpush3.bf16.msra.mxu1 %v5728_v40  ;;  %v5763_v40 = vld [vmem:[#allocation7 + $0x140] sm:$0xff]  }
 0x269   : > { %5579 = vmatprep.subr.bf16.mxu1 %v5730_v41  ;;  %v5764_v41 = vld [vmem:[#allocation7 + $0x100] sm:$0xff]  }
 0x26a   : > { %5558 = vmatpush3.bf16.msra.mxu0 %v5731_v47  ;;  %v3762_v47 = vpop.f32.mrf.mxu0 }
 0x26b   : > { %5559 = vmatprep.subr.bf16.mxu0 %v5733_v44 }
 0x26c   : > { %5580 = vmatpush3.bf16.msra.mxu1 %v5732_v42  ;;  %v3805_v42 = vpop.f32.mrf.mxu1  ;;  %v3764_v44 = vpop.f32.mrf.mxu0 }
 0x26d   : > { %5581 = vmatprep.subr.bf16.mxu1 %v5734_v49  ;;  %v3806_v1 = vadd.f32 %v3805_v42, %v3762_v47 }
 0x26e   : > { %5560 = vmatpush3.bf16.msra.mxu0 %v5735_v50  ;;  %v3807_v49 = vpop.f32.mrf.mxu1 }
 0x26f   : > { %5561 = vmatprep.subr.bf16.mxu0 %v5737_v52  ;;  %v3804_v52 = vadd.f32 %v3803_v46, %v3760_v38 }
 0x270   : > { %5582 = vmatpush3.bf16.msra.mxu1 %v5736_v51  ;;  %v5773_v51 = vld [vmem:[#allocation7 + $0x1d8] sm:$0xff]  }
 0x271   : > { %5583 = vmatprep.subr.bf16.mxu1 %v5738_v57 }
 0x272   : > { %5562 = vmatpush3.bf16.msra.mxu0 %v5739_v62 }
 0x273   : > { %5563 = vmatprep.subr.bf16.mxu0 %v5741_v45 }
 0x274   : > { %5584 = vmatpush3.bf16.msra.mxu1 %v5740_v60 }
 0x275   : > { %5585 = vmatprep.subr.bf16.mxu1 %v5742_v22  ;;  %v3808_v22 = vadd.f32 %v3807_v49, %v3764_v44 }
 0x276   : > { %5564 = vmatpush3.bf16.msra.mxu0 %v5743_v28  ;;  %v5776_v28 = vld [vmem:[#allocation7 + $0x190] sm:$0xff]  }
 0x277   : > { %5565 = vmatprep.subr.bf16.mxu0 %v5745_v27 }
 0x278   : > { %5586 = vmatpush3.bf16.msra.mxu1 %v5744_v17 }
 0x279   : > { %5587 = vmatprep.subr.bf16.mxu1 %v5746_v15 }
 0x27a   : > { %5566 = vmatpush3.bf16.msra.mxu0 %v5747_v33 }
 0x27b   : > { %5595 = vmatprep.subr.bf16.mxu0 %v5749_v9 }
 0x27c   : > { %5588 = vmatpush3.bf16.msra.mxu1 %v5748_v61 }
 0x27d   : > { %5617 = vmatprep.subr.bf16.mxu1 %v5765_v13  ;;  %4637 = vmatmul.mubr.bf16.vlgmr.msra.gmra.mxu0 %v4084_v10 }
 0x27e   : > { %5596 = vmatpush3.bf16.msra.mxu0 %v5750_v0  ;;  %v5780_v0 = vld [vmem:[#allocation7 + $0x180] sm:$0xff]  }
 0x27f   : > { %4678 = vmatmul.mubr.bf16.vlgmr.msra.gmra.mxu1 %v4086_v63  ;;  %5597 = vmatprep.subr.bf16.mxu0 %v5751_v56 }
 0x280   : > { %5618 = vmatpush3.bf16.msra.mxu1 %v5766_v12 }
 0x281   : > { %5619 = vmatprep.subr.bf16.mxu1 %v5767_v54 }
 0x282   : > { %5598 = vmatpush3.bf16.msra.mxu0 %v5752_v43 }
 0x283   : > { %5599 = vmatprep.subr.bf16.mxu0 %v5753_v16 }
 0x284   : > { %5620 = vmatpush3.bf16.msra.mxu1 %v5768_v48 }
 0x285   : > { %5621 = vmatprep.subr.bf16.mxu1 %v5769_v18 }
 0x286   : > { %5600 = vmatpush3.bf16.msra.mxu0 %v5754_v58 }
 0x287   : > { %5601 = vmatprep.subr.bf16.mxu0 %v5755_v19 }
 0x288   : > { %5622 = vmatpush3.bf16.msra.mxu1 %v5770_v11 }
 0x289   : > { %5623 = vmatprep.subr.bf16.mxu1 %v5771_v20 }
 0x28a   : > { %5602 = vmatpush3.bf16.msra.mxu0 %v5756_v25 }
 0x28b   : > { %5603 = vmatprep.subr.bf16.mxu0 %v5757_v21 }
 0x28c   : > { %5624 = vmatpush3.bf16.msra.mxu1 %v5772_v26 }
 0x28d   : > { %5625 = vmatprep.subr.bf16.mxu1 %v5773_v51 }
 0x28e   : > { %5604 = vmatpush3.bf16.msra.mxu0 %v5758_v30 }
 0x28f   : > { %5605 = vmatprep.subr.bf16.mxu0 %v5759_v2 }
 0x290   : > { %5626 = vmatpush3.bf16.msra.mxu1 %v5774_v23 }
 0x291   : > { %5627 = vmatprep.subr.bf16.mxu1 %v5775_v53 }
 0x292   : > { %5606 = vmatpush3.bf16.msra.mxu0 %v5760_v31 }
 0x293   : > { %5607 = vmatprep.subr.bf16.mxu0 %v5761_v34 }
 0x294   : > { %5628 = vmatpush3.bf16.msra.mxu1 %v5776_v28 }
 0x295   : > { %5629 = vmatprep.subr.bf16.mxu1 %v5777_v55 }
 0x296   : > { %5608 = vmatpush3.bf16.msra.mxu0 %v5762_v37 }
 0x297   : > { %5609 = vmatprep.subr.bf16.mxu0 %v5763_v40 }
 0x298   : > { %5630 = vmatpush3.bf16.msra.mxu1 %v5778_v8 }
 0x299   : > { %5631 = vmatprep.subr.bf16.mxu1 %v5779_v29 }
 0x29a   : > { %5610 = vmatpush3.bf16.msra.mxu0 %v5764_v41 }
 0x29c   : > { %5632 = vmatpush3.bf16.msra.mxu1 %v5780_v0 }
 0x29d   : > { %v3844_v50 = vpop.f32.mrf.mxu0 }
 0x29e   : > { %v3845_v45 = vadd.f32 %v3844_v50, %v3802_v24 }
 0x29f   : > { %v3887_v57 = vpop.f32.mrf.mxu1  ;;  %v3846_v62 = vpop.f32.mrf.mxu0 }
 0x2a0   : > { %v3847_v3 = vadd.f32 %v3846_v62, %v3804_v52  ;;  %v3888_v15 = vadd.f32 %v3887_v57, %v3845_v45 }
 0x2a1   : > { %v3889_v60 = vpop.f32.mrf.mxu1  ;;  %v3848_v5 = vpop.f32.mrf.mxu0 }
 0x2a2   : > { %v3849_v36 = vadd.f32 %v3848_v5, %v3806_v1  ;;  %v3890_v17 = vadd.f32 %v3889_v60, %v3847_v3  ;;  %v4072_v13 = vmul.f32 %v3888_v15, %v3888_v15 }
 0x2a3   : > { %v3891_v39 = vpop.f32.mrf.mxu1  ;;  %v3850_v4 = vpop.f32.mrf.mxu0 }
 0x2a4   : > { %v3892_v27 = vadd.f32 %v3891_v39, %v3849_v36  ;;  %v3851_v6 = vadd.f32 %v3850_v4, %v3808_v22  ;;  %v4073_v9 = vmul.f32 %v3890_v17, %v3890_v17 }
 0x2a5   : > { %v3893_v59 = vpop.f32.mrf.mxu1 }
 0x2a6   : > { %v3894_v33 = vadd.f32 %v3893_v59, %v3851_v6  ;;  %v4080_v61 = vmul.f32 %v3892_v27, %v3892_v27 }
 0x2a8   : > { %v4081_v14 = vmul.f32 %v3894_v33, %v3894_v33  ;;  %v4088_v10 = vpack.c.bf16 %v4080_v61, %v4072_v13 }
 0x2aa   : > { %v4089_v7 = vpack.c.bf16 %v4081_v14, %v4073_v9 }
 0x2ac   : > { %4718 = vmatprep.mubr.bf16.mxu0 %v4089_v7 }
 0x2ad   : > { %4719 = vmatmul.mubr.bf16.vlgmr.msra.gmra.mxu0 %v4088_v10 }
 0x2dd   : > { %v3930_v56 = vpop.f32.mrf.mxu0 }
 0x2df   : > { %v3973_v12 = vpop.f32.mrf.mxu1  ;;  %v3932_v63 = vpop.f32.mrf.mxu0 }
 0x2e0   : > { %v3974_v20 = vadd.f32 %v3973_v12, %v3930_v56 }
 0x2e1   : > { %v3975_v54 = vpop.f32.mrf.mxu1  ;;  %v3934_v43 = vpop.f32.mrf.mxu0 }
 0x2e2   : > { %v3976_v19 = vadd.f32 %v3975_v54, %v3932_v63 }
 0x2e3   : > { %v3977_v16 = vpop.f32.mrf.mxu1  ;;  %v3936_v48 = vpop.f32.mrf.mxu0 }
 0x2e4   : > { %v3978_v21 = vadd.f32 %v3977_v16, %v3934_v43 }
 0x2e5   : > { %v3979_v18 = vpop.f32.mrf.mxu1 }
 0x2e6   : > { %v3980_v32 = vadd.f32 %v3979_v18, %v3936_v48 }
 0x31d   : > { %v4016_v58 = vpop.f32.mrf.mxu0 }
 0x31e   : > { %v4017_v2 = vadd.f32 %v4016_v58, %v3974_v20 }
 0x31f   : > { %v4059_v11 = vpop.f32.mrf.mxu1  ;;  %v4018_v25 = vpop.f32.mrf.mxu0 }
 0x320   : > { %v4019_v26 = vadd.f32 %v4018_v25, %v3976_v19  ;;  %v4060_v41 = vadd.f32 %v4059_v11, %v4017_v2 }
 0x321   : > { %v4061_v30 = vpop.f32.mrf.mxu1  ;;  %v4020_v31 = vpop.f32.mrf.mxu0 }
 0x322   : > { %v4021_v34 = vadd.f32 %v4020_v31, %v3978_v21  ;;  %v4062_v38 = vadd.f32 %v4061_v30, %v4019_v26  ;;  %v4074_v51 = vmul.f32 %v4060_v41, %v4060_v41 }
 0x323   : > { %v4063_v35 = vpop.f32.mrf.mxu1  ;;  %v4022_v37 = vpop.f32.mrf.mxu0 }
 0x324   : > { %v4064_v40 = vadd.f32 %v4063_v35, %v4021_v34  ;;  %v4023_v46 = vadd.f32 %v4022_v37, %v3980_v32  ;;  %v4075_v49 = vmul.f32 %v4062_v38, %v4062_v38 }
 0x325   : > { %v4065_v47 = vpop.f32.mrf.mxu1 }
 0x326   : > { %v4066_v42 = vadd.f32 %v4065_v47, %v4023_v46  ;;  %v4082_v44 = vmul.f32 %v4064_v40, %v4064_v40 }
 0x328   : > { %v4083_v50 = vmul.f32 %v4066_v42, %v4066_v42  ;;  %v4090_v57 = vpack.c.bf16 %v4082_v44, %v4074_v51 }
 0x32a   : > { %v4091_v52 = vpack.c.bf16 %v4083_v50, %v4075_v49 }
 0x32c   : > { %4759 = vmatprep.mubr.bf16.mxu1 %v4091_v52 }
 0x32d   : > { %4760 = vmatmul.mubr.bf16.vlgmr.msra.gmra.mxu1 %v4090_v57 }
 0x33d   : > { %v5567_v23 = vpop.f32.mrf.mxu0 }
 0x33f   : > { %v5568_v24 = vpop.f32.mrf.mxu0  ;;  %v5589_v1 = vpop.f32.mrf.mxu1 }
 0x340   : > { %v5569_v36 = vadd.f32 %v5568_v24, %v5567_v23 }
 0x341   : > { %v5570_v62 = vpop.f32.mrf.mxu0  ;;  %v5590_v45 = vpop.f32.mrf.mxu1 }
 0x342   : > { %v5591_v39 = vadd.f32 %v5590_v45, %v5589_v1 }
 0x343   : > { %v5571_v3 = vpop.f32.mrf.mxu0  ;;  %v5592_v53 = vpop.f32.mrf.mxu1 }
 0x344   : > { %v4680_v6 = vadd.f32 %v5591_v39, %v5569_v36  ;;  %v5572_v15 = vadd.f32 %v5571_v3, %v5570_v62 }
 0x345   : > { %v5593_v28 = vpop.f32.mrf.mxu1 }
 0x346   : > { %v5594_v59 = vadd.f32 %v5593_v28, %v5592_v53 }
 0x348   : > { %v4683_v14 = vadd.f32 %v5594_v59, %v5572_v15 }
 0x36d   : > { %v5611_v60 = vpop.f32.mrf.mxu0 }
 0x36f   : > { %v5612_v5 = vpop.f32.mrf.mxu0 }
 0x370   : > { %v5613_v4 = vadd.f32 %v5612_v5, %v5611_v60 }
 0x371   : > { %v5614_v22 = vpop.f32.mrf.mxu0 }
 0x372   : > { %v4721_v33 = vadd.f32 %v5613_v4, %v4680_v6 }
 0x373   : > { %v5615_v17 = vpop.f32.mrf.mxu0 }
 0x374   : > { %v5616_v8 = vadd.f32 %v5615_v17, %v5614_v22 }
 0x376   : > { %v4724_v7 = vadd.f32 %v5616_v8, %v4683_v14 }
 0x3ed   : > { %v5633_v27 = vpop.f32.mrf.mxu1 }
 0x3ef   : > { %v5634_v55 = vpop.f32.mrf.mxu1 }
 0x3f0   : > { %v5635_v61 = vadd.f32 %v5634_v55, %v5633_v27 }
 0x3f1   : > { %v5636_v9 = vpop.f32.mrf.mxu1 }
 0x3f2   : > { %v4762_v13 = vadd.f32 %v5635_v61, %v4721_v33 }
 0x3f3   : > { %v5637_v29 = vpop.f32.mrf.mxu1 }
 0x3f4   : > { %v4768_v0 = vmax.f32 %v4762_v13, 1e-10  ;;  %v5638_v10 = vadd.f32 %v5637_v29, %v5636_v9 }
 0x3f6   : > { %5781 = vlog2.f32 %v4768_v0  ;;  %v4765_v56 = vadd.f32 %v5638_v10, %v4724_v7 }
 0x3f8   : > { %v4769_v12 = vmax.f32 %v4765_v56, 1e-10 }
 0x3fa   : > { %5783 = vlog2.f32 %v4769_v12 }
 0x403   : > { %v5782_v63 = vpop.eup %5781 }
 0x404   : > { %v4771_v54 = vmul.f32 0.6931472, %v5782_v63 }
 0x406   : > { %v4774_v43 = vmul.f32 0.4342945, %v4771_v54 }
 0x407   : > { %v5784_v16 = vpop.eup %5783 }
 0x408   : > { %4776 = vst [vmem:[%s249_s30] sm:$0xff] %v4774_v43  ;;  %v4773_v48 = vmul.f32 0.6931472, %v5784_v16 }
 0x40a   : > { %v4775_v18 = vmul.f32 0.4342945, %v4773_v48 }
 0x40c   : > { %4777 = vst [vmem:[%s249_s30 + $0x8] sm:$0xff] %v4775_v18  ;;  %v4778_v58 = vmax.f32 %v4774_v43, %v4775_v18 }
 0x40d   : > { %5878 = shalt.err (!%p5875_p3)
}
 0x40e   : > { %s5879_s14 = scalar_lea.hbm %s6319_s10, 256  ;;  %s5883_s28 = scalar_lea.hbm %s6385_s3, 512 }
 0x40f   : > { %p5880_p11 = scmp.ne.s32.totalorder %s6319_s10, %s5879_s14  ;;  %p5884_p4 = scmp.lt.s32.totalorder %s6319_s10, %s6385_s3 }
 0x410   : > { %p5885_p6 = scmp.lt.s32.totalorder %s5883_s28, %s5879_s14 }
 0x411   : > { %p5881_p9 = pnand %p5880_p11, %p6401_p2 }
 0x412   : > { %p5886_p8 = por %p5885_p6, %p5884_p4 }
 0x413   : > { %p5882_p1 = pneg %p5881_p9 }
 0x415   : > { %p5887_p10 = pnand %p5886_p8, %p5882_p1 }
 0x417   : > { %5890 = shalt.err (!%p5887_p10)
}
 0x418   : > { %s5973_s30 = smov 128   ;;  %s5974_s7 = smov 8   ;;  %v4779_v19 = vrot.slane %v4778_v58, 4 }
 0x419   : > { %5649 = dma.vmem_to_hbm [thread:$0]  (%p6401_p2), %s6321_s5, 256, %s6319_s10, %s4787_s11, %s5973_s30, %s5973_s30, %s5974_s7  }
 0x41a   : > { %s4956_s9 = sshll.u32 %s6134_s12, 3  ;;  %v4780_v11 = vmax.f32 %v4778_v58, %v4779_v19  ;;  %s5545_s29 = sshll.u32 %s6022_s19, 7 }
 0x41b   : > { %s256_s26 = scalar_lea.vmem [#allocation9], %s4956_s9  ;;  %s4819_s20 = scalar_lea.hbm %s6386_s4, %s5545_s29 }
 0x41c   : > { %v4781_v20 = vrot.slane %v4780_v11, 2  ;;  %s4821_s6 = sshll.u32 %s256_s26, 4  ;;  %s4792_s27 = scalar_lea.sflag [#allocation10], %s6134_s12  ;;  %s4822_s6 = int_to_ptr.vmem [resolvable:$true] %s4821_s6 }
 0x41d   : > { %s5891_s28 = scalar_lea.vmem %s4822_s6, 128  ;;  %s5975_s5 = smov [#allocation9]  }
 0x41e   : > { %v4782_v25 = vmax.f32 %v4780_v11, %v4781_v20  ;;  %p5892_p7 = scmp.ne.s32.totalorder %s4822_s6, %s5891_s28  ;;  %s5895_s10 = sshll.u32 %s5975_s5, 4  ;;  %s5896_s10 = int_to_ptr.vmem [resolvable:$false] %s5895_s10 }
 0x41f   : > { %s5897_s19 = scalar_lea.vmem %s5896_s10, 256  ;;  %p5898_p0 = scmp.lt.s32.totalorder %s4822_s6, %s5896_s10 }
 0x420   : > { %v4783_v21 = vrot.slane %v4782_v25, 1  ;;  %p5893_p12 = pnand %p5892_p7, %p6401_p2  ;;  %p5899_p5 = scmp.lt.s32.totalorder %s5897_s19, %s5891_s28 }
 0x422   : > { %v4784_v26 = vmax.f32 %v4782_v25, %v4783_v21  ;;  %p5894_p13 = pneg %p5893_p12  ;;  %p5900_p3 = por %p5899_p5, %p5898_p0 }
 0x424   : > { %4785 = vst [vmem:[%s256_s26] sm:$0xff] %v4784_v26  ;;  %p5901_p11 = pnand %p5900_p3, %p5894_p13 }
 0x426   : > { %5904 = shalt.err (!%p5901_p11)
}
 0x427   : > { %s5905_s11 = scalar_lea.hbm %s4819_s20, 128  ;;  %s5909_s23 = scalar_lea.hbm %s6386_s4, 256 }
 0x428   : > { %p5906_p9 = scmp.ne.s32.totalorder %s4819_s20, %s5905_s11  ;;  %p5910_p6 = scmp.lt.s32.totalorder %s4819_s20, %s6386_s4 }
 0x429   : > { %p5911_p8 = scmp.lt.s32.totalorder %s5909_s23, %s5905_s11 }
 0x42a   : > { %p5907_p1 = pnand %p5906_p9, %p6401_p2 }
 0x42b   : > { %p5912_p10 = por %p5911_p8, %p5910_p6 }
 0x42c   : > { %p5908_p4 = pneg %p5907_p1 }
 0x42e   : > { %p5913_p7 = pnand %p5912_p10, %p5908_p4 }
 0x430   : > { %5916 = shalt.err (!%p5913_p7)
}
 0x431   : > { %5650 = dma.vmem_to_hbm [thread:$0]  (%p6401_p2), %s4822_s6, 128, %s4819_s20, %s4792_s27  }
 0x432 PF: > { %s4833_s9 = sand.u32 1, %s5951_s15   ;;  %p6402_p12 = scmp.ne.s32.totalorder %s6392_s22, 0 }
 0x433   : > { %p6403_p13 = scmp.ge.s32.totalorder %s5963_s18, 2  ;;  %s4834_s29 = scalar_lea.sflag [#allocation4], %s4833_s9 }
 0x435   : > { %p5665_p0 = pnand %p6403_p13, %p6402_p12 }
 0x437   : > { %p5666_p5 = pneg %p5665_p0 }
 0x439   : > { %5942 = dma.done.wait (%p5666_p5), %s4834_s29, 256  }
 0x43a   : > { %5944 = vsyncadd (%p5666_p5), %s4834_s29, 4294967040  ;;  %s4843_s26 = scalar_lea.sflag [#allocation10], %s4833_s9 }
 0x43b   : > { %5946 = dma.done.wait (%p5666_p5), %s4843_s26, 128  }
 0x43c   : > { %5948 = vsyncadd (%p5666_p5), %s4843_s26, 4294967168  ;;  %p22_p2 = scmp.ge.s32.totalorder %s6076_s13, 4   ;;  %s6404_s15 = smov %s5955_s16 }
 0x43d   : > { %s6405_s16 = smov %s5959_s17  ;;  %s6406_s17 = smov %s6085_s24 }
 0x43e   : > { %s6407_s18 = smov %s6076_s13  ;;  %24 = sbr.rel (!%p22_p2) target bundleno = 8 (0x8), region = 102 }
 0x443   :  { %4848 = vsyncpa [#allocation3], 1 }
 0x444   :  { %4850 = vsyncpa [#allocation3 + $0x1], 1 }
 0x445   :  { %4851 = vsyncpa [#allocation6], 1 }
 0x446   :  { %4852 = vsyncpa [#allocation4], 1 }
 0x447   :  { %4854 = vsyncpa [#allocation4 + $0x1], 1 }
 0x448   :  { %4855 = vsyncpa [#allocation10], 1 }
 0x449   :  { %4857 = vsyncpa [#allocation10 + $0x1], 1 }

</bundles_post_ra>
